<compile_context>
chip_gen: v6e
topology: v6e:2x2x1
jax: 0.10.0
libtpu: 0.0.40
codegen_flags: <defaults>
</compile_context>

<pallas_src>
import jax
import jax.numpy as jnp
from jax.experimental import pallas as pl
from jax.experimental.pallas import tpu as pltpu


def _round_up(x, m):
    return (x + m - 1) // m * m


def _choose_tile(batch, max_tb=32):
    """Pick a batch tile TB and padded batch Bp (>=2 grid steps for v7x)."""
    tb = min(max_tb, batch)
    if batch > 1:
        tb = min(tb, -(-batch // 2))      # ensure the grid has >= 2 steps
    return tb, _round_up(batch, tb)


# --------------------------- fully fused network kernel --------------------------- #

def _fused_net_kernel(x_ref, w1b_ref, b1_ref, w2b_ref, b2_ref,
                      wf1_ref, fb1_ref, wf2_ref, fb2_ref, o_ref):
    TB = x_ref.shape[0]
    x = x_ref[...]                                             # (TB, 36, 28) f32 (H padded 28->36)

    # ---- conv1 (5x5, 1->20) as 5 row-banded matmuls on the MXU ----
    # acc1 rows = (b, i), lanes = 20*j + co  (i: 32 rows, rows >=24 are padding garbage)
    acc1 = None
    for ki in range(5):
        lhs = x[:, ki:ki + 32, :].reshape(TB * 32, 28).astype(jnp.bfloat16)
        d = jnp.dot(lhs, w1b_ref[ki], preferred_element_type=jnp.float32)
        acc1 = d if acc1 is None else acc1 + d
    c1 = jnp.maximum(acc1 + b1_ref[...], 0.0)                  # bias + ReLU, (TB*32, 480)

    # ---- 2x2/2 max-pool of conv1, in-register (no scratch, no strided loads) ----
    cw = jnp.maximum(c1[:, 0:460], c1[:, 20:480])              # width pairs; valid lanes 40*t + c
    cwr = cw.reshape(TB, 32, 460)
    ch = jnp.maximum(cwr[:, 0:24, :], cwr[:, 1:25, :])         # height pairs; valid rows 2*s

    # ---- conv2 (5x5, 20->50) as 5 banded matmuls on the sparse pooled layout ----
    # weight rows for the "garbage" lanes/rows are zero, so no compaction is needed.
    acc2 = None
    for ki in range(5):
        lhs = ch[:, 2 * ki:2 * ki + 16, :].reshape(TB * 16, 460).astype(jnp.bfloat16)
        d = jnp.dot(lhs, w2b_ref[ki], preferred_element_type=jnp.float32)
        acc2 = d if acc2 is None else acc2 + d
    c2 = jnp.maximum(acc2 + b2_ref[...], 0.0)                  # (TB*16, 400), valid even rows

    # ---- 2x2/2 max-pool of conv2 ----
    c2w = jnp.maximum(c2[:, 0:350], c2[:, 50:400])             # width pairs; valid lanes 100*v + co
    c2wr = c2w.reshape(TB, 16, 350)
    c2h = jnp.maximum(c2wr[:, 0:13, :], c2wr[:, 2:15, :])      # height pairs; valid rows 4*u

    # ---- fc1 (800 -> 500, padded to 512) as 4 accumulating dots (one per pooled row) ----
    accf = None
    for u in range(4):
        lhs = c2h[:, 4 * u, :].astype(jnp.bfloat16)            # (TB, 350)
        d = jnp.dot(lhs, wf1_ref[u], preferred_element_type=jnp.float32)
        accf = d if accf is None else accf + d
    h = jnp.maximum(accf + fb1_ref[...], 0.0)                  # (TB, 512)

    # ---- fc2 (500 -> 10, padded to 128 lanes) + log_softmax ----
    z = jnp.dot(h.astype(jnp.bfloat16), wf2_ref[...], preferred_element_type=jnp.float32)
    z = z + fb2_ref[...]                                       # pad columns get -1e30 bias
    m = jnp.max(z, axis=-1, keepdims=True)
    s = z - m
    lse = jnp.log(jnp.sum(jnp.exp(s), axis=-1, keepdims=True))
    o_ref[0] = (s - lse).astype(o_ref.dtype)                   # single lane-dense (TB, 128) store


def net_forward_pallas(dp, x_nchw):
    """Forward pass of `Net`. x: (B, 1, 28, 28) float32, NCHW like PyTorch."""
    B = x_nchw.shape[0]
    x = x_nchw.reshape(B, 28, 28)                              # Cin=1: NCHW == NHWC
    tb, Bp = _choose_tile(B)
    xp = jnp.pad(x, ((0, Bp - B), (0, 8), (0, 0)))             # pad batch + H 28->36 (zeros)

    out = pl.pallas_call(
        _fused_net_kernel,
        out_shape=jax.ShapeDtypeStruct((Bp // tb, tb, 128), jnp.float32),
        grid=(Bp // tb,),
        in_specs=[
            pl.BlockSpec((tb, 36, 28), lambda i: (i, 0, 0)),     # batch tile of images
            pl.BlockSpec((5, 28, 480), lambda i: (0, 0, 0)),     # conv1 banded weights (resident)
            pl.BlockSpec((1, 480), lambda i: (0, 0)),
            pl.BlockSpec((5, 460, 400), lambda i: (0, 0, 0)),    # conv2 banded weights
            pl.BlockSpec((1, 400), lambda i: (0, 0)),
            pl.BlockSpec((4, 350, 512), lambda i: (0, 0, 0)),    # fc1 per-row weights
            pl.BlockSpec((1, 512), lambda i: (0, 0)),
            pl.BlockSpec((512, 128), lambda i: (0, 0)),          # fc2 weights (lane padded)
            pl.BlockSpec((1, 128), lambda i: (0, 0)),
        ],
        out_specs=pl.BlockSpec((1, tb, 128), lambda i: (i, 0, 0)),
        compiler_params=pltpu.CompilerParams(
            dimension_semantics=("parallel",),
            vmem_limit_bytes=48 * 1024 * 1024),
    )(xp, dp["w1b"], dp["b1"], dp["w2b"], dp["b2"],
      dp["wf1"], dp["fb1"], dp["wf2"], dp["fb2"])

    return out.reshape(Bp, 128)[:B, :10]


net_forward = jax.jit(net_forward_pallas)


# ------------------------------ params & host-side prep ------------------------------ #

def init_params(key):
    """Deterministic synthetic init, PyTorch shapes / uniform fan-in bounds."""
    ks = jax.random.split(key, 8)

    def u(k, shape, fan_in):
        bound = 1.0 / jnp.sqrt(jnp.float32(fan_in))
        return jax.random.uniform(k, shape, jnp.float32, -bound, bound)

    return {
        "conv1_w": u(ks[0], (20, 1, 5, 5), 25),
        "conv1_b": u(ks[1], (20,), 25),
        "conv2_w": u(ks[2], (50, 20, 5, 5), 500),
        "conv2_b": u(ks[3], (50,), 500),
        "fc1_w":  u(ks[4], (500, 800), 800),   # PyTorch (out, in); in-index = c*16 + h*4 + w
        "fc1_b":  u(ks[5], (500,), 800),
        "fc2_w":  u(ks[6], (10, 500), 500),
        "fc2_b":  u(ks[7], (10,), 500),
    }


def prepare_params(p):
    """One-time conversion of PyTorch-layout params into banded / padded kernel weights."""
    f32, bf16 = jnp.float32, jnp.bfloat16

    # conv1 -> banded weight: W1b[ki, p, 20*j + co] = conv1_w[co, 0, ki, p - j] inside the band.
    wt1 = jnp.transpose(p["conv1_w"][:, 0, :, :], (1, 2, 0))                     # (ki, kj, co)
    mask1 = (jnp.arange(28)[:, None, None]
             == jnp.arange(24)[None, :, None] + jnp.arange(5)[None, None, :]).astype(f32)
    w1b = jnp.einsum("pjq,kqc->kpjc", mask1, wt1).reshape(5, 28, 480)
    b1 = jnp.tile(p["conv1_b"], 24).reshape(1, 480)

    # conv2 -> banded weight on the sparse pooled layout (valid lanes 40*p + c, c < 20).
    wt2 = jnp.transpose(p["conv2_w"], (2, 3, 1, 0))                              # (ki, kj, c, co)
    mask2 = (jnp.arange(12)[:, None, None]
             == jnp.arange(8)[None, :, None] + jnp.arange(5)[None, None, :]).astype(f32)
    w2core = jnp.einsum("pjq,kqcd->kpcjd", mask2, wt2)                           # (5,12,20,8,50)
    w2full = jnp.zeros((5, 12, 40, 8, 50), f32).at[:, :, :20, :, :].set(w2core)
    w2b = w2full.reshape(5, 480, 400)[:, :460, :]
    b2 = jnp.tile(p["conv2_b"], 8).reshape(1, 400)

    # fc1 -> 4 per-pooled-row weights on the sparse conv2 layout (valid lanes 100*v + co, co < 50);
    # PyTorch's NCHW flatten order (c*16 + h*4 + w) is folded into the weight here.
    f1 = jnp.transpose(p["fc1_w"].reshape(500, 50, 4, 4), (2, 3, 1, 0))          # (h, w, c, out)
    f1 = jnp.pad(f1, ((0, 0), (0, 0), (0, 50), (0, 12)))                         # (4, 4, 100, 512)
    wf1 = f1.reshape(4, 400, 512)[:, :350, :]
    fb1 = jnp.pad(p["fc1_b"], (0, 12)).reshape(1, 512)

    # fc2 -> (512, 128); padded logit columns get a -1e30 bias so log_softmax ignores them.
    wf2 = jnp.pad(p["fc2_w"].T, ((0, 12), (0, 118)))
    fb2 = jnp.full((128,), -1e30, f32).at[:10].set(p["fc2_b"]).reshape(1, 128)

    return {"w1b": w1b.astype(bf16), "b1": b1.astype(f32),
            "w2b": w2b.astype(bf16), "b2": b2.astype(f32),
            "wf1": wf1.astype(bf16), "fb1": fb1.astype(f32),
            "wf2": wf2.astype(bf16), "fb2": fb2.astype(f32)}


# ------------------------------ pure-JAX reference ------------------------------ #

def net_reference(p, x):
    dn = ("NCHW", "OIHW", "NCHW")
    y = jax.lax.conv_general_dilated(x, p["conv1_w"], (1, 1), "VALID", dimension_numbers=dn)
    y = jax.nn.relu(y + p["conv1_b"][None, :, None, None])
    y = jax.lax.reduce_window(y, -jnp.inf, jax.lax.max, (1, 1, 2, 2), (1, 1, 2, 2), "VALID")
    y = jax.lax.conv_general_dilated(y, p["conv2_w"], (1, 1), "VALID", dimension_numbers=dn)
    y = jax.nn.relu(y + p["conv2_b"][None, :, None, None])
    y = jax.lax.reduce_window(y, -jnp.inf, jax.lax.max, (1, 1, 2, 2), (1, 1, 2, 2), "VALID")
    f = y.reshape(y.shape[0], -1)                       # NCHW flatten, like PyTorch .view
    h = jax.nn.relu(f @ p["fc1_w"].T + p["fc1_b"])
    z = h @ p["fc2_w"].T + p["fc2_b"]
    return jax.nn.log_softmax(z, axis=-1)


if __name__ == "__main__":
    key = jax.random.PRNGKey(0)
    pkey, xkey = jax.random.split(key)
    params = init_params(pkey)
    dparams = prepare_params(params)

    # Spatial size must be 28 so the flatten yields 4*4*50 = 800 features (MNIST-like).
    x = jax.random.normal(xkey, (2, 1, 28, 28), jnp.float32)

    out = jax.block_until_ready(net_forward(dparams, x))
    assert out.shape == (2, 10)
    # log_softmax rows should exp-sum to ~1
    assert jnp.allclose(jnp.sum(jnp.exp(out), axis=1), 1.0, atol=1e-3)
    # compare against the f32 XLA reference (bf16 matmuls -> loose tolerance)
    ref = jax.block_until_ready(net_reference(params, x))
    err = float(jnp.max(jnp.abs(out - ref)))
    assert err < 0.1, f"max |pallas - reference| = {err}"
    print("KERNEL_OK")
</pallas_src>

<mosaic_0001>
module attributes {stable_mosaic.version = 11 : i64} {
  func.func @_fused_net_kernel(%arg0: i32, %arg1: memref<1x36x28xf32, #tpu.memory_space<vmem>>, %arg2: memref<5x28x480xbf16, #tpu.memory_space<vmem>>, %arg3: memref<1x480xf32, #tpu.memory_space<vmem>>, %arg4: memref<5x460x400xbf16, #tpu.memory_space<vmem>>, %arg5: memref<1x400xf32, #tpu.memory_space<vmem>>, %arg6: memref<4x350x512xbf16, #tpu.memory_space<vmem>>, %arg7: memref<1x512xf32, #tpu.memory_space<vmem>>, %arg8: memref<512x128xbf16, #tpu.memory_space<vmem>>, %arg9: memref<1x128xf32, #tpu.memory_space<vmem>>, %arg10: memref<1x1x128xf32, #tpu.memory_space<vmem>>) attributes {dimension_semantics = [#tpu.dimension_semantics<parallel>], iteration_bounds = array<i64: 2>, scalar_prefetch = 0 : i64, scratch_operands = 0 : i64, tpu.core_type = #tpu.core_type<tc>, window_params = [{transform_indices = @transform_0, window_bounds = array<i64: 1, 36, 28>}, {pipeline_mode = #tpu.pipeline_mode<synchronous>, transform_indices = @transform_1, window_bounds = array<i64: 5, 28, 480>}, {pipeline_mode = #tpu.pipeline_mode<synchronous>, transform_indices = @transform_2, window_bounds = array<i64: 1, 480>}, {pipeline_mode = #tpu.pipeline_mode<synchronous>, transform_indices = @transform_3, window_bounds = array<i64: 5, 460, 400>}, {pipeline_mode = #tpu.pipeline_mode<synchronous>, transform_indices = @transform_4, window_bounds = array<i64: 1, 400>}, {pipeline_mode = #tpu.pipeline_mode<synchronous>, transform_indices = @transform_5, window_bounds = array<i64: 4, 350, 512>}, {pipeline_mode = #tpu.pipeline_mode<synchronous>, transform_indices = @transform_6, window_bounds = array<i64: 1, 512>}, {pipeline_mode = #tpu.pipeline_mode<synchronous>, transform_indices = @transform_7, window_bounds = array<i64: 512, 128>}, {pipeline_mode = #tpu.pipeline_mode<synchronous>, transform_indices = @transform_8, window_bounds = array<i64: 1, 128>}, {transform_indices = @transform_9, window_bounds = array<i64: 1, 1, 128>}]} {
    %c0 = arith.constant 0 : index
    %c0_0 = arith.constant 0 : index
    %c0_1 = arith.constant 0 : index
    %0 = vector.load %arg1[%c0, %c0_0, %c0_1] : memref<1x36x28xf32, #tpu.memory_space<vmem>>, vector<1x36x28xf32>
    %1 = vector.extract_strided_slice %0 {offsets = [0, 0, 0], sizes = [1, 32, 28], strides = [1, 1, 1]} : vector<1x36x28xf32> to vector<1x32x28xf32>
    %2 = vector.shape_cast %1 : vector<1x32x28xf32> to vector<32x28xf32>
    %3 = arith.truncf %2 : vector<32x28xf32> to vector<32x28xbf16>
    %c0_2 = arith.constant 0 : index
    %c0_3 = arith.constant 0 : index
    %c0_4 = arith.constant 0 : index
    %4 = vector.load %arg2[%c0_2, %c0_3, %c0_4] : memref<5x28x480xbf16, #tpu.memory_space<vmem>>, vector<1x28x480xbf16>
    %5 = vector.shape_cast %4 : vector<1x28x480xbf16> to vector<28x480xbf16>
    %cst = arith.constant dense<0.000000e+00> : vector<32x480xf32>
    %6 = tpu.matmul %3, %5, %cst {dimension_numbers = #tpu.dot_dimension_numbers<[1], [0], [0], [1], [0, 0, 1, 1], [], []>} : vector<32x28xbf16>, vector<28x480xbf16>, vector<32x480xf32> -> vector<32x480xf32>
    %7 = vector.extract_strided_slice %0 {offsets = [0, 1, 0], sizes = [1, 32, 28], strides = [1, 1, 1]} : vector<1x36x28xf32> to vector<1x32x28xf32>
    %8 = vector.shape_cast %7 : vector<1x32x28xf32> to vector<32x28xf32>
    %9 = arith.truncf %8 : vector<32x28xf32> to vector<32x28xbf16>
    %c1 = arith.constant 1 : index
    %c0_5 = arith.constant 0 : index
    %c0_6 = arith.constant 0 : index
    %10 = vector.load %arg2[%c1, %c0_5, %c0_6] : memref<5x28x480xbf16, #tpu.memory_space<vmem>>, vector<1x28x480xbf16>
    %11 = vector.shape_cast %10 : vector<1x28x480xbf16> to vector<28x480xbf16>
    %cst_7 = arith.constant dense<0.000000e+00> : vector<32x480xf32>
    %12 = tpu.matmul %9, %11, %cst_7 {dimension_numbers = #tpu.dot_dimension_numbers<[1], [0], [0], [1], [0, 0, 1, 1], [], []>} : vector<32x28xbf16>, vector<28x480xbf16>, vector<32x480xf32> -> vector<32x480xf32>
    %13 = arith.addf %6, %12 : vector<32x480xf32>
    %14 = vector.extract_strided_slice %0 {offsets = [0, 2, 0], sizes = [1, 32, 28], strides = [1, 1, 1]} : vector<1x36x28xf32> to vector<1x32x28xf32>
    %15 = vector.shape_cast %14 : vector<1x32x28xf32> to vector<32x28xf32>
    %16 = arith.truncf %15 : vector<32x28xf32> to vector<32x28xbf16>
    %c2 = arith.constant 2 : index
    %c0_8 = arith.constant 0 : index
    %c0_9 = arith.constant 0 : index
    %17 = vector.load %arg2[%c2, %c0_8, %c0_9] : memref<5x28x480xbf16, #tpu.memory_space<vmem>>, vector<1x28x480xbf16>
    %18 = vector.shape_cast %17 : vector<1x28x480xbf16> to vector<28x480xbf16>
    %cst_10 = arith.constant dense<0.000000e+00> : vector<32x480xf32>
    %19 = tpu.matmul %16, %18, %cst_10 {dimension_numbers = #tpu.dot_dimension_numbers<[1], [0], [0], [1], [0, 0, 1, 1], [], []>} : vector<32x28xbf16>, vector<28x480xbf16>, vector<32x480xf32> -> vector<32x480xf32>
    %20 = arith.addf %13, %19 : vector<32x480xf32>
    %21 = vector.extract_strided_slice %0 {offsets = [0, 3, 0], sizes = [1, 32, 28], strides = [1, 1, 1]} : vector<1x36x28xf32> to vector<1x32x28xf32>
    %22 = vector.shape_cast %21 : vector<1x32x28xf32> to vector<32x28xf32>
    %23 = arith.truncf %22 : vector<32x28xf32> to vector<32x28xbf16>
    %c3 = arith.constant 3 : index
    %c0_11 = arith.constant 0 : index
    %c0_12 = arith.constant 0 : index
    %24 = vector.load %arg2[%c3, %c0_11, %c0_12] : memref<5x28x480xbf16, #tpu.memory_space<vmem>>, vector<1x28x480xbf16>
    %25 = vector.shape_cast %24 : vector<1x28x480xbf16> to vector<28x480xbf16>
    %cst_13 = arith.constant dense<0.000000e+00> : vector<32x480xf32>
    %26 = tpu.matmul %23, %25, %cst_13 {dimension_numbers = #tpu.dot_dimension_numbers<[1], [0], [0], [1], [0, 0, 1, 1], [], []>} : vector<32x28xbf16>, vector<28x480xbf16>, vector<32x480xf32> -> vector<32x480xf32>
    %27 = arith.addf %20, %26 : vector<32x480xf32>
    %28 = vector.extract_strided_slice %0 {offsets = [0, 4, 0], sizes = [1, 32, 28], strides = [1, 1, 1]} : vector<1x36x28xf32> to vector<1x32x28xf32>
    %29 = vector.shape_cast %28 : vector<1x32x28xf32> to vector<32x28xf32>
    %30 = arith.truncf %29 : vector<32x28xf32> to vector<32x28xbf16>
    %c4 = arith.constant 4 : index
    %c0_14 = arith.constant 0 : index
    %c0_15 = arith.constant 0 : index
    %31 = vector.load %arg2[%c4, %c0_14, %c0_15] : memref<5x28x480xbf16, #tpu.memory_space<vmem>>, vector<1x28x480xbf16>
    %32 = vector.shape_cast %31 : vector<1x28x480xbf16> to vector<28x480xbf16>
    %cst_16 = arith.constant dense<0.000000e+00> : vector<32x480xf32>
    %33 = tpu.matmul %30, %32, %cst_16 {dimension_numbers = #tpu.dot_dimension_numbers<[1], [0], [0], [1], [0, 0, 1, 1], [], []>} : vector<32x28xbf16>, vector<28x480xbf16>, vector<32x480xf32> -> vector<32x480xf32>
    %34 = arith.addf %27, %33 : vector<32x480xf32>
    %c0_17 = arith.constant 0 : index
    %c0_18 = arith.constant 0 : index
    %35 = vector.load %arg3[%c0_17, %c0_18] : memref<1x480xf32, #tpu.memory_space<vmem>>, vector<1x480xf32>
    %36 = vector.broadcast %35 : vector<1x480xf32> to vector<32x480xf32>
    %37 = arith.addf %34, %36 : vector<32x480xf32>
    %cst_19 = arith.constant 0.000000e+00 : f32
    %38 = vector.broadcast %cst_19 : f32 to vector<32x480xf32>
    %39 = arith.maximumf %37, %38 : vector<32x480xf32>
    %40 = vector.extract_strided_slice %39 {offsets = [0, 0], sizes = [32, 460], strides = [1, 1]} : vector<32x480xf32> to vector<32x460xf32>
    %41 = vector.extract_strided_slice %39 {offsets = [0, 20], sizes = [32, 460], strides = [1, 1]} : vector<32x480xf32> to vector<32x460xf32>
    %42 = arith.maximumf %40, %41 : vector<32x460xf32>
    %43 = vector.shape_cast %42 : vector<32x460xf32> to vector<1x32x460xf32>
    %44 = vector.extract_strided_slice %43 {offsets = [0, 0, 0], sizes = [1, 24, 460], strides = [1, 1, 1]} : vector<1x32x460xf32> to vector<1x24x460xf32>
    %45 = vector.extract_strided_slice %43 {offsets = [0, 1, 0], sizes = [1, 24, 460], strides = [1, 1, 1]} : vector<1x32x460xf32> to vector<1x24x460xf32>
    %46 = arith.maximumf %44, %45 : vector<1x24x460xf32>
    %47 = vector.extract_strided_slice %46 {offsets = [0, 0, 0], sizes = [1, 16, 460], strides = [1, 1, 1]} : vector<1x24x460xf32> to vector<1x16x460xf32>
    %48 = vector.shape_cast %47 : vector<1x16x460xf32> to vector<16x460xf32>
    %49 = arith.truncf %48 : vector<16x460xf32> to vector<16x460xbf16>
    %c0_20 = arith.constant 0 : index
    %c0_21 = arith.constant 0 : index
    %c0_22 = arith.constant 0 : index
    %50 = vector.load %arg4[%c0_20, %c0_21, %c0_22] : memref<5x460x400xbf16, #tpu.memory_space<vmem>>, vector<1x460x400xbf16>
    %51 = vector.shape_cast %50 : vector<1x460x400xbf16> to vector<460x400xbf16>
    %cst_23 = arith.constant dense<0.000000e+00> : vector<16x400xf32>
    %52 = tpu.matmul %49, %51, %cst_23 {dimension_numbers = #tpu.dot_dimension_numbers<[1], [0], [0], [1], [0, 0, 1, 1], [], []>} : vector<16x460xbf16>, vector<460x400xbf16>, vector<16x400xf32> -> vector<16x400xf32>
    %53 = vector.extract_strided_slice %46 {offsets = [0, 2, 0], sizes = [1, 16, 460], strides = [1, 1, 1]} : vector<1x24x460xf32> to vector<1x16x460xf32>
    %54 = vector.shape_cast %53 : vector<1x16x460xf32> to vector<16x460xf32>
    %55 = arith.truncf %54 : vector<16x460xf32> to vector<16x460xbf16>
    %c1_24 = arith.constant 1 : index
    %c0_25 = arith.constant 0 : index
    %c0_26 = arith.constant 0 : index
    %56 = vector.load %arg4[%c1_24, %c0_25, %c0_26] : memref<5x460x400xbf16, #tpu.memory_space<vmem>>, vector<1x460x400xbf16>
    %57 = vector.shape_cast %56 : vector<1x460x400xbf16> to vector<460x400xbf16>
    %cst_27 = arith.constant dense<0.000000e+00> : vector<16x400xf32>
    %58 = tpu.matmul %55, %57, %cst_27 {dimension_numbers = #tpu.dot_dimension_numbers<[1], [0], [0], [1], [0, 0, 1, 1], [], []>} : vector<16x460xbf16>, vector<460x400xbf16>, vector<16x400xf32> -> vector<16x400xf32>
    %59 = arith.addf %52, %58 : vector<16x400xf32>
    %60 = vector.extract_strided_slice %46 {offsets = [0, 4, 0], sizes = [1, 16, 460], strides = [1, 1, 1]} : vector<1x24x460xf32> to vector<1x16x460xf32>
    %61 = vector.shape_cast %60 : vector<1x16x460xf32> to vector<16x460xf32>
    %62 = arith.truncf %61 : vector<16x460xf32> to vector<16x460xbf16>
    %c2_28 = arith.constant 2 : index
    %c0_29 = arith.constant 0 : index
    %c0_30 = arith.constant 0 : index
    %63 = vector.load %arg4[%c2_28, %c0_29, %c0_30] : memref<5x460x400xbf16, #tpu.memory_space<vmem>>, vector<1x460x400xbf16>
    %64 = vector.shape_cast %63 : vector<1x460x400xbf16> to vector<460x400xbf16>
    %cst_31 = arith.constant dense<0.000000e+00> : vector<16x400xf32>
    %65 = tpu.matmul %62, %64, %cst_31 {dimension_numbers = #tpu.dot_dimension_numbers<[1], [0], [0], [1], [0, 0, 1, 1], [], []>} : vector<16x460xbf16>, vector<460x400xbf16>, vector<16x400xf32> -> vector<16x400xf32>
    %66 = arith.addf %59, %65 : vector<16x400xf32>
    %67 = vector.extract_strided_slice %46 {offsets = [0, 6, 0], sizes = [1, 16, 460], strides = [1, 1, 1]} : vector<1x24x460xf32> to vector<1x16x460xf32>
    %68 = vector.shape_cast %67 : vector<1x16x460xf32> to vector<16x460xf32>
    %69 = arith.truncf %68 : vector<16x460xf32> to vector<16x460xbf16>
    %c3_32 = arith.constant 3 : index
    %c0_33 = arith.constant 0 : index
    %c0_34 = arith.constant 0 : index
    %70 = vector.load %arg4[%c3_32, %c0_33, %c0_34] : memref<5x460x400xbf16, #tpu.memory_space<vmem>>, vector<1x460x400xbf16>
    %71 = vector.shape_cast %70 : vector<1x460x400xbf16> to vector<460x400xbf16>
    %cst_35 = arith.constant dense<0.000000e+00> : vector<16x400xf32>
    %72 = tpu.matmul %69, %71, %cst_35 {dimension_numbers = #tpu.dot_dimension_numbers<[1], [0], [0], [1], [0, 0, 1, 1], [], []>} : vector<16x460xbf16>, vector<460x400xbf16>, vector<16x400xf32> -> vector<16x400xf32>
    %73 = arith.addf %66, %72 : vector<16x400xf32>
    %74 = vector.extract_strided_slice %46 {offsets = [0, 8, 0], sizes = [1, 16, 460], strides = [1, 1, 1]} : vector<1x24x460xf32> to vector<1x16x460xf32>
    %75 = vector.shape_cast %74 : vector<1x16x460xf32> to vector<16x460xf32>
    %76 = arith.truncf %75 : vector<16x460xf32> to vector<16x460xbf16>
    %c4_36 = arith.constant 4 : index
    %c0_37 = arith.constant 0 : index
    %c0_38 = arith.constant 0 : index
    %77 = vector.load %arg4[%c4_36, %c0_37, %c0_38] : memref<5x460x400xbf16, #tpu.memory_space<vmem>>, vector<1x460x400xbf16>
    %78 = vector.shape_cast %77 : vector<1x460x400xbf16> to vector<460x400xbf16>
    %cst_39 = arith.constant dense<0.000000e+00> : vector<16x400xf32>
    %79 = tpu.matmul %76, %78, %cst_39 {dimension_numbers = #tpu.dot_dimension_numbers<[1], [0], [0], [1], [0, 0, 1, 1], [], []>} : vector<16x460xbf16>, vector<460x400xbf16>, vector<16x400xf32> -> vector<16x400xf32>
    %80 = arith.addf %73, %79 : vector<16x400xf32>
    %c0_40 = arith.constant 0 : index
    %c0_41 = arith.constant 0 : index
    %81 = vector.load %arg5[%c0_40, %c0_41] : memref<1x400xf32, #tpu.memory_space<vmem>>, vector<1x400xf32>
    %82 = vector.broadcast %81 : vector<1x400xf32> to vector<16x400xf32>
    %83 = arith.addf %80, %82 : vector<16x400xf32>
    %cst_42 = arith.constant 0.000000e+00 : f32
    %84 = vector.broadcast %cst_42 : f32 to vector<16x400xf32>
    %85 = arith.maximumf %83, %84 : vector<16x400xf32>
    %86 = vector.extract_strided_slice %85 {offsets = [0, 0], sizes = [16, 350], strides = [1, 1]} : vector<16x400xf32> to vector<16x350xf32>
    %87 = vector.extract_strided_slice %85 {offsets = [0, 50], sizes = [16, 350], strides = [1, 1]} : vector<16x400xf32> to vector<16x350xf32>
    %88 = arith.maximumf %86, %87 : vector<16x350xf32>
    %89 = vector.shape_cast %88 : vector<16x350xf32> to vector<1x16x350xf32>
    %90 = vector.extract_strided_slice %89 {offsets = [0, 0, 0], sizes = [1, 13, 350], strides = [1, 1, 1]} : vector<1x16x350xf32> to vector<1x13x350xf32>
    %91 = vector.extract_strided_slice %89 {offsets = [0, 2, 0], sizes = [1, 13, 350], strides = [1, 1, 1]} : vector<1x16x350xf32> to vector<1x13x350xf32>
    %92 = arith.maximumf %90, %91 : vector<1x13x350xf32>
    %93 = vector.extract_strided_slice %92 {offsets = [0, 0, 0], sizes = [1, 1, 350], strides = [1, 1, 1]} : vector<1x13x350xf32> to vector<1x1x350xf32>
    %94 = vector.shape_cast %93 : vector<1x1x350xf32> to vector<1x350xf32>
    %95 = arith.truncf %94 : vector<1x350xf32> to vector<1x350xbf16>
    %c0_43 = arith.constant 0 : index
    %c0_44 = arith.constant 0 : index
    %c0_45 = arith.constant 0 : index
    %96 = vector.load %arg6[%c0_43, %c0_44, %c0_45] : memref<4x350x512xbf16, #tpu.memory_space<vmem>>, vector<1x350x512xbf16>
    %97 = vector.shape_cast %96 : vector<1x350x512xbf16> to vector<350x512xbf16>
    %cst_46 = arith.constant dense<0.000000e+00> : vector<1x512xf32>
    %98 = tpu.matmul %95, %97, %cst_46 {dimension_numbers = #tpu.dot_dimension_numbers<[1], [0], [0], [1], [0, 0, 1, 1], [], []>} : vector<1x350xbf16>, vector<350x512xbf16>, vector<1x512xf32> -> vector<1x512xf32>
    %99 = vector.extract_strided_slice %92 {offsets = [0, 4, 0], sizes = [1, 1, 350], strides = [1, 1, 1]} : vector<1x13x350xf32> to vector<1x1x350xf32>
    %100 = vector.shape_cast %99 : vector<1x1x350xf32> to vector<1x350xf32>
    %101 = arith.truncf %100 : vector<1x350xf32> to vector<1x350xbf16>
    %c1_47 = arith.constant 1 : index
    %c0_48 = arith.constant 0 : index
    %c0_49 = arith.constant 0 : index
    %102 = vector.load %arg6[%c1_47, %c0_48, %c0_49] : memref<4x350x512xbf16, #tpu.memory_space<vmem>>, vector<1x350x512xbf16>
    %103 = vector.shape_cast %102 : vector<1x350x512xbf16> to vector<350x512xbf16>
    %cst_50 = arith.constant dense<0.000000e+00> : vector<1x512xf32>
    %104 = tpu.matmul %101, %103, %cst_50 {dimension_numbers = #tpu.dot_dimension_numbers<[1], [0], [0], [1], [0, 0, 1, 1], [], []>} : vector<1x350xbf16>, vector<350x512xbf16>, vector<1x512xf32> -> vector<1x512xf32>
    %105 = arith.addf %98, %104 : vector<1x512xf32>
    %106 = vector.extract_strided_slice %92 {offsets = [0, 8, 0], sizes = [1, 1, 350], strides = [1, 1, 1]} : vector<1x13x350xf32> to vector<1x1x350xf32>
    %107 = vector.shape_cast %106 : vector<1x1x350xf32> to vector<1x350xf32>
    %108 = arith.truncf %107 : vector<1x350xf32> to vector<1x350xbf16>
    %c2_51 = arith.constant 2 : index
    %c0_52 = arith.constant 0 : index
    %c0_53 = arith.constant 0 : index
    %109 = vector.load %arg6[%c2_51, %c0_52, %c0_53] : memref<4x350x512xbf16, #tpu.memory_space<vmem>>, vector<1x350x512xbf16>
    %110 = vector.shape_cast %109 : vector<1x350x512xbf16> to vector<350x512xbf16>
    %cst_54 = arith.constant dense<0.000000e+00> : vector<1x512xf32>
    %111 = tpu.matmul %108, %110, %cst_54 {dimension_numbers = #tpu.dot_dimension_numbers<[1], [0], [0], [1], [0, 0, 1, 1], [], []>} : vector<1x350xbf16>, vector<350x512xbf16>, vector<1x512xf32> -> vector<1x512xf32>
    %112 = arith.addf %105, %111 : vector<1x512xf32>
    %113 = vector.extract_strided_slice %92 {offsets = [0, 12, 0], sizes = [1, 1, 350], strides = [1, 1, 1]} : vector<1x13x350xf32> to vector<1x1x350xf32>
    %114 = vector.shape_cast %113 : vector<1x1x350xf32> to vector<1x350xf32>
    %115 = arith.truncf %114 : vector<1x350xf32> to vector<1x350xbf16>
    %c3_55 = arith.constant 3 : index
    %c0_56 = arith.constant 0 : index
    %c0_57 = arith.constant 0 : index
    %116 = vector.load %arg6[%c3_55, %c0_56, %c0_57] : memref<4x350x512xbf16, #tpu.memory_space<vmem>>, vector<1x350x512xbf16>
    %117 = vector.shape_cast %116 : vector<1x350x512xbf16> to vector<350x512xbf16>
    %cst_58 = arith.constant dense<0.000000e+00> : vector<1x512xf32>
    %118 = tpu.matmul %115, %117, %cst_58 {dimension_numbers = #tpu.dot_dimension_numbers<[1], [0], [0], [1], [0, 0, 1, 1], [], []>} : vector<1x350xbf16>, vector<350x512xbf16>, vector<1x512xf32> -> vector<1x512xf32>
    %119 = arith.addf %112, %118 : vector<1x512xf32>
    %c0_59 = arith.constant 0 : index
    %c0_60 = arith.constant 0 : index
    %120 = vector.load %arg7[%c0_59, %c0_60] : memref<1x512xf32, #tpu.memory_space<vmem>>, vector<1x512xf32>
    %121 = arith.addf %119, %120 : vector<1x512xf32>
    %cst_61 = arith.constant 0.000000e+00 : f32
    %122 = vector.broadcast %cst_61 : f32 to vector<1x512xf32>
    %123 = arith.maximumf %121, %122 : vector<1x512xf32>
    %124 = arith.truncf %123 : vector<1x512xf32> to vector<1x512xbf16>
    %c0_62 = arith.constant 0 : index
    %c0_63 = arith.constant 0 : index
    %125 = vector.load %arg8[%c0_62, %c0_63] : memref<512x128xbf16, #tpu.memory_space<vmem>>, vector<512x128xbf16>
    %cst_64 = arith.constant dense<0.000000e+00> : vector<1x128xf32>
    %126 = tpu.matmul %124, %125, %cst_64 {dimension_numbers = #tpu.dot_dimension_numbers<[1], [0], [0], [1], [0, 0, 1, 1], [], []>} : vector<1x512xbf16>, vector<512x128xbf16>, vector<1x128xf32> -> vector<1x128xf32>
    %c0_65 = arith.constant 0 : index
    %c0_66 = arith.constant 0 : index
    %127 = vector.load %arg9[%c0_65, %c0_66] : memref<1x128xf32, #tpu.memory_space<vmem>>, vector<1x128xf32>
    %128 = arith.addf %126, %127 : vector<1x128xf32>
    %cst_67 = arith.constant dense<0xFF800000> : vector<1xf32>
    %129 = vector.multi_reduction <maximumf>, %128, %cst_67 [1] : vector<1x128xf32> to vector<1xf32>
    %130 = vector.shape_cast %129 : vector<1xf32> to vector<1x1xf32>
    %131 = vector.broadcast %130 : vector<1x1xf32> to vector<1x128xf32>
    %132 = arith.subf %128, %131 : vector<1x128xf32>
    %133 = math.exp %132 : vector<1x128xf32>
    %cst_68 = arith.constant dense<0.000000e+00> : vector<1xf32>
    %134 = vector.multi_reduction <add>, %133, %cst_68 [1] : vector<1x128xf32> to vector<1xf32>
    %135 = vector.shape_cast %134 : vector<1xf32> to vector<1x1xf32>
    %136 = math.log %135 : vector<1x1xf32>
    %137 = vector.broadcast %136 : vector<1x1xf32> to vector<1x128xf32>
    %138 = arith.subf %132, %137 : vector<1x128xf32>
    %c0_69 = arith.constant 0 : index
    %c0_70 = arith.constant 0 : index
    %c0_71 = arith.constant 0 : index
    %139 = vector.load %arg10[%c0_69, %c0_70, %c0_71] : memref<1x1x128xf32, #tpu.memory_space<vmem>>, vector<1x1x128xf32>
    %140 = vector.shape_cast %139 : vector<1x1x128xf32> to vector<1x128xf32>
    %141 = vector.shape_cast %138 : vector<1x128xf32> to vector<1x1x128xf32>
    tpu.vector_store %arg10[%c0_69, %c0_70, %c0_71], %141 {strides = array<i32>} : memref<1x1x128xf32, #tpu.memory_space<vmem>>, vector<1x1x128xf32>,
    return
  }
  func.func @transform_0(%arg0: i32) -> (i32, i32, i32) {
    %c0_i32 = arith.constant 0 : i32
    %c0_i32_0 = arith.constant 0 : i32
    %c0_i32_1 = arith.constant 0 : i32
    return %arg0, %c0_i32, %c0_i32_0 : i32, i32, i32
  }
  func.func @transform_1(%arg0: i32) -> (i32, i32, i32) {
    %c0_i32 = arith.constant 0 : i32
    %c0_i32_0 = arith.constant 0 : i32
    %c0_i32_1 = arith.constant 0 : i32
    %c0_i32_2 = arith.constant 0 : i32
    return %c0_i32, %c0_i32_0, %c0_i32_1 : i32, i32, i32
  }
  func.func @transform_2(%arg0: i32) -> (i32, i32) {
    %c0_i32 = arith.constant 0 : i32
    %c0_i32_0 = arith.constant 0 : i32
    %c0_i32_1 = arith.constant 0 : i32
    return %c0_i32, %c0_i32_0 : i32, i32
  }
  func.func @transform_3(%arg0: i32) -> (i32, i32, i32) {
    %c0_i32 = arith.constant 0 : i32
    %c0_i32_0 = arith.constant 0 : i32
    %c0_i32_1 = arith.constant 0 : i32
    %c0_i32_2 = arith.constant 0 : i32
    return %c0_i32, %c0_i32_0, %c0_i32_1 : i32, i32, i32
  }
  func.func @transform_4(%arg0: i32) -> (i32, i32) {
    %c0_i32 = arith.constant 0 : i32
    %c0_i32_0 = arith.constant 0 : i32
    %c0_i32_1 = arith.constant 0 : i32
    return %c0_i32, %c0_i32_0 : i32, i32
  }
  func.func @transform_5(%arg0: i32) -> (i32, i32, i32) {
    %c0_i32 = arith.constant 0 : i32
    %c0_i32_0 = arith.constant 0 : i32
    %c0_i32_1 = arith.constant 0 : i32
    %c0_i32_2 = arith.constant 0 : i32
    return %c0_i32, %c0_i32_0, %c0_i32_1 : i32, i32, i32
  }
  func.func @transform_6(%arg0: i32) -> (i32, i32) {
    %c0_i32 = arith.constant 0 : i32
    %c0_i32_0 = arith.constant 0 : i32
    %c0_i32_1 = arith.constant 0 : i32
    return %c0_i32, %c0_i32_0 : i32, i32
  }
  func.func @transform_7(%arg0: i32) -> (i32, i32) {
    %c0_i32 = arith.constant 0 : i32
    %c0_i32_0 = arith.constant 0 : i32
    %c0_i32_1 = arith.constant 0 : i32
    return %c0_i32, %c0_i32_0 : i32, i32
  }
  func.func @transform_8(%arg0: i32) -> (i32, i32) {
    %c0_i32 = arith.constant 0 : i32
    %c0_i32_0 = arith.constant 0 : i32
    %c0_i32_1 = arith.constant 0 : i32
    return %c0_i32, %c0_i32_0 : i32, i32
  }
  func.func @transform_9(%arg0: i32) -> (i32, i32, i32) {
    %c0_i32 = arith.constant 0 : i32
    %c0_i32_0 = arith.constant 0 : i32
    %c0_i32_1 = arith.constant 0 : i32
    return %arg0, %c0_i32, %c0_i32_0 : i32, i32, i32
  }
}

</mosaic_0001>

<bundles_post_ra>
// kernel: net_forward_pallas.1
= control target key start
LH: loop header
LB: loop body
LE: loop exit
PB: predicated region body
PF: predicated region fallthrough
CT: control target
= control target key end

     0   :  { %14 = vsyncpa [#allocation3], 0  ;;  %s16972_s0 = inlined_call_operand.vmem [shape: f32[2,36,28], index: 0, kind: input, shape index: {}]   ;;  %s16973_s1 = inlined_call_operand.vmem [shape: bf16[5,28,480], index: 1, kind: input, shape index: {}]   ;;  %s16974_s2 = inlined_call_operand.vmem [shape: f32[1,480], index: 2, kind: input, shape index: {}]   ;;  %s16975_s3 = inlined_call_operand.vmem [shape: bf16[5,460,400], index: 3, kind: input, shape index: {}]   ;;  %s16976_s4 = inlined_call_operand.vmem [shape: f32[1,400], index: 4, kind: input, shape index: {}]   ;;  %s16977_s5 = inlined_call_operand.vmem [shape: bf16[4,350,512], index: 5, kind: input, shape index: {}]   ;;  %s16978_s6 = inlined_call_operand.vmem [shape: f32[1,512], index: 6, kind: input, shape index: {}]   ;;  %s16979_s7 = inlined_call_operand.vmem [shape: bf16[512,128], index: 7, kind: input, shape index: {}]   ;;  %s16980_s8 = inlined_call_operand.vmem [shape: f32[1,128], index: 8, kind: input, shape index: {}]   ;;  %s16981_s9 = inlined_call_operand.hbm [shape: f32[2,1,128], index: 9, kind: output, shape index: {}]  }
   0x1   :  { %16 = vsyncpa [#allocation3 + $0x1], 0  ;;  %s12989_s30 = smov 0   ;;  %s12991_s10 = smov 0  }
   0x2   :  { %s12993_s11 = smov 0   ;;  %s12995_s12 = smov 0  }
   0x3 LB: > { %s13010_s13 = sadd.s32 4294967295, %s12933_s12   ;;  %s9394_s14 = sadd.s32 4294967294, %s12933_s12   ;;  %s12933_s12 = sphi %s12995_s12, %s17046_s12   ;;  %s12929_s11 = sphi %s12993_s11, %s17045_s11   ;;  %s12925_s10 = sphi %s12991_s10, %s17044_s10   ;;  %s12921_s30 = sphi %s12989_s30, %s17043_s30  }
   0x4   : > { %s13014_s15 = sadd.s32 1, %s12933_s12   ;;  %s223_s16 = sadd.s32 1, %s12929_s11 }
   0x5   : > { %s220_s17 = ssub.s32 %s12933_s12, %s13014_s15  ;;  %p233_p0 = scmp.ne.s32.totalorder %s12929_s11, %s12925_s10 }
   0x6   : > { %p221_p1 = scmp.eq.s32.totalorder %s220_s17, 0  ;;  %p234_p2 = scmp.eq.s32.totalorder %s13010_s13, 1 }
   0x7   : > { %p239_p3 = scmp.ne.s32.totalorder %s12925_s10, %s12921_s30  ;;  %p240_p4 = scmp.eq.s32.totalorder %s9394_s14, 1 }
   0x8   : > { %s13025_s18 = scalar_select %p221_p1, %s12929_s11, %s223_s16  }
   0x9   : > { %p13027_p5 = por %p234_p2, %p233_p0  ;;  %p13031_p6 = por %p240_p4, %p239_p3 }
   0xa   : > { %p9397_p7 = scmp.ge.s32.totalorder %s12933_s12, 1  ;;  %p290_p8 = scmp.lt.s32.totalorder %s12933_s12, 3 }
   0xc   : > { %p291_p9 = pnand %p9397_p7, %p290_p8 }
   0xe   : > { %294 = sbr.rel (%p291_p9) target bundleno = 2377 (0x949), region = 56 }
  0x13   : > { %v11379_v0 = vld [vmem:[%s16973_s1 + $0x6c] ss:$16 sps:$4 sm:$0x3f]   ;;  %vm420_vm0 = vcmask 1045504   ;;  %v16982_v3 = vmov 0   ;;  %p325_p10 = scmp.lt.s32.totalorder %s13010_s13, 1 }
  0x14   : > { %9418 = vmatprep.subr.msk.bf16.mxu1 %vm420_vm0, %v11379_v0  ;;  %v11381_v1 = vld [vmem:[%s16973_s1 + $0x64] ss:$16 sps:$4 sm:$0x3f]   ;;  %v11383_v2 = vld [vmem:[%s16973_s1 + $0x68] ss:$16 sps:$4 sm:$0x3f]   ;;  %465 = vmatprep.mubr.bf16.mxu0 %v16982_v3 }
  0x15   : > { %v11384_v4 = vld [vmem:[%s16973_s1 + $0x60] ss:$16 sps:$4 sm:$0x3f]   ;;  %v11385_v5 = vld [vmem:[%s16973_s1 + $0x4c] ss:$16 sps:$4 sm:$0xff]   ;;  %518 = vmatprep.mubr.bf16.mxu1 %v16982_v3  ;;  %9415 = vmatprep.subr.msk.bf16.mxu0 %vm420_vm0, %v11381_v1  ;;  %v428_v6 = vsel %vm420_vm0, %v11383_v2, 0 }
  0x16   : > { %v11387_v7 = vld [vmem:[%s16973_s1 + $0x44] ss:$16 sps:$4 sm:$0xff]   ;;  %499 = vmatpush1.bf16.msra.mxu1 %v428_v6  ;;  %v422_v8 = vsel %vm420_vm0, %v11384_v4, 0  ;;  %v11389_v9 = vld [vmem:[%s16973_s1 + $0x48] ss:$16 sps:$4 sm:$0xff]   ;;  %s326_s27 = scalar_select %p325_p10, %s13010_s13, 1 }
  0x17   : > { %v11390_v10 = vld [vmem:[%s16973_s1 + $0x40] ss:$16 sps:$4 sm:$0xff]   ;;  %446 = vmatpush1.bf16.msra.mxu0 %v422_v8  ;;  %500 = vmatprep.subr.bf16.mxu1 %v11385_v5  ;;  %v11391_v11 = vld [vmem:[%s16973_s1 + $0x2c] ss:$16 sps:$4 sm:$0x3f]   ;;  %vm413_vm2 = vcmask 228352  }
  0x18   : > { %447 = vmatprep.subr.bf16.mxu0 %v11387_v7  ;;  %s11276_s28 = smul.u32 40, %s326_s27  ;;  %v11394_v12 = vld [vmem:[%s16973_s1 + $0x24] ss:$16 sps:$4 sm:$0x3f]   ;;  %vm356_vm1 = vsmask.f32 7424 }
  0x19   : > { %v11393_v24 = vld [vmem:[%s16973_s1 + $0x28] ss:$16 sps:$4 sm:$0x3f]   ;;  %v11399_v27 = vld [vmem:[%s16973_s1 + $0x20] ss:$16 sps:$4 sm:$0x3f]  }
  0x1a   : > { %501 = vmatpush1.bf16.msra.mxu1 %v11389_v9  ;;  %s329_s21 = scalar_lea.vmem %s16972_s0, %s11276_s28  ;;  %v586_v31 = vsel %vm420_vm0, %v11393_v24, 0  ;;  %v11398_v32 = vld [vmem:[%s16973_s1 + $0xc] ss:$16 sps:$4 sm:$0xff]   ;;  %v580_v34 = vsel %vm420_vm0, %v11399_v27, 0  ;;  %v11402_v35 = vld [vmem:[%s16973_s1 + $0x4] ss:$16 sps:$4 sm:$0xff]  }
  0x1b   : > { %448 = vmatpush1.bf16.msra.mxu0 %v11390_v10  ;;  %9432 = vmatprep.subr.msk.bf16.mxu1 %vm420_vm0, %v11391_v11  ;;  %v331_v13 = vld [vmem:[%s329_s21] sm:$0xff]  ;;  %v332_v14 = vld [vmem:[%s329_s21 + $0x8] sm:$0xff]  ;;  %v333_v15 = vld [vmem:[%s329_s21 + $0x10] sm:$0xff]  ;;  %vm709_vm3 = vcmask 1046528   ;;  %vm900_vm4 = vsmask.f32 6400 }
  0x1c   : > { %9429 = vmatprep.subr.msk.bf16.mxu0 %vm420_vm0, %v11394_v12  ;;  %v334_v16 = vld [vmem:[%s329_s21 + $0x18] sm:$0xff]  ;;  %v13080_v17 = vpack.c.bf16 %v332_v14, %v331_v13  ;;  %v335_v18 = vld [vmem:[%s329_s21 + $0x20] sm:$0xf]  ;;  %v11406_v42 = vld [vmem:[%s16973_s1 + $0xa4] ss:$16 sps:$4 sm:$0x3f]  }
  0x1d   : > { %v13082_v19 = vpack.c.bf16 %v334_v16, %v333_v15  ;;  %v13086_v22 = vpack.c.bf16 %v335_v18, %v335_v18  ;;  %v11396_v36 = vld [vmem:[%s16973_s1 + $0x8] ss:$16 sps:$4 sm:$0xff]   ;;  %v11403_v39 = vld [vmem:[%s16973_s1 + $0xac] ss:$16 sps:$4 sm:$0x3f]   ;;  %s12936_s24 = smov 108  }
  0x1e   : > { %v358_v20 = vshrl.u32 %v13080_v17, 16  ;;  %v360_v21 = vshll.u32 %v13080_v17, 16  ;;  %v11400_v40 = vld [vmem:[%s16973_s1] ss:$16 sps:$4 sm:$0xff]   ;;  %v1100_v45 = vrot.slane %v13080_v17, 2  ;;  %v710_v59 = vrot.slane %v13080_v17, 1 }
  0x1f   : > { %v365_v23 = vshll.u32 %v13082_v19, 16  ;;  %v369_v29 = vshrl.u32 %v13082_v19, 16  ;;  %v373_v30 = vshll.u32 %v13086_v22, 16  ;;  %v11405_v43 = vld [vmem:[%s16973_s1 + $0xa8] ss:$16 sps:$4 sm:$0x3f]  }
  0x20   : > { %v362_v25 = vrot.slane %v360_v21, 1  ;;  %v11411_v44 = vld [vmem:[%s16973_s1 + $0xa0] ss:$16 sps:$4 sm:$0x3f]   ;;  %v11410_v46 = vld [vmem:[%s16973_s1 + $0x8c] ss:$16 sps:$4 sm:$0xff]  }
  0x21   : > { %v367_v26 = vrot.slane %v365_v23, 1  ;;  %v375_v38 = vrot.slane %v373_v30, 1  ;;  %v1101_v47 = vrot.slane %v13082_v19, 2  ;;  %v1103_v48 = vrot.slane %v13086_v22, 2  ;;  %v11414_v50 = vld [vmem:[%s16973_s1 + $0x84] ss:$16 sps:$4 sm:$0xff]  }
  0x22   : > { %v363_v28 = vor.u32 %v362_v25, %v358_v20  ;;  %v764_v49 = vsel %vm420_vm0, %v11405_v43, 0  ;;  %v11408_v53 = vld [vmem:[%s16973_s1 + $0x88] ss:$16 sps:$4 sm:$0xff]   ;;  %v758_v54 = vsel %vm420_vm0, %v11411_v44, 0  ;;  %v11412_v56 = vld [vmem:[%s16973_s1 + $0x80] ss:$16 sps:$4 sm:$0xff]  }
  0x23   : > { %v371_v37 = vor.u32 %v369_v29, %v367_v26  ;;  %v13156_v51 = vsel %vm420_vm0, %v1100_v45, %v1101_v47  ;;  %v13159_v52 = vsel %vm420_vm0, %v1101_v47, %v1103_v48  ;;  %v11415_v55 = vld [vmem:[%s16973_s1 + $0xec] ss:$16 sps:$4 sm:$0x3f]   ;;  %v11418_v57 = vld [vmem:[%s16973_s1 + $0xe4] ss:$16 sps:$4 sm:$0x3f]  }
  0x24   : > { %v368_v33 = vsel %vm356_vm1, %v363_v28, %v367_v26  ;;  %v11417_v58 = vld [vmem:[%s16973_s1 + $0xe8] ss:$16 sps:$4 sm:$0x3f]   ;;  %v711_v60 = vrot.slane %v13082_v19, 1  ;;  %v11422_v62 = vld [vmem:[%s16973_s1 + $0xcc] ss:$16 sps:$4 sm:$0xff]  }
  0x25   : > { %9416 = vmatmul.mubr.msk.bf16.vlgmr.msra.gmra.mxu0 %vm413_vm2, %v368_v33  ;;  %9419 = vmatmul.mubr.msk.bf16.vlgmr.msra.gmra.mxu1 %vm413_vm2, %v368_v33  ;;  %v376_v41 = vsel %vm356_vm1, %v371_v37, %v375_v38  ;;  %v11423_v61 = vld [vmem:[%s16973_s1 + $0xe0] ss:$16 sps:$4 sm:$0x3f]   ;;  %v963_v0 = vsel %vm420_vm0, %v11417_v58, 0  ;;  %v11426_v1 = vld [vmem:[%s16973_s1 + $0xc4] ss:$16 sps:$4 sm:$0xff]  }
  0x26   : > { %657 = vmatpush1.bf16.msra.mxu1 %v586_v31  ;;  %475 = vmatprep.mubr.bf16.mxu0 %v16982_v3  ;;  %v712_v63 = vsel %vm709_vm3, %v710_v59, %v711_v60  ;;  %v11420_v2 = vld [vmem:[%s16973_s1 + $0xc8] ss:$16 sps:$4 sm:$0xff]   ;;  %v957_v4 = vsel %vm420_vm0, %v11423_v61, 0  ;;  %v11427_v5 = vld [vmem:[%s16973_s1 + $0x12c] ss:$16 sps:$4 sm:$0x3f]  }
  0x27   : > { %528 = vmatprep.mubr.bf16.mxu1 %v16982_v3  ;;  %658 = vmatprep.subr.bf16.mxu1 %v11398_v32  ;;  %v713_v6 = vrot.slane %v13086_v22, 1  ;;  %v11424_v7 = vld [vmem:[%s16973_s1 + $0xc0] ss:$16 sps:$4 sm:$0xff]   ;;  %v901_v8 = vrot.slane %v358_v20, 1  ;;  %v902_v10 = vrot.slane %v360_v21, 2  ;;  %v905_v11 = vrot.slane %v365_v23, 2 }
  0x28   : > { %604 = vmatpush1.bf16.msra.mxu0 %v580_v34  ;;  %v11430_v9 = vld [vmem:[%s16973_s1 + $0x124] ss:$16 sps:$4 sm:$0x3f]   ;;  %v904_v12 = vrot.slane %v369_v29, 1  ;;  %v911_v23 = vrot.slane %v373_v30, 2  ;;  %vm1383_vm5 = vcmask 883712  }
  0x29   : > { %605 = vmatprep.subr.bf16.mxu0 %v11402_v35  ;;  %v714_v13 = vsel %vm709_vm3, %v711_v60, %v713_v6  ;;  %v11429_v14 = vld [vmem:[%s16973_s1 + $0x128] ss:$16 sps:$4 sm:$0x3f]   ;;  %v903_v15 = vor.u32 %v902_v10, %v901_v8  ;;  %v11435_v18 = vld [vmem:[%s16973_s1 + $0x120] ss:$16 sps:$4 sm:$0x3f]  }
  0x2a   : > { %659 = vmatpush1.bf16.msra.mxu1 %v11396_v36  ;;  %v906_v16 = vor.u32 %v905_v11, %v904_v12  ;;  %v1154_v24 = vsel %vm420_vm0, %v11429_v14, 0  ;;  %v11438_v25 = vld [vmem:[%s16973_s1 + $0x104] ss:$16 sps:$4 sm:$0xff]   ;;  %v11432_v26 = vld [vmem:[%s16973_s1 + $0x108] ss:$16 sps:$4 sm:$0xff]   ;;  %v1148_v27 = vsel %vm420_vm0, %v11435_v18, 0 }
  0x2b   : > { %9454 = vmatprep.subr.msk.bf16.mxu1 %vm420_vm0, %v11403_v39  ;;  %v11436_v28 = vld [vmem:[%s16973_s1 + $0x100] ss:$16 sps:$4 sm:$0xff]   ;;  %v11441_v31 = vld [vmem:[%s16975_s3 + $0x484] ss:$16 sps:$4 sm:$0xff]   ;;  %vm2337_vm6 = vcmask 621568   ;;  %vm4308_vm7 = vcmask 1044480  }
  0x2c   : > { %606 = vmatpush1.bf16.msra.mxu0 %v11400_v40  ;;  %v907_v20 = vsel %vm900_vm4, %v903_v15, %v906_v16  ;;  %v11439_v30 = vld [vmem:[%s16975_s3 + $0x480] ss:$16 sps:$4 sm:$0xff]   ;;  %v11444_v32 = vld [vmem:[%s16975_s3 + $0x464] ss:$16 sps:$4 sm:$0xff]   ;;  %s12937_s26 = smov 78   ;;  %vm6049_vm8 = vcmask 637952  }
  0x2d   : > { %9417 = vmatmul.mubr.msk.bf16.gmra.mxu0 %vm413_vm2, %v376_v41  ;;  %9420 = vmatmul.mubr.msk.bf16.gmra.mxu1 %vm413_vm2, %v376_v41  ;;  %v11445_v33 = vld [vmem:[%s16975_s3 + $0x680] ss:$16 sps:$4 sm:$0xff]   ;;  %v11447_v34 = vld [vmem:[%s16975_s3 + $0x684] ss:$16 sps:$4 sm:$0xff]   ;;  %vm6719_vm9 = vcmask 769024   ;;  %vm9312_vm10 = vcmask 1040384  }
  0x2e   : > { %623 = vmatprep.mubr.bf16.mxu0 %v16982_v3  ;;  %676 = vmatprep.mubr.bf16.mxu1 %v16982_v3  ;;  %v11442_v35 = vld [vmem:[%s16975_s3 + $0x460] ss:$16 sps:$4 sm:$0xff]   ;;  %v11453_v36 = vld [vmem:[%s16975_s3 + $0x664] ss:$16 sps:$4 sm:$0xff]   ;;  %s323_s17 = sand.u32 1, %s12925_s10   ;;  %s11229_s21 = sshll.u32 %s13010_s13, 4 }
  0x2f   : > { %9451 = vmatprep.subr.msk.bf16.mxu0 %vm420_vm0, %v11406_v42  ;;  %v11450_v37 = vld [vmem:[%s16975_s3 + $0x444] ss:$16 sps:$4 sm:$0xff]   ;;  %v11451_v38 = vld [vmem:[%s16975_s3 + $0x660] ss:$16 sps:$4 sm:$0xff]   ;;  %s324_s22 = scalar_lea.vmem [#allocation2], %s323_s17  ;;  %s9337_s27 = scalar_lea.hbm %s16981_s9, %s11229_s21 }
  0x30   : > { %v11459_v39 = vld [vmem:[%s16975_s3 + $0x644] ss:$16 sps:$4 sm:$0xff]   ;;  %v11448_v40 = vld [vmem:[%s16975_s3 + $0x440] ss:$16 sps:$4 sm:$0xff]   ;;  %s12938_s29 = smov [#allocation2]  }
  0x31   : > { %v11456_v41 = vld [vmem:[%s16975_s3 + $0x424] ss:$16 sps:$4 sm:$0xff]   ;;  %v11457_v42 = vld [vmem:[%s16975_s3 + $0x640] ss:$16 sps:$4 sm:$0xff]   ;;  %s12877_s14 = sshll.u32 %s12938_s29, 4  ;;  %s12878_s14 = int_to_ptr.vmem [resolvable:$false] %s12877_s14 }
  0x32   : > { %v11454_v43 = vld [vmem:[%s16975_s3 + $0x420] ss:$16 sps:$4 sm:$0xff]   ;;  %v11465_v44 = vld [vmem:[%s16975_s3 + $0x624] ss:$16 sps:$4 sm:$0xff]   ;;  %s12879_s13 = scalar_lea.vmem %s12878_s14, 32 }
  0x33   : > { %v11462_v45 = vld [vmem:[%s16975_s3 + $0x404] ss:$16 sps:$4 sm:$0xff]   ;;  %v11460_v48 = vld [vmem:[%s16975_s3 + $0x400] ss:$16 sps:$4 sm:$0xff]  }
  0x34   : > { %v11471_v47 = vld [vmem:[%s16975_s3 + $0x604] ss:$16 sps:$4 sm:$0xff]   ;;  %v11481_v58 = vld [vmem:[%s16975_s3 + $0x5c0] ss:$16 sps:$4 sm:$0xff]  }
  0x35   : > { %9430 = vmatmul.mubr.msk.bf16.vlgmr.msra.gmra.mxu0 %vm413_vm2, %v13080_v17  ;;  %9433 = vmatmul.mubr.msk.bf16.vlgmr.msra.gmra.mxu1 %vm413_vm2, %v13080_v17  ;;  %v908_v17 = vshrl.u32 %v13086_v22, 16  ;;  %v11478_v59 = vld [vmem:[%s16975_s3 + $0x3a0] ss:$16 sps:$4 sm:$0xff]  }
  0x36   : > { %835 = vmatpush1.bf16.msra.mxu1 %v764_v49  ;;  %633 = vmatprep.mubr.bf16.mxu0 %v16982_v3  ;;  %v11468_v49 = vld [vmem:[%s16975_s3 + $0x3e4] ss:$16 sps:$4 sm:$0xff]  }
  0x37   : > { %686 = vmatprep.mubr.bf16.mxu1 %v16982_v3  ;;  %836 = vmatprep.subr.bf16.mxu1 %v11410_v46  ;;  %v910_v21 = vrot.slane %v908_v17, 1  ;;  %v11463_v46 = vld [vmem:[%s16975_s3 + $0x620] ss:$16 sps:$4 sm:$0xff]  }
  0x38   : > { %782 = vmatpush1.bf16.msra.mxu0 %v758_v54  ;;  %v11475_v54 = vld [vmem:[%s16975_s3 + $0x5e0] ss:$16 sps:$4 sm:$0xff]  }
  0x39   : > { %783 = vmatprep.subr.bf16.mxu0 %v11414_v50  ;;  %v912_v22 = vor.u32 %v911_v23, %v910_v21  ;;  %v11469_v50 = vld [vmem:[%s16975_s3 + $0x600] ss:$16 sps:$4 sm:$0xff]  }
  0x3a   : > { %837 = vmatpush1.bf16.msra.mxu1 %v11408_v53  ;;  %v11474_v53 = vld [vmem:[%s16975_s3 + $0x3c4] ss:$16 sps:$4 sm:$0xff]  }
  0x3b   : > { %9476 = vmatprep.subr.msk.bf16.mxu1 %vm420_vm0, %v11415_v55  ;;  %v913_v29 = vsel %vm900_vm4, %v906_v16, %v912_v22  ;;  %v11483_v55 = vld [vmem:[%s16975_s3 + $0x5c4] ss:$16 sps:$4 sm:$0xff]  }
  0x3c   : > { %784 = vmatpush1.bf16.msra.mxu0 %v11412_v56  ;;  %v11472_v56 = vld [vmem:[%s16975_s3 + $0x3c0] ss:$16 sps:$4 sm:$0xff]  }
  0x3d   : > { %9431 = vmatmul.mubr.msk.bf16.gmra.mxu0 %vm413_vm2, %v13082_v19  ;;  %9434 = vmatmul.mubr.msk.bf16.gmra.mxu1 %vm413_vm2, %v13082_v19  ;;  %v11434_v19 = vld [vmem:[%s16973_s1 + $0x10c] ss:$16 sps:$4 sm:$0xff]  }
  0x3e   : > { %801 = vmatprep.mubr.bf16.mxu0 %v16982_v3  ;;  %854 = vmatprep.mubr.bf16.mxu1 %v16982_v3 }
  0x3f   : > { %9473 = vmatprep.subr.msk.bf16.mxu0 %vm420_vm0, %v11418_v57  ;;  %v11480_v57 = vld [vmem:[%s16975_s3 + $0x3a4] ss:$16 sps:$4 sm:$0xff]  }
  0x45   : > { %9452 = vmatmul.mubr.msk.bf16.vlgmr.msra.gmra.mxu0 %vm413_vm2, %v712_v63  ;;  %9455 = vmatmul.mubr.msk.bf16.vlgmr.msra.gmra.mxu1 %vm413_vm2, %v712_v63 }
  0x46   : > { %1034 = vmatpush1.bf16.msra.mxu1 %v963_v0  ;;  %811 = vmatprep.mubr.bf16.mxu0 %v16982_v3 }
  0x47   : > { %864 = vmatprep.mubr.bf16.mxu1 %v16982_v3  ;;  %1035 = vmatprep.subr.bf16.mxu1 %v11422_v62 }
  0x48   : > { %981 = vmatpush1.bf16.msra.mxu0 %v957_v4 }
  0x49   : > { %982 = vmatprep.subr.bf16.mxu0 %v11426_v1 }
  0x4a   : > { %1036 = vmatpush1.bf16.msra.mxu1 %v11420_v2 }
  0x4b   : > { %9498 = vmatprep.subr.msk.bf16.mxu1 %vm420_vm0, %v11427_v5 }
  0x4c   : > { %983 = vmatpush1.bf16.msra.mxu0 %v11424_v7 }
  0x4d   : > { %9453 = vmatmul.mubr.msk.bf16.gmra.mxu0 %vm413_vm2, %v714_v13  ;;  %9456 = vmatmul.mubr.msk.bf16.gmra.mxu1 %vm413_vm2, %v714_v13 }
  0x4e   : > { %1000 = vmatprep.mubr.bf16.mxu0 %v16982_v3  ;;  %1053 = vmatprep.mubr.bf16.mxu1 %v16982_v3 }
  0x4f   : > { %9495 = vmatprep.subr.msk.bf16.mxu0 %vm420_vm0, %v11430_v9 }
  0x55   : > { %9474 = vmatmul.mubr.msk.bf16.vlgmr.msra.gmra.mxu0 %vm413_vm2, %v907_v20  ;;  %9477 = vmatmul.mubr.msk.bf16.vlgmr.msra.gmra.mxu1 %vm413_vm2, %v907_v20 }
  0x56   : > { %1225 = vmatpush1.bf16.msra.mxu1 %v1154_v24  ;;  %1010 = vmatprep.mubr.bf16.mxu0 %v16982_v3 }
  0x57   : > { %1063 = vmatprep.mubr.bf16.mxu1 %v16982_v3  ;;  %1226 = vmatprep.subr.bf16.mxu1 %v11434_v19 }
  0x58   : > { %1172 = vmatpush1.bf16.msra.mxu0 %v1148_v27 }
  0x59   : > { %1173 = vmatprep.subr.bf16.mxu0 %v11438_v25 }
  0x5a   : > { %1227 = vmatpush1.bf16.msra.mxu1 %v11432_v26 }
  0x5b   : > { %2396 = vmatprep.subr.bf16.mxu1 %v11447_v34 }
  0x5c   : > { %1174 = vmatpush1.bf16.msra.mxu0 %v11436_v28 }
  0x5d   : > { %9475 = vmatmul.mubr.msk.bf16.gmra.mxu0 %vm413_vm2, %v913_v29  ;;  %9478 = vmatmul.mubr.msk.bf16.gmra.mxu1 %vm413_vm2, %v913_v29 }
  0x5e   : > { %1191 = vmatprep.mubr.bf16.mxu0 %v16982_v3  ;;  %1244 = vmatprep.mubr.bf16.mxu1 %v16982_v3 }
  0x5f   : > { %2353 = vmatprep.subr.bf16.mxu0 %v11441_v31 }
  0x65   : > { %9496 = vmatmul.mubr.msk.bf16.vlgmr.msra.gmra.mxu0 %vm413_vm2, %v13156_v51  ;;  %9499 = vmatmul.mubr.msk.bf16.vlgmr.msra.gmra.mxu1 %vm413_vm2, %v13156_v51  ;;  %v11477_v51 = vld [vmem:[%s16975_s3 + $0x5e4] ss:$16 sps:$4 sm:$0xff]  }
  0x66   : > { %1201 = vmatprep.mubr.bf16.mxu0 %v16982_v3  ;;  %1254 = vmatprep.mubr.bf16.mxu1 %v16982_v3 }
  0x67   : > { %2354 = vmatpush1.bf16.msra.mxu0 %v11439_v30  ;;  %2397 = vmatpush1.bf16.msra.mxu1 %v11445_v33 }
  0x68   : > { %2355 = vmatprep.subr.bf16.mxu0 %v11444_v32  ;;  %2398 = vmatprep.subr.bf16.mxu1 %v11453_v36 }
  0x6b   : > { %2356 = vmatpush1.bf16.msra.mxu0 %v11442_v35  ;;  %2399 = vmatpush1.bf16.msra.mxu1 %v11451_v38 }
  0x6c   : > { %2357 = vmatprep.subr.bf16.mxu0 %v11450_v37  ;;  %2400 = vmatprep.subr.bf16.mxu1 %v11459_v39 }
  0x6d   : > { %9497 = vmatmul.mubr.msk.bf16.gmra.mxu0 %vm413_vm2, %v13159_v52  ;;  %9500 = vmatmul.mubr.msk.bf16.gmra.mxu1 %vm413_vm2, %v13159_v52  ;;  %v11466_v52 = vld [vmem:[%s16975_s3 + $0x3e0] ss:$16 sps:$4 sm:$0xff]  }
  0x6f   : > { %2358 = vmatpush1.bf16.msra.mxu0 %v11448_v40  ;;  %2401 = vmatpush1.bf16.msra.mxu1 %v11457_v42 }
  0x70   : > { %2359 = vmatprep.subr.bf16.mxu0 %v11456_v41  ;;  %2402 = vmatprep.subr.bf16.mxu1 %v11465_v44 }
  0x73   : > { %2360 = vmatpush1.bf16.msra.mxu0 %v11454_v43  ;;  %2403 = vmatpush1.bf16.msra.mxu1 %v11463_v46 }
  0x74   : > { %2361 = vmatprep.subr.bf16.mxu0 %v11462_v45  ;;  %2404 = vmatprep.subr.bf16.mxu1 %v11471_v47  ;;  %v1283_v45 = vlaneseq }
  0x77   : > { %2362 = vmatpush1.bf16.msra.mxu0 %v11460_v48  ;;  %2405 = vmatpush1.bf16.msra.mxu1 %v11469_v50  ;;  %v1284_v50 = vshrl.u32 %v1283_v45, 7 }
  0x78   : > { %2363 = vmatprep.subr.bf16.mxu0 %v11468_v49  ;;  %2406 = vmatprep.subr.bf16.mxu1 %v11477_v51 }
  0x7b   : > { %2364 = vmatpush1.bf16.msra.mxu0 %v11466_v52  ;;  %2407 = vmatpush1.bf16.msra.mxu1 %v11475_v54 }
  0x7c   : > { %2365 = vmatprep.subr.bf16.mxu0 %v11474_v53  ;;  %2408 = vmatprep.subr.bf16.mxu1 %v11483_v55  ;;  %v1281_v53 = vld [vmem:[%s16974_s2] sm:$0xf] }
  0x7f   : > { %2366 = vmatpush1.bf16.msra.mxu0 %v11472_v56  ;;  %2409 = vmatpush1.bf16.msra.mxu1 %v11481_v58  ;;  %v13445_v56 = vsub.s32 0, %v1284_v50  ;;  %v13449_v58 = vsub.s32 1, %v1284_v50 }
  0x80   : > { %2367 = vmatprep.subr.bf16.mxu0 %v11480_v57  ;;  %v13447_v57 = vsub.s32 2, %v1284_v50 }
  0x81   : > { %17001 = vst [vmem:[#allocation11_spill] sm:$0xff] %v13445_v56  ;;  %17003 = vst [vmem:[#allocation13_spill] sm:$0xff] %v13449_v58 }
  0x82   : > { %17002 = vst [vmem:[#allocation12_spill] sm:$0xff] %v13447_v57 }
  0x83   : > { %2368 = vmatpush1.bf16.msra.mxu0 %v11478_v59  ;;  %v13451_v59 = vsub.s32 3, %v1284_v50  ;;  %v13470_v50 = vrot.slane %v1281_v53, %v13449_v58 }
  0x85   : > { %17004 = vst [vmem:[#allocation14_spill] sm:$0xff] %v13451_v59 }
  0xe5   : > { %v13370_v60 = vpop.f32.mrf.mxu0  ;;  %v13372_v61 = vpop.f32.mrf.mxu1 }
  0xe7   : > { %v13374_v62 = vpop.f32.mrf.mxu0  ;;  %v13376_v63 = vpop.f32.mrf.mxu1 }
  0xe9   : > { %v13378_v0 = vpop.f32.mrf.mxu0  ;;  %v13380_v1 = vpop.f32.mrf.mxu1 }
  0xeb   : > { %v13382_v2 = vpop.f32.mrf.mxu0  ;;  %v13384_v4 = vpop.f32.mrf.mxu1 }
  0xed   : > { %v13386_v5 = vpop.f32.mrf.mxu0  ;;  %v13388_v6 = vpop.f32.mrf.mxu1 }
  0xef   : > { %v13390_v7 = vpop.f32.mrf.mxu0  ;;  %v13392_v8 = vpop.f32.mrf.mxu1 }
  0xf1   : > { %v13394_v9 = vpop.f32.mrf.mxu0  ;;  %v13396_v10 = vpop.f32.mrf.mxu1 }
  0xf3   : > { %v13398_v11 = vpop.f32.mrf.mxu0  ;;  %v13400_v12 = vpop.f32.mrf.mxu1 }
  0xf5   : > { %v625_v13 = vpop.f32.mrf.mxu0  ;;  %v678_v14 = vpop.f32.mrf.mxu1 }
  0xf7   : > { %v627_v15 = vpop.f32.mrf.mxu0  ;;  %v680_v16 = vpop.f32.mrf.mxu1 }
  0xf9   : > { %v629_v17 = vpop.f32.mrf.mxu0  ;;  %v682_v18 = vpop.f32.mrf.mxu1 }
  0xfb   : > { %v631_v19 = vpop.f32.mrf.mxu0  ;;  %v684_v20 = vpop.f32.mrf.mxu1 }
  0xfd   : > { %v635_v21 = vpop.f32.mrf.mxu0  ;;  %v688_v23 = vpop.f32.mrf.mxu1 }
  0xff   : > { %v637_v24 = vpop.f32.mrf.mxu0  ;;  %v690_v25 = vpop.f32.mrf.mxu1 }
 0x101   : > { %v639_v26 = vpop.f32.mrf.mxu0  ;;  %v692_v27 = vpop.f32.mrf.mxu1 }
 0x103   : > { %v641_v22 = vpop.f32.mrf.mxu0  ;;  %v13402_v28 = vpop.f32.mrf.mxu1 }
 0x105   : > { %v13404_v29 = vpop.f32.mrf.mxu0  ;;  %v856_v30 = vpop.f32.mrf.mxu1 }
 0x107   : > { %v13406_v31 = vpop.f32.mrf.mxu0  ;;  %v858_v32 = vpop.f32.mrf.mxu1 }
 0x109   : > { %v807_v33 = vpop.f32.mrf.mxu0  ;;  %v13408_v34 = vpop.f32.mrf.mxu1 }
 0x10b   : > { %v13410_v35 = vpop.f32.mrf.mxu0  ;;  %v13412_v36 = vpop.f32.mrf.mxu1 }
 0x10d   : > { %v13414_v37 = vpop.f32.mrf.mxu0  ;;  %v13416_v38 = vpop.f32.mrf.mxu1 }
 0x10f   : > { %v13418_v39 = vpop.f32.mrf.mxu0  ;;  %v13420_v40 = vpop.f32.mrf.mxu1 }
 0x111   : > { %v13422_v41 = vpop.f32.mrf.mxu0  ;;  %v13424_v42 = vpop.f32.mrf.mxu1 }
 0x112   : > { %16995 = vst [vmem:[#allocation5_spill] sm:$0xff] %v13424_v42  ;;  %v626_v42 = vadd.f32 %v625_v13, %v13370_v60  ;;  %v632_v60 = vadd.f32 %v631_v19, %v13382_v2  ;;  %v636_v13 = vadd.f32 %v635_v21, %v13386_v5  ;;  %v642_v2 = vadd.f32 %v641_v22, %v13398_v11  ;;  %v11486_v5 = vld [vmem:[%s16975_s3 + $0x584] ss:$16 sps:$4 sm:$0xff]   ;;  %v11484_v19 = vld [vmem:[%s16975_s3 + $0x580] ss:$16 sps:$4 sm:$0xff]  }
 0x113   : > { %v13426_v43 = vpop.f32.mrf.mxu0  ;;  %v13428_v44 = vpop.f32.mrf.mxu1  ;;  %2369 = vmatprep.subr.bf16.mxu0 %v11486_v5 }
 0x114   : > { %16996 = vst [vmem:[#allocation6_spill] sm:$0xff] %v13426_v43  ;;  %16997 = vst [vmem:[#allocation7_spill] sm:$0xff] %v13428_v44  ;;  %v13465_v43 = vrot.slane %v1281_v53, %v13447_v57  ;;  %2370 = vmatpush2.bf16.msra.mxu0 %v11484_v19 }
 0x115   : > { %v13430_v46 = vpop.f32.mrf.mxu0  ;;  %v1055_v47 = vpop.f32.mrf.mxu1 }
 0x116   : > { %16998 = vst [vmem:[#allocation8_spill] sm:$0xff] %v13430_v46 }
 0x117   : > { %v13432_v48 = vpop.f32.mrf.mxu0  ;;  %v1057_v49 = vpop.f32.mrf.mxu1 }
 0x119   : > { %v13434_v51 = vpop.f32.mrf.mxu0  ;;  %v13436_v52 = vpop.f32.mrf.mxu1 }
 0x11a   : > { %16999 = vst [vmem:[#allocation9_spill] sm:$0xff] %v13434_v51  ;;  %v13462_v51 = vrot.slane %v1281_v53, %v13445_v56  ;;  %v630_v56 = vadd.f32 %v629_v17, %v13378_v0  ;;  %v640_v0 = vadd.f32 %v639_v26, %v13394_v9  ;;  %v13518_v26 = vadd.f32 %v13414_v37, %v636_v13 }
 0x11b   : > { %v13441_v54 = vpop.f32.mrf.mxu0  ;;  %v13443_v55 = vpop.f32.mrf.mxu1 }
 0x11c   : > { %17000 = vst [vmem:[#allocation10_spill] sm:$0xff] %v13443_v55  ;;  %17009 = vst [vmem:[#allocation19_spill] sm:$0xff] %v13462_v51  ;;  %v679_v55 = vadd.f32 %v678_v14, %v13372_v61  ;;  %v683_v51 = vadd.f32 %v682_v18, %v13380_v1  ;;  %v685_v61 = vadd.f32 %v684_v20, %v13384_v4  ;;  %v11487_v20 = vld [vmem:[%s16975_s3 + $0x5a0] ss:$16 sps:$4 sm:$0xff]  }
 0x11d   : > { %v13453_v45 = vpop.f32.mrf.mxu0  ;;  %v13455_v3 = vpop.f32.mrf.mxu1  ;;  %v17016_v19 = vld [vmem:[#allocation8_spill] sm:$0xff] }
 0x11e   : > { %17005 = vst [vmem:[#allocation15_spill] sm:$0xff] %v13453_v45  ;;  %17006 = vst [vmem:[#allocation16_spill] sm:$0xff] %v13455_v3  ;;  %v13473_v45 = vrot.slane %v1281_v53, %v13451_v59  ;;  %v877_v14 = vadd.f32 %v856_v30, %v679_v55  ;;  %v689_v53 = vadd.f32 %v688_v23, %v13388_v6  ;;  %v11489_v6 = vld [vmem:[%s16975_s3 + $0x5a4] ss:$16 sps:$4 sm:$0xff]  }
 0x11f   : > { %v13457_v46 = vpop.f32.mrf.mxu0  ;;  %v13459_v44 = vpop.f32.mrf.mxu1  ;;  %v881_v21 = vadd.f32 %v13408_v34, %v683_v51  ;;  %2410 = vmatprep.subr.bf16.mxu1 %v11489_v6  ;;  %v887_v34 = vadd.f32 %v13422_v41, %v640_v0 }
 0x120   : > { %17007 = vst [vmem:[#allocation17_spill] sm:$0xff] %v13457_v46  ;;  %17008 = vst [vmem:[#allocation18_spill] sm:$0xff] %v13459_v44  ;;  %v628_v46 = vadd.f32 %v627_v15, %v13374_v62  ;;  %v681_v44 = vadd.f32 %v680_v16, %v13376_v63  ;;  %v638_v62 = vadd.f32 %v637_v24, %v13390_v7  ;;  %2411 = vmatpush1.bf16.msra.mxu1 %v11487_v20 }
 0x121   : > { %v13479_v57 = vpop.f32.mrf.mxu0  ;;  %v13481_v3 = vpop.f32.mrf.mxu1  ;;  %v691_v63 = vadd.f32 %v690_v25, %v13392_v8  ;;  %v693_v16 = vadd.f32 %v692_v27, %v13396_v10  ;;  %v1076_v17 = vadd.f32 %v1055_v47, %v877_v14  ;;  %v695_v7 = vadd.f32 %v13402_v28, %v13400_v12  ;;  %v17014_v0 = vld [vmem:[#allocation9_spill] sm:$0xff] }
 0x122   : > { %v878_v4 = vadd.f32 %v858_v32, %v681_v44  ;;  %v875_v8 = vadd.f32 %v13404_v29, %v626_v42  ;;  %v876_v9 = vadd.f32 %v13406_v31, %v628_v46  ;;  %v879_v10 = vadd.f32 %v807_v33, %v630_v56  ;;  %v11492_v32 = vld [vmem:[%s16975_s3 + $0x564] ss:$16 sps:$4 sm:$0xff]   ;;  %v11495_v42 = vld [vmem:[%s16975_s3 + $0x720] ss:$16 sps:$4 sm:$0x3f]  }
 0x123   : > { %v13490_v1 = vpop.f32.mrf.mxu0  ;;  %v13492_v15 = vpop.f32.mrf.mxu1  ;;  %v880_v24 = vadd.f32 %v13410_v35, %v632_v60  ;;  %v882_v25 = vadd.f32 %v13412_v36, %v685_v61  ;;  %v885_v28 = vadd.f32 %v13416_v38, %v689_v53  ;;  %v884_v29 = vadd.f32 %v13418_v39, %v638_v62  ;;  %v11493_v33 = vld [vmem:[%s16975_s3 + $0x724] ss:$16 sps:$4 sm:$0x3f]   ;;  %v17010_v41 = vld [vmem:[#allocation10_spill] sm:$0xff]  ;;  %2371 = vmatprep.subr.bf16.mxu0 %v11492_v32 }
 0x124   : > { %v1077_v23 = vadd.f32 %v1057_v49, %v878_v4  ;;  %v886_v30 = vadd.f32 %v13420_v40, %v691_v63  ;;  %v1075_v35 = vadd.f32 %v13432_v48, %v876_v9  ;;  %v1080_v36 = vadd.f32 %v13436_v52, %v881_v21  ;;  %v11490_v40 = vld [vmem:[%s16975_s3 + $0x560] ss:$16 sps:$4 sm:$0xff]   ;;  %9733 = vmatprep.subr.msk.bf16.mxu1 %vm420_vm0, %v11493_v33 }
 0x125   : > { %v13506_v18 = vpop.f32.mrf.mxu0  ;;  %v1246_v11 = vpop.f32.mrf.mxu1  ;;  %v1079_v44 = vadd.f32 %v13441_v54, %v880_v24  ;;  %v1081_v46 = vadd.f32 %v17010_v41, %v882_v25  ;;  %v17011_v48 = vld [vmem:[#allocation5_spill] sm:$0xff]  ;;  %v17012_v51 = vld [vmem:[#allocation16_spill] sm:$0xff]  ;;  %v2342_v61 = vsel %vm420_vm0, %v11495_v42, 0  ;;  %2372 = vmatpush2.bf16.msra.mxu0 %v11490_v40  ;;  %v17013_v62 = vld [vmem:[#allocation6_spill] sm:$0xff]  ;;  %v1078_v4 = vadd.f32 %v17014_v0, %v879_v10 }
 0x126   : > { %v1267_v12 = vadd.f32 %v1246_v11, %v1076_v17  ;;  %v889_v49 = vadd.f32 %v17011_v48, %v693_v16  ;;  %v1084_v52 = vadd.f32 %v17012_v51, %v885_v28  ;;  %2419 = vmatpush2.bf16.msra.mxu1 %v2342_v61  ;;  %v888_v63 = vadd.f32 %v17013_v62, %v642_v2  ;;  %v17015_v9 = vld [vmem:[#allocation7_spill] sm:$0xff] }
 0x127   : > { %v1195_v27 = vpop.f32.mrf.mxu0  ;;  %v1248_v22 = vpop.f32.mrf.mxu1  ;;  %v890_v11 = vadd.f32 %v17015_v9, %v695_v7  ;;  %v1074_v20 = vadd.f32 %v17016_v19, %v875_v8  ;;  %v11498_v2 = vld [vmem:[%s16975_s3 + $0x544] ss:$16 sps:$4 sm:$0xff]   ;;  %v11496_v28 = vld [vmem:[%s16975_s3 + $0x540] ss:$16 sps:$4 sm:$0xff]  }
 0x128   : > { %v1268_v31 = vadd.f32 %v1248_v22, %v1077_v23  ;;  %v13533_v37 = vadd.f32 %v13465_v43, %v1267_v12  ;;  %v1266_v13 = vadd.f32 %v1195_v27, %v1075_v35  ;;  %v11501_v10 = vld [vmem:[%s16975_s3 + $0x704] ss:$16 sps:$4 sm:$0xff]   ;;  %v17017_v12 = vld [vmem:[#allocation18_spill] sm:$0xff]  ;;  %v1088_v33 = vadd.f32 %v13481_v3, %v889_v49  ;;  %2373 = vmatprep.subr.bf16.mxu0 %v11498_v2 }
 0x129   : > { %v1197_v38 = vpop.f32.mrf.mxu0  ;;  %v1250_v39 = vpop.f32.mrf.mxu1  ;;  %v1085_v24 = vadd.f32 %v17017_v12, %v886_v30  ;;  %v17018_v30 = vld [vmem:[#allocation17_spill] sm:$0xff]  ;;  %2420 = vmatprep.subr.bf16.mxu1 %v11501_v10  ;;  %v1087_v41 = vadd.f32 %v13490_v1, %v888_v63  ;;  %2374 = vmatpush2.bf16.msra.mxu0 %v11496_v28 }
 0x12a   : > { %v13544_v47 = vadd.f32 %v13473_v45, %v1268_v31  ;;  %v1271_v55 = vadd.f32 %v1250_v39, %v1080_v36  ;;  %v1321_v16 = vmax.f32 %v13533_v37, 0.0  ;;  %v1269_v25 = vadd.f32 %v1197_v38, %v1078_v4  ;;  %v11499_v31 = vld [vmem:[%s16975_s3 + $0x700] ss:$16 sps:$4 sm:$0xff]   ;;  %v11504_v61 = vld [vmem:[%s16975_s3 + $0x524] ss:$16 sps:$4 sm:$0xff]  }
 0x12b   : > { %v1199_v56 = vpop.f32.mrf.mxu0  ;;  %v1252_v60 = vpop.f32.mrf.mxu1  ;;  %v1083_v32 = vadd.f32 %v17018_v30, %v884_v29  ;;  %v13587_v35 = vadd.f32 %v13470_v50, %v1266_v13  ;;  %v1265_v38 = vadd.f32 %v13506_v18, %v1074_v20  ;;  %2421 = vmatpush2.bf16.msra.mxu1 %v11499_v31  ;;  %v17019_v18 = vld [vmem:[#allocation19_spill] sm:$0xff]  ;;  %2375 = vmatprep.subr.bf16.mxu0 %v11504_v61 }
 0x12c   : > { %v1322_v54 = vmax.f32 %v13544_v47, 0.0  ;;  %v1270_v14 = vadd.f32 %v1199_v56, %v1079_v44  ;;  %v1272_v53 = vadd.f32 %v1252_v60, %v1081_v46  ;;  %v13555_v17 = vadd.f32 %v13465_v43, %v1271_v55  ;;  %v11507_v13 = vld [vmem:[%s16975_s3 + $0x6e4] ss:$16 sps:$4 sm:$0xff]   ;;  %v11505_v0 = vld [vmem:[%s16975_s3 + $0x6e0] ss:$16 sps:$4 sm:$0xff]  }
 0x12d   : > { %v13557_v5 = vpop.f32.mrf.mxu0  ;;  %v1256_v6 = vpop.f32.mrf.mxu1  ;;  %v1086_v44 = vadd.f32 %v13479_v57, %v887_v34  ;;  %v1089_v46 = vadd.f32 %v13492_v15, %v890_v11  ;;  %v13600_v49 = vadd.f32 %v17019_v18, %v1269_v25  ;;  %v1320_v1 = vmax.f32 %v13587_v35, 0.0  ;;  %v17020_v4 = vld [vmem:[#allocation15_spill] sm:$0xff]  ;;  %2422 = vmatprep.subr.bf16.mxu1 %v11507_v13 }
 0x12e   : > { %v13562_v21 = vadd.f32 %v13473_v45, %v1272_v53  ;;  %v1275_v23 = vadd.f32 %v1256_v6, %v1084_v52  ;;  %v13572_v27 = vadd.f32 %v13470_v50, %v1270_v14  ;;  %v11319_v22 = vpack.i.bf16 %v1322_v54, %v1321_v16  ;;  %v11510_v10 = vld [vmem:[%s16975_s3 + $0x504] ss:$16 sps:$4 sm:$0xff]  }
 0x12f   : > { %v1205_v7 = vpop.f32.mrf.mxu0  ;;  %v1258_v8 = vpop.f32.mrf.mxu1  ;;  %v1325_v39 = vmax.f32 %v13555_v17, 0.0  ;;  %v13621_v14 = vadd.f32 %v17019_v18, %v1265_v38  ;;  %v1082_v6 = vadd.f32 %v17020_v4, %v13518_v26  ;;  %v1323_v19 = vmax.f32 %v13600_v49, 0.0  ;;  %2423 = vmatpush2.bf16.msra.mxu1 %v11505_v0  ;;  %v11513_v12 = vld [vmem:[%s16975_s3 + $0x6c4] ss:$16 sps:$4 sm:$0xff]  }
 0x130   : > { %v1326_v36 = vmax.f32 %v13562_v21, 0.0  ;;  %v13593_v40 = vadd.f32 %v13465_v43, %v1275_v23  ;;  %v1276_v42 = vadd.f32 %v1258_v8, %v1085_v24  ;;  %11320 = vrot.lane.b32.xlu0 %v11319_v22, %s12936_s24  ;;  %v1324_v51 = vmax.f32 %v13572_v27, 0.0  ;;  %v11508_v8 = vld [vmem:[%s16975_s3 + $0x500] ss:$16 sps:$4 sm:$0xff]   ;;  %2424 = vmatprep.subr.bf16.mxu1 %v11513_v12  ;;  %v11516_v30 = vld [vmem:[%s16975_s3 + $0x4e4] ss:$16 sps:$4 sm:$0xff]  }
 0x131   : > { %v1207_v29 = vpop.f32.mrf.mxu0  ;;  %v1260_v3 = vpop.f32.mrf.mxu1  ;;  %v1274_v62 = vadd.f32 %v1205_v7, %v1083_v32  ;;  %v1319_v24 = vmax.f32 %v13621_v14, 0.0  ;;  %v1273_v25 = vadd.f32 %v13557_v5, %v1082_v6  ;;  %v11511_v22 = vld [vmem:[%s16975_s3 + $0x6c0] ss:$16 sps:$4 sm:$0xff]   ;;  %v11519_v32 = vld [vmem:[%s16975_s3 + $0x6a4] ss:$16 sps:$4 sm:$0xff]  }
 0x132   : > { %v1279_v48 = vadd.f32 %v1260_v3, %v1088_v33  ;;  %v13604_v52 = vadd.f32 %v13473_v45, %v1276_v42  ;;  %v11324_v57 = vpack.i.bf16 %v1326_v36, %v1325_v39  ;;  %v1329_v53 = vmax.f32 %v13593_v40, 0.0  ;;  %v11514_v42 = vld [vmem:[%s16975_s3 + $0x4e0] ss:$16 sps:$4 sm:$0xff]  }
 0x133   : > { %v1209_v55 = vpop.f32.mrf.mxu0  ;;  %v1262_v56 = vpop.f32.mrf.mxu1  ;;  %v1277_v9 = vadd.f32 %v1207_v29, %v1086_v44  ;;  %v11339_v26 = vpack.i.bf16 %v1324_v51, %v1320_v1  ;;  %v13660_v7 = vadd.f32 %v13470_v50, %v1274_v62  ;;  %v11344_v31 = vpack.i.bf16 %v1323_v19, %v1319_v24  ;;  %2425 = vmatpush2.bf16.msra.mxu1 %v11511_v22  ;;  %v11517_v29 = vld [vmem:[%s16975_s3 + $0x6a0] ss:$16 sps:$4 sm:$0xff]  }
 0x134   : > { %v13612_v15 = vadd.f32 %v13465_v43, %v1279_v48  ;;  %v1278_v34 = vadd.f32 %v1209_v55, %v1087_v41  ;;  %v1280_v60 = vadd.f32 %v1262_v56, %v1089_v46  ;;  %v1330_v63 = vmax.f32 %v13604_v52, 0.0  ;;  %11325 = vrot.lane.b32.xlu0 %v11324_v57, %s12936_s24  ;;  %v11502_v43 = vld [vmem:[%s16975_s3 + $0x520] ss:$16 sps:$4 sm:$0xff]   ;;  %2426 = vmatprep.subr.bf16.mxu1 %v11519_v32  ;;  %v11522_v41 = vld [vmem:[%s16975_s3 + $0x4c4] ss:$16 sps:$4 sm:$0xff]  }
 0x135   : > { %2376 = vmatpush2.bf16.msra.mxu0 %v11502_v43  ;;  %v13689_v33 = vadd.f32 %v17019_v18, %v1273_v25  ;;  %v1328_v38 = vmax.f32 %v13660_v7, 0.0  ;;  %v11520_v48 = vld [vmem:[%s16975_s3 + $0x4c0] ss:$16 sps:$4 sm:$0xff]   ;;  %v11528_v57 = vld [vmem:[%s16975_s3 + $0x4a4] ss:$16 sps:$4 sm:$0xff]  }
 0x136   : > { %v13635_v11 = vadd.f32 %v13473_v45, %v1280_v60  ;;  %v13639_v20 = vadd.f32 %v13470_v50, %v1278_v34  ;;  %v11329_v23 = vpack.i.bf16 %v1330_v63, %v1329_v53  ;;  %v1333_v45 = vmax.f32 %v13612_v15, 0.0  ;;  %2377 = vmatprep.subr.bf16.mxu0 %v11510_v10  ;;  %v11526_v56 = vld [vmem:[%s16975_s3 + $0x4a0] ss:$16 sps:$4 sm:$0xff]   ;;  %v11537_v34 = vld [vmem:[%s16975_s3 + $0x68c] ss:$16 sps:$4 sm:$0xff]  }
 0x137   : > { %v13675_v50 = vadd.f32 %v17019_v18, %v1277_v9  ;;  %2427 = vmatpush2.bf16.msra.mxu1 %v11517_v29  ;;  %v1327_v46 = vmax.f32 %v13689_v33, 0.0  ;;  %v11525_v18 = vld [vmem:[%s16975_s3 + $0x48c] ss:$16 sps:$4 sm:$0xff]  }
 0x138   : > { %v1334_v2 = vmax.f32 %v13635_v11, 0.0  ;;  %11330 = vrot.lane.b32.xlu1 %v11329_v23, %s12936_s24  ;;  %11340 = vrot.lane.b32.xlu0 %v11339_v26, %s12936_s24  ;;  %v1332_v28 = vmax.f32 %v13639_v20, 0.0 }
 0x139   : > { %2378 = vmatpush2.bf16.msra.mxu0 %v11508_v8  ;;  %v1331_v3 = vmax.f32 %v13675_v50, 0.0  ;;  %2439 = vmatprep.subr.bf16.mxu1 %v11525_v18 }
 0x13a   : > { %v11334_v5 = vpack.i.bf16 %v1334_v2, %v1333_v45  ;;  %2379 = vmatprep.subr.bf16.mxu0 %v11516_v30  ;;  %v11349_v44 = vpack.i.bf16 %v1332_v28, %v1328_v38 }
 0x13b   : > { %v11354_v55 = vpack.i.bf16 %v1331_v3, %v1327_v46 }
 0x13c   : > { %11335 = vrot.lane.b32.xlu1 %v11334_v5, %s12936_s24  ;;  %11345 = vrot.lane.b32.xlu0 %v11344_v31, %s12936_s24 }
 0x13d   : > { %2380 = vmatpush2.bf16.msra.mxu0 %v11514_v42 }
 0x13e   : > { %2381 = vmatprep.subr.bf16.mxu0 %v11522_v41 }
 0x140   : > { %11350 = vrot.lane.b32.xlu1 %v11349_v44, %s12936_s24 }
 0x141   : > { %2382 = vmatpush2.bf16.msra.mxu0 %v11520_v48 }
 0x142   : > { %2383 = vmatprep.subr.bf16.mxu0 %v11528_v57 }
 0x144   : > { %11355 = vrot.lane.b32.xlu1 %v11354_v55, %s12936_s24  ;;  %s9327_s24 = scalar_lea.sflag [#allocation3], %s323_s17 }
 0x145   : > { %2384 = vmatpush2.bf16.msra.mxu0 %v11526_v56 }
 0x146   : > { %2482 = vmatprep.subr.bf16.mxu0 %v11537_v34 }
 0x1a2   : > { %v11321_v60 = vpop.permute.xlu0 %11320 }
 0x1a3   : > { %v11323_v61 = vunpack.i.h.bf16 %v11321_v60  ;;  %v11322_v13 = vunpack.i.l.bf16 %v11321_v60 }
 0x1a5   : > { %v1386_v62 = vsel %vm1383_vm5, %v11322_v13, %v11323_v61  ;;  %v1415_v6 = vmax.f32 %v1322_v54, %v11323_v61 }
 0x1a6   : > { %v11326_v43 = vpop.permute.xlu0 %11325  ;;  %v13735_v9 = vmax.f32 %v1321_v16, %v1386_v62 }
 0x1a7   : > { %v11328_v0 = vunpack.i.h.bf16 %v11326_v43  ;;  %v11327_v4 = vunpack.i.l.bf16 %v11326_v43  ;;  %v1454_v37 = vrot.slane %v1415_v6, 1 }
 0x1a8   : > { %v1451_v21 = vrot.slane %v13735_v9, 1 }
 0x1a9   : > { %v1419_v23 = vmax.f32 %v1326_v36, %v11328_v0  ;;  %v1389_v26 = vsel %vm1383_vm5, %v11327_v4, %v11328_v0 }
 0x1aa   : > { %v1418_v10 = vmax.f32 %v1325_v39, %v1389_v26  ;;  %v13742_v12 = vpop.permute.xlu1 %11330  ;;  %v11341_v25 = vpop.permute.xlu0 %11340 }
 0x1ab   : > { %v1455_v8 = vrot.slane %v1419_v23, 1  ;;  %v11333_v22 = vunpack.i.h.bf16 %v13742_v12  ;;  %v11332_v47 = vunpack.i.l.bf16 %v13742_v12  ;;  %v11343_v54 = vunpack.i.h.bf16 %v11341_v25 }
 0x1ac   : > { %v1452_v16 = vrot.slane %v1418_v10, 1  ;;  %v11342_v5 = vunpack.i.l.bf16 %v11341_v25 }
 0x1ad   : > { %v1423_v36 = vmax.f32 %v1330_v63, %v11333_v22  ;;  %v1392_v17 = vsel %vm1383_vm5, %v11332_v47, %v11333_v22  ;;  %v1388_v39 = vsel %vm1383_vm5, %v11343_v54, %v11327_v4  ;;  %v1456_v31 = vsel %vm709_vm3, %v1454_v37, %v1455_v8 }
 0x1ae   : > { %v1422_v30 = vmax.f32 %v1329_v53, %v1392_v17  ;;  %v13756_v32 = vmax.f32 %v1324_v51, %v1388_v39  ;;  %v11336_v42 = vpop.permute.xlu1 %11335  ;;  %v11346_v29 = vpop.permute.xlu0 %11345  ;;  %v1453_v44 = vsel %vm709_vm3, %v1451_v21, %v1452_v16  ;;  %v1385_v52 = vsel %vm1383_vm5, %v11342_v5, %v11322_v13 }
 0x1af   : > { %v1463_v41 = vrot.slane %v1423_v36, 1  ;;  %v11338_v63 = vunpack.i.h.bf16 %v11336_v42  ;;  %v13763_v55 = vmax.f32 %v1320_v1, %v1385_v52  ;;  %v11337_v40 = vunpack.i.l.bf16 %v11336_v42 }
 0x1b0   : > { %v1461_v48 = vrot.slane %v1422_v30, 1  ;;  %v1449_v18 = vrot.slane %v13756_v32, 1  ;;  %v11348_v53 = vunpack.i.h.bf16 %v11346_v29  ;;  %v11347_v56 = vunpack.i.l.bf16 %v11346_v29 }
 0x1b1   : > { %v1464_v27 = vsel %vm709_vm3, %v1455_v8, %v1463_v41  ;;  %v1427_v51 = vmax.f32 %v1334_v2, %v11338_v63  ;;  %v1448_v60 = vrot.slane %v13763_v55, 1  ;;  %v1395_v61 = vsel %vm1383_vm5, %v11337_v40, %v11338_v63 }
 0x1b2   : > { %v1462_v57 = vsel %vm709_vm3, %v1452_v16, %v1461_v48  ;;  %v1492_v34 = vmax.f32 %v1419_v23, %v1464_v27  ;;  %v11351_v13 = vpop.permute.xlu1 %11350  ;;  %v1488_v62 = vmax.f32 %v1415_v6, %v1456_v31  ;;  %v1426_v1 = vmax.f32 %v1333_v45, %v1395_v61 }
 0x1b3   : > { %v1471_v35 = vrot.slane %v1427_v51, 1  ;;  %v1387_v43 = vsel %vm1383_vm5, %v11348_v53, %v11343_v54  ;;  %v1487_v11 = vmax.f32 %v13735_v9, %v1453_v44  ;;  %v1491_v2 = vmax.f32 %v1418_v10, %v1462_v57  ;;  %v11523_v53 = vld [vmem:[%s16975_s3 + $0x488] ss:$16 sps:$4 sm:$0xff]  }
 0x1b4   : > { %v1416_v0 = vmax.f32 %v1323_v19, %v1387_v43  ;;  %v1384_v4 = vsel %vm1383_vm5, %v11347_v56, %v11342_v5  ;;  %v13778_v23 = vpack.c.bf16 %v1492_v34, %v1488_v62  ;;  %v1450_v26 = vsel %vm709_vm3, %v1448_v60, %v1449_v18 }
 0x1b5   : > { %v1469_v6 = vrot.slane %v1426_v1, 1  ;;  %v1472_v12 = vsel %vm709_vm3, %v1463_v41, %v1471_v35  ;;  %v1412_v25 = vmax.f32 %v1319_v24, %v1384_v4  ;;  %v11353_v8 = vunpack.i.h.bf16 %v11351_v13 }
 0x1b6   : > { %v1496_v15 = vmax.f32 %v1423_v36, %v1472_v12  ;;  %v1446_v45 = vrot.slane %v1416_v0, 1  ;;  %v11356_v9 = vpop.permute.xlu1 %11355  ;;  %v11352_v49 = vunpack.i.l.bf16 %v11351_v13  ;;  %v13800_v42 = vpack.c.bf16 %v1491_v2, %v1487_v11 }
 0x1b7   : > { %v1470_v10 = vsel %vm709_vm3, %v1461_v48, %v1469_v6  ;;  %v11358_v19 = vunpack.i.h.bf16 %v11356_v9  ;;  %v11357_v22 = vunpack.i.l.bf16 %v11356_v9  ;;  %v1445_v16 = vrot.slane %v1412_v25, 1  ;;  %v11534_v6 = vld [vmem:[%s16975_s3 + $0x44c] ss:$16 sps:$4 sm:$0xff]  }
 0x1b8   : > { %v1495_v54 = vmax.f32 %v1422_v30, %v1470_v10  ;;  %v13785_v37 = vpack.c.bf16 %v1496_v15, %v1496_v15  ;;  %v1394_v5 = vsel %vm1383_vm5, %v11353_v8, %v11337_v40  ;;  %v1391_v36 = vsel %vm1383_vm5, %v11352_v49, %v11332_v47  ;;  %v11540_v9 = vld [vmem:[%s16975_s3 + $0x42c] ss:$16 sps:$4 sm:$0xff]  }
 0x1b9   : > { %v1425_v21 = vmax.f32 %v1332_v28, %v1394_v5  ;;  %v1393_v14 = vsel %vm1383_vm5, %v11358_v19, %v11353_v8  ;;  %v1390_v24 = vsel %vm1383_vm5, %v11357_v22, %v11352_v49  ;;  %v1447_v17 = vsel %vm709_vm3, %v1445_v16, %v1446_v45  ;;  %v11549_v10 = vld [vmem:[%s16975_s3 + $0x64c] ss:$16 sps:$4 sm:$0xff]   ;;  %v11538_v49 = vld [vmem:[%s16975_s3 + $0x428] ss:$16 sps:$4 sm:$0xff]  }
 0x1ba   : > { %v1421_v39 = vmax.f32 %v1328_v38, %v1391_v36  ;;  %v1424_v31 = vmax.f32 %v1331_v3, %v1393_v14  ;;  %v1420_v30 = vmax.f32 %v1327_v46, %v1390_v24  ;;  %v1755_v28 = vrot.slane %v13778_v23, 1  ;;  %v11547_v19 = vld [vmem:[%s16975_s3 + $0x648] ss:$16 sps:$4 sm:$0xff]   ;;  %v11546_v22 = vld [vmem:[%s16975_s3 + $0x40c] ss:$16 sps:$4 sm:$0xff]  }
 0x1bb   : > { %v1467_v20 = vrot.slane %v1425_v21, 1  ;;  %v1756_v47 = vrot.slane %v13785_v37, 1  ;;  %v13804_v52 = vpack.c.bf16 %v1495_v54, %v1495_v54  ;;  %v1486_v7 = vmax.f32 %v13763_v55, %v1450_v26  ;;  %v11544_v16 = vld [vmem:[%s16975_s3 + $0x408] ss:$16 sps:$4 sm:$0xff]   ;;  %v11552_v21 = vld [vmem:[%s16975_s3 + $0x3ec] ss:$16 sps:$4 sm:$0xff]  }
 0x1bc   : > { %v1459_v29 = vrot.slane %v1421_v39, 1  ;;  %v1465_v44 = vrot.slane %v1424_v31, 1  ;;  %v1457_v41 = vrot.slane %v1420_v30, 1  ;;  %v1485_v38 = vmax.f32 %v1412_v25, %v1447_v17  ;;  %v11541_v25 = vld [vmem:[%s16975_s3 + $0x668] ss:$16 sps:$4 sm:$0xff]  }
 0x1bd   : > { %v1757_v50 = vsel %vm709_vm3, %v1755_v28, %v1756_v47  ;;  %v13808_v3 = vpack.c.bf16 %v1496_v15, %v1492_v34  ;;  %v1752_v56 = vrot.slane %v13800_v42, 1  ;;  %v13821_v57 = vpack.c.bf16 %v1495_v54, %v1491_v2  ;;  %v11529_v2 = vld [vmem:[%s16975_s3 + $0x468] ss:$16 sps:$4 sm:$0xff]   ;;  %v11543_v15 = vld [vmem:[%s16975_s3 + $0x66c] ss:$16 sps:$4 sm:$0xff]  }
 0x1be   : > { %v1460_v33 = vsel %vm709_vm3, %v1449_v18, %v1459_v29  ;;  %v1468_v46 = vsel %vm709_vm3, %v1459_v29, %v1467_v20  ;;  %v1458_v63 = vsel %vm709_vm3, %v1446_v45, %v1457_v41  ;;  %v1466_v48 = vsel %vm709_vm3, %v1457_v41, %v1465_v44  ;;  %9734 = vmatprep.mubr.msk.bf16.mxu1 %vm2337_vm6, %v1757_v50  ;;  %v11532_v45 = vld [vmem:[%s16975_s3 + $0x448] ss:$16 sps:$4 sm:$0xff]   ;;  %v11555_v54 = vld [vmem:[%s16975_s3 + $0x62c] ss:$16 sps:$4 sm:$0xff]  }
 0x1bf   : > { %v1490_v40 = vmax.f32 %v13756_v32, %v1460_v33  ;;  %v1494_v27 = vmax.f32 %v1421_v39, %v1468_v46  ;;  %v1489_v51 = vmax.f32 %v1416_v0, %v1458_v63  ;;  %v1493_v55 = vmax.f32 %v1420_v30, %v1466_v48  ;;  %v11531_v32 = vld [vmem:[%s16975_s3 + $0x46c] ss:$16 sps:$4 sm:$0xff]   ;;  %v11535_v0 = vld [vmem:[%s16975_s3 + $0x688] ss:$16 sps:$4 sm:$0xff]  }
 0x1c0   : > { %v1753_v18 = vrot.slane %v13804_v52, 1  ;;  %v11553_v5 = vld [vmem:[%s16975_s3 + $0x628] ss:$16 sps:$4 sm:$0xff]   ;;  %v11561_v36 = vld [vmem:[%s16975_s3 + $0x60c] ss:$16 sps:$4 sm:$0xff]  }
 0x1c1   : > { %v13823_v34 = vpack.c.bf16 %v1490_v40, %v1486_v7  ;;  %v13825_v60 = vpack.c.bf16 %v1489_v51, %v1485_v38  ;;  %v13827_v61 = vpack.c.bf16 %v1493_v55, %v1493_v55  ;;  %v13832_v13 = vpack.c.bf16 %v1494_v27, %v1494_v27  ;;  %v11550_v14 = vld [vmem:[%s16975_s3 + $0x3e8] ss:$16 sps:$4 sm:$0xff]   ;;  %v11558_v17 = vld [vmem:[%s16975_s3 + $0x3cc] ss:$16 sps:$4 sm:$0xff]  }
 0x1c2   : > { %v13835_v62 = vsel %vm709_vm3, %v1752_v56, %v1753_v18  ;;  %v13848_v4 = vpack.c.bf16 %v1494_v27, %v1490_v40  ;;  %v13867_v8 = vpack.c.bf16 %v1493_v55, %v1489_v51  ;;  %v11559_v24 = vld [vmem:[%s16975_s3 + $0x608] ss:$16 sps:$4 sm:$0xff]   ;;  %v11567_v39 = vld [vmem:[%s16975_s3 + $0x5ec] ss:$16 sps:$4 sm:$0xff]  }
 0x1c3   : > { %2429 = vmatmul.mubr.bf16.vlgmr.msra.gmra.mxu1 %v13835_v62  ;;  %v1749_v35 = vrot.slane %v13823_v34, 1  ;;  %v1750_v1 = vrot.slane %v13832_v13, 1  ;;  %v1746_v43 = vrot.slane %v13825_v60, 1  ;;  %v1747_v11 = vrot.slane %v13827_v61, 1  ;;  %v11556_v31 = vld [vmem:[%s16975_s3 + $0x3c8] ss:$16 sps:$4 sm:$0xff]  }
 0x1c4   : > { %2440 = vmatpush1.bf16.msra.mxu1 %v11523_v53  ;;  %v11565_v30 = vld [vmem:[%s16975_s3 + $0x5e8] ss:$16 sps:$4 sm:$0xff]   ;;  %v11564_v20 = vld [vmem:[%s16975_s3 + $0x3ac] ss:$16 sps:$4 sm:$0xff]  }
 0x1c5   : > { %2441 = vmatprep.subr.bf16.mxu1 %v11531_v32  ;;  %v1751_v26 = vsel %vm709_vm3, %v1749_v35, %v1750_v1  ;;  %v13855_v12 = vsel %vm709_vm3, %v1746_v43, %v1747_v11  ;;  %v11573_v28 = vld [vmem:[%s16975_s3 + $0x5cc] ss:$16 sps:$4 sm:$0xff]   ;;  %v11562_v47 = vld [vmem:[%s16975_s3 + $0x3a8] ss:$16 sps:$4 sm:$0xff]  }
 0x1c6   : > { %2385 = vmatprep.mubr.bf16.mxu0 %v1751_v26  ;;  %2471 = vmatprep.mubr.bf16.mxu1 %v1751_v26  ;;  %v11571_v29 = vld [vmem:[%s16975_s3 + $0x5c8] ss:$16 sps:$4 sm:$0xff]   ;;  %v11570_v44 = vld [vmem:[%s16975_s3 + $0x58c] ss:$16 sps:$4 sm:$0xff]  }
 0x1c7   : > { %2386 = vmatmul.mubr.bf16.vlgmr.msra.gmra.mxu0 %v13855_v12  ;;  %v11579_v41 = vld [vmem:[%s16975_s3 + $0x5ac] ss:$16 sps:$4 sm:$0xff]   ;;  %v11568_v7 = vld [vmem:[%s16975_s3 + $0x588] ss:$16 sps:$4 sm:$0xff]  }
 0x1c8   : > { %2442 = vmatpush1.bf16.msra.mxu1 %v11529_v2  ;;  %2483 = vmatpush1.bf16.msra.mxu0 %v11535_v0  ;;  %v11576_v38 = vld [vmem:[%s16975_s3 + $0x56c] ss:$16 sps:$4 sm:$0xff]   ;;  %v11585_v46 = vld [vmem:[%s16975_s3 + $0x728] ss:$16 sps:$4 sm:$0x3f]  }
 0x1c9   : > { %2443 = vmatprep.subr.bf16.mxu1 %v11534_v6  ;;  %9736 = vmatprep.mubr.msk.bf16.mxu0 %vm2337_vm6, %v1757_v50  ;;  %v11577_v50 = vld [vmem:[%s16975_s3 + $0x5a8] ss:$16 sps:$4 sm:$0xff]   ;;  %v11583_v33 = vld [vmem:[%s16975_s3 + $0x72c] ss:$16 sps:$4 sm:$0x3f]   ;;  %v2348_v40 = vsel %vm420_vm0, %v11585_v46, 0 }
 0x1ca   : > { %2484 = vmatprep.subr.bf16.mxu0 %v11543_v15  ;;  %v11574_v63 = vld [vmem:[%s16975_s3 + $0x568] ss:$16 sps:$4 sm:$0xff]   ;;  %v11582_v48 = vld [vmem:[%s16975_s3 + $0x54c] ss:$16 sps:$4 sm:$0xff]   ;;  %v11652_v46 = vld [vmem:[%s16975_s3] ss:$16 sps:$4 sm:$0xff]  }
 0x1cb   : > { %v11591_v27 = vld [vmem:[%s16975_s3 + $0x70c] ss:$16 sps:$4 sm:$0xff]   ;;  %v11580_v51 = vld [vmem:[%s16975_s3 + $0x548] ss:$16 sps:$4 sm:$0xff]  }
 0x1cc   : > { %2444 = vmatpush1.bf16.msra.mxu1 %v11532_v45  ;;  %2485 = vmatpush1.bf16.msra.mxu0 %v11541_v25  ;;  %v11589_v55 = vld [vmem:[%s16975_s3 + $0x708] ss:$16 sps:$4 sm:$0xff]   ;;  %v11588_v53 = vld [vmem:[%s16975_s3 + $0x52c] ss:$16 sps:$4 sm:$0xff]   ;;  %v11615_v45 = vld [vmem:[%s16975_s3 + $0xe4] ss:$16 sps:$4 sm:$0xff]  }
 0x1cd   : > { %2445 = vmatprep.subr.bf16.mxu1 %v11540_v9  ;;  %2486 = vmatprep.subr.bf16.mxu0 %v11549_v10  ;;  %v11597_v56 = vld [vmem:[%s16975_s3 + $0x6ec] ss:$16 sps:$4 sm:$0xff]   ;;  %v11586_v18 = vld [vmem:[%s16975_s3 + $0x528] ss:$16 sps:$4 sm:$0xff]   ;;  %v11613_v9 = vld [vmem:[%s16975_s3 + $0xe0] ss:$16 sps:$4 sm:$0xff]  }
 0x1ce   : > { %v11595_v32 = vld [vmem:[%s16975_s3 + $0x6e8] ss:$16 sps:$4 sm:$0xff]   ;;  %v11594_v35 = vld [vmem:[%s16975_s3 + $0x50c] ss:$16 sps:$4 sm:$0xff]  }
 0x1cf   : > { %v11603_v1 = vld [vmem:[%s16975_s3 + $0x6cc] ss:$16 sps:$4 sm:$0xff]   ;;  %v11592_v43 = vld [vmem:[%s16975_s3 + $0x508] ss:$16 sps:$4 sm:$0xff]  }
 0x1d0   : > { %2446 = vmatpush1.bf16.msra.mxu1 %v11538_v49  ;;  %2487 = vmatpush1.bf16.msra.mxu0 %v11547_v19  ;;  %v11601_v11 = vld [vmem:[%s16975_s3 + $0x6c8] ss:$16 sps:$4 sm:$0xff]   ;;  %v11600_v2 = vld [vmem:[%s16975_s3 + $0x4ec] ss:$16 sps:$4 sm:$0xff]   ;;  %v11618_v49 = vld [vmem:[%s16975_s3 + $0xc4] ss:$16 sps:$4 sm:$0xff]  }
 0x1d1   : > { %2447 = vmatprep.subr.bf16.mxu1 %v11546_v22  ;;  %2488 = vmatprep.subr.bf16.mxu0 %v11555_v54  ;;  %v11609_v0 = vld [vmem:[%s16975_s3 + $0x6ac] ss:$16 sps:$4 sm:$0xff]   ;;  %v11598_v26 = vld [vmem:[%s16975_s3 + $0x4e8] ss:$16 sps:$4 sm:$0xff]   ;;  %v11616_v22 = vld [vmem:[%s16975_s3 + $0xc0] ss:$16 sps:$4 sm:$0xff]  }
 0x1d2   : > { %v11607_v6 = vld [vmem:[%s16975_s3 + $0x6a8] ss:$16 sps:$4 sm:$0xff]   ;;  %v11606_v15 = vld [vmem:[%s16975_s3 + $0x4cc] ss:$16 sps:$4 sm:$0xff]   ;;  %v11621_v54 = vld [vmem:[%s16975_s3 + $0x2e4] ss:$16 sps:$4 sm:$0xff]  }
 0x1d3   : > { %v11604_v25 = vld [vmem:[%s16975_s3 + $0x4c8] ss:$16 sps:$4 sm:$0xff]   ;;  %v11612_v10 = vld [vmem:[%s16975_s3 + $0x4ac] ss:$16 sps:$4 sm:$0xff]  }
 0x1d4   : > { %2448 = vmatpush1.bf16.msra.mxu1 %v11544_v16  ;;  %2489 = vmatpush1.bf16.msra.mxu0 %v11553_v5  ;;  %v11610_v19 = vld [vmem:[%s16975_s3 + $0x4a8] ss:$16 sps:$4 sm:$0xff]   ;;  %v11619_v16 = vld [vmem:[%s16975_s3 + $0x2e0] ss:$16 sps:$4 sm:$0xff]  }
 0x1d5   : > { %2449 = vmatprep.subr.bf16.mxu1 %v11552_v21  ;;  %2490 = vmatprep.subr.bf16.mxu0 %v11561_v36  ;;  %v11622_v5 = vld [vmem:[%s16975_s3 + $0xa0] ss:$16 sps:$4 sm:$0xff]   ;;  %v11627_v21 = vld [vmem:[%s16975_s3 + $0x2c4] ss:$16 sps:$4 sm:$0xff]  }
 0x1d6   : > { %v11630_v36 = vld [vmem:[%s16975_s3 + $0x84] ss:$16 sps:$4 sm:$0xff]  }
 0x1d8   : > { %2450 = vmatpush1.bf16.msra.mxu1 %v11550_v14  ;;  %2491 = vmatpush1.bf16.msra.mxu0 %v11559_v24  ;;  %v11625_v14 = vld [vmem:[%s16975_s3 + $0x2c0] ss:$16 sps:$4 sm:$0xff]  }
 0x1d9   : > { %2451 = vmatprep.subr.bf16.mxu1 %v11558_v17  ;;  %2492 = vmatprep.subr.bf16.mxu0 %v11567_v39  ;;  %v11628_v24 = vld [vmem:[%s16975_s3 + $0x80] ss:$16 sps:$4 sm:$0xff]   ;;  %v11633_v17 = vld [vmem:[%s16975_s3 + $0x2a4] ss:$16 sps:$4 sm:$0xff]  }
 0x1da   : > { %v11631_v39 = vld [vmem:[%s16975_s3 + $0x2a0] ss:$16 sps:$4 sm:$0xff]  }
 0x1dc   : > { %2452 = vmatpush1.bf16.msra.mxu1 %v11556_v31  ;;  %2493 = vmatpush1.bf16.msra.mxu0 %v11565_v30  ;;  %v11634_v31 = vld [vmem:[%s16975_s3 + $0x60] ss:$16 sps:$4 sm:$0xff]   ;;  %v11639_v30 = vld [vmem:[%s16975_s3 + $0x284] ss:$16 sps:$4 sm:$0xff]  }
 0x1dd   : > { %2453 = vmatprep.subr.bf16.mxu1 %v11564_v20  ;;  %2494 = vmatprep.subr.bf16.mxu0 %v11573_v28  ;;  %v11642_v20 = vld [vmem:[%s16975_s3 + $0x44] ss:$16 sps:$4 sm:$0xff]   ;;  %v11637_v28 = vld [vmem:[%s16975_s3 + $0x280] ss:$16 sps:$4 sm:$0xff]  }
 0x1e0   : > { %2454 = vmatpush1.bf16.msra.mxu1 %v11562_v47  ;;  %2495 = vmatpush1.bf16.msra.mxu0 %v11571_v29  ;;  %v11640_v47 = vld [vmem:[%s16975_s3 + $0x40] ss:$16 sps:$4 sm:$0xff]   ;;  %v11645_v29 = vld [vmem:[%s16975_s3 + $0x264] ss:$16 sps:$4 sm:$0xff]  }
 0x1e1   : > { %2455 = vmatprep.subr.bf16.mxu1 %v11570_v44  ;;  %2496 = vmatprep.subr.bf16.mxu0 %v11579_v41  ;;  %v11648_v44 = vld [vmem:[%s16975_s3 + $0x24] ss:$16 sps:$4 sm:$0xff]   ;;  %v11643_v41 = vld [vmem:[%s16975_s3 + $0x260] ss:$16 sps:$4 sm:$0xff]  }
 0x1e4   : > { %2456 = vmatpush2.bf16.msra.mxu1 %v11568_v7  ;;  %2497 = vmatpush1.bf16.msra.mxu0 %v11577_v50  ;;  %v11646_v7 = vld [vmem:[%s16975_s3 + $0x20] ss:$16 sps:$4 sm:$0xff]   ;;  %v11654_v50 = vld [vmem:[%s16975_s3 + $0x4] ss:$16 sps:$4 sm:$0xff]  }
 0x1e5   : > { %2457 = vmatprep.subr.bf16.mxu1 %v11576_v38  ;;  %9735 = vmatprep.subr.msk.bf16.mxu0 %vm420_vm0, %v11583_v33  ;;  %v11651_v38 = vld [vmem:[%s16975_s3 + $0x244] ss:$16 sps:$4 sm:$0xff]   ;;  %v11649_v33 = vld [vmem:[%s16975_s3 + $0x240] ss:$16 sps:$4 sm:$0xff]  }
 0x1e8   : > { %2458 = vmatpush2.bf16.msra.mxu1 %v11574_v63  ;;  %2505 = vmatpush2.bf16.msra.mxu0 %v2348_v40  ;;  %v11657_v63 = vld [vmem:[%s16975_s3 + $0x224] ss:$16 sps:$4 sm:$0xff]   ;;  %v11655_v40 = vld [vmem:[%s16975_s3 + $0x220] ss:$16 sps:$4 sm:$0xff]  }
 0x1e9   : > { %2459 = vmatprep.subr.bf16.mxu1 %v11582_v48  ;;  %2506 = vmatprep.subr.bf16.mxu0 %v11591_v27  ;;  %v11660_v48 = vld [vmem:[%s16975_s3 + $0x1e4] ss:$16 sps:$4 sm:$0xff]   ;;  %v11658_v27 = vld [vmem:[%s16975_s3 + $0x1e0] ss:$16 sps:$4 sm:$0xff]  }
 0x1ec   : > { %2460 = vmatpush2.bf16.msra.mxu1 %v11580_v51  ;;  %2507 = vmatpush2.bf16.msra.mxu0 %v11589_v55  ;;  %v11663_v51 = vld [vmem:[%s16975_s3 + $0x204] ss:$16 sps:$4 sm:$0xff]  }
 0x1ed   : > { %2461 = vmatprep.subr.bf16.mxu1 %v11588_v53  ;;  %2508 = vmatprep.subr.bf16.mxu0 %v11597_v56  ;;  %v11666_v55 = vld [vmem:[%s16975_s3 + $0x1c4] ss:$16 sps:$4 sm:$0xff]   ;;  %v11661_v53 = vld [vmem:[%s16975_s3 + $0x200] ss:$16 sps:$4 sm:$0xff]  }
 0x1ee   : > { %v11664_v56 = vld [vmem:[%s16975_s3 + $0x1c0] ss:$16 sps:$4 sm:$0xff]  }
 0x1f0   : > { %2462 = vmatpush2.bf16.msra.mxu1 %v11586_v18  ;;  %2509 = vmatpush2.bf16.msra.mxu0 %v11595_v32  ;;  %v11667_v18 = vld [vmem:[%s16975_s3 + $0x384] ss:$16 sps:$4 sm:$0x3f]   ;;  %v11669_v32 = vld [vmem:[%s16975_s3 + $0x380] ss:$16 sps:$4 sm:$0x3f]  }
 0x1f1   : > { %2463 = vmatprep.subr.bf16.mxu1 %v11594_v35  ;;  %2510 = vmatprep.subr.bf16.mxu0 %v11603_v1  ;;  %v11672_v35 = vld [vmem:[%s16975_s3 + $0x1a4] ss:$16 sps:$4 sm:$0xff]   ;;  %v3105_v1 = vsel %vm420_vm0, %v11669_v32, 0  ;;  %v11736_v32 = vld [vmem:[%s16975_s3 + $0x8] ss:$16 sps:$4 sm:$0xff]  }
 0x1f4   : > { %2464 = vmatpush2.bf16.msra.mxu1 %v11592_v43  ;;  %2511 = vmatpush2.bf16.msra.mxu0 %v11601_v11  ;;  %v11670_v43 = vld [vmem:[%s16975_s3 + $0x1a0] ss:$16 sps:$4 sm:$0xff]   ;;  %v11675_v11 = vld [vmem:[%s16975_s3 + $0x364] ss:$16 sps:$4 sm:$0xff]  }
 0x1f5   : > { %2465 = vmatprep.subr.bf16.mxu1 %v11600_v2  ;;  %2512 = vmatprep.subr.bf16.mxu0 %v11609_v0  ;;  %v11678_v2 = vld [vmem:[%s16975_s3 + $0x184] ss:$16 sps:$4 sm:$0xff]   ;;  %v11673_v0 = vld [vmem:[%s16975_s3 + $0x360] ss:$16 sps:$4 sm:$0xff]  }
 0x1f8   : > { %2466 = vmatpush2.bf16.msra.mxu1 %v11598_v26  ;;  %2513 = vmatpush2.bf16.msra.mxu0 %v11607_v6  ;;  %v11676_v26 = vld [vmem:[%s16975_s3 + $0x180] ss:$16 sps:$4 sm:$0xff]   ;;  %v11681_v6 = vld [vmem:[%s16975_s3 + $0x344] ss:$16 sps:$4 sm:$0xff]  }
 0x1f9   : > { %2467 = vmatprep.subr.bf16.mxu1 %v11606_v15  ;;  %3116 = vmatprep.subr.bf16.mxu0 %v11615_v45  ;;  %v11684_v15 = vld [vmem:[%s16975_s3 + $0x164] ss:$16 sps:$4 sm:$0xff]   ;;  %v11679_v45 = vld [vmem:[%s16975_s3 + $0x340] ss:$16 sps:$4 sm:$0xff]  }
 0x1fb   : > { %2515 = vmatmul.mubr.bf16.vlgmr.msra.gmra.mxu0 %v13835_v62  ;;  %v11624_v62 = vld [vmem:[%s16975_s3 + $0xa4] ss:$16 sps:$4 sm:$0xff]  }
 0x1fc   : > { %2468 = vmatpush2.bf16.msra.mxu1 %v11604_v25  ;;  %3117 = vmatpush1.bf16.msra.mxu0 %v11613_v9  ;;  %v11682_v25 = vld [vmem:[%s16975_s3 + $0x160] ss:$16 sps:$4 sm:$0xff]   ;;  %v11687_v9 = vld [vmem:[%s16975_s3 + $0x324] ss:$16 sps:$4 sm:$0xff]  }
 0x1fd   : > { %2469 = vmatprep.subr.bf16.mxu1 %v11612_v10  ;;  %3148 = vmatprep.mubr.bf16.mxu0 %v13823_v34  ;;  %v11690_v10 = vld [vmem:[%s16975_s3 + $0x144] ss:$16 sps:$4 sm:$0xff]  }
 0x1fe   : > { %3118 = vmatprep.subr.bf16.mxu0 %v11618_v49  ;;  %v11685_v49 = vld [vmem:[%s16975_s3 + $0x320] ss:$16 sps:$4 sm:$0xff]  }
 0x200   : > { %2470 = vmatpush2.bf16.msra.mxu1 %v11610_v19  ;;  %3119 = vmatpush1.bf16.msra.mxu0 %v11616_v22  ;;  %v11688_v19 = vld [vmem:[%s16975_s3 + $0x140] ss:$16 sps:$4 sm:$0xff]   ;;  %v11693_v22 = vld [vmem:[%s16975_s3 + $0x304] ss:$16 sps:$4 sm:$0xff]  }
 0x201   : > { %3159 = vmatprep.subr.bf16.mxu1 %v11621_v54  ;;  %3120 = vmatprep.subr.bf16.mxu0 %v11624_v62  ;;  %v11696_v54 = vld [vmem:[%s16975_s3 + $0x124] ss:$16 sps:$4 sm:$0xff]   ;;  %v11691_v62 = vld [vmem:[%s16975_s3 + $0x300] ss:$16 sps:$4 sm:$0xff]  }
 0x203   : > { %2472 = vmatmul.mubr.bf16.vlgmr.msra.gmra.mxu1 %v13855_v12  ;;  %v11636_v12 = vld [vmem:[%s16975_s3 + $0x64] ss:$16 sps:$4 sm:$0xff]  }
 0x204   : > { %3160 = vmatpush1.bf16.msra.mxu1 %v11619_v16  ;;  %9854 = vmatprep.mubr.msk.bf16.mxu1 %vm2337_vm6, %v13778_v23  ;;  %v11694_v16 = vld [vmem:[%s16975_s3 + $0x120] ss:$16 sps:$4 sm:$0xff]  }
 0x205   : > { %3161 = vmatprep.subr.bf16.mxu1 %v11627_v21  ;;  %3121 = vmatpush1.bf16.msra.mxu0 %v11622_v5  ;;  %v11699_v5 = vld [vmem:[%s16975_s3 + $0xec] ss:$16 sps:$4 sm:$0xff]   ;;  %v11702_v21 = vld [vmem:[%s16975_s3 + $0x104] ss:$16 sps:$4 sm:$0xff]  }
 0x206   : > { %3122 = vmatprep.subr.bf16.mxu0 %v11630_v36  ;;  %v11697_v36 = vld [vmem:[%s16975_s3 + $0xe8] ss:$16 sps:$4 sm:$0xff]  }
 0x208   : > { %3162 = vmatpush1.bf16.msra.mxu1 %v11625_v14  ;;  %v11700_v14 = vld [vmem:[%s16975_s3 + $0x100] ss:$16 sps:$4 sm:$0xff]  }
 0x209   : > { %3163 = vmatprep.subr.bf16.mxu1 %v11633_v17  ;;  %3123 = vmatpush1.bf16.msra.mxu0 %v11628_v24  ;;  %v11705_v24 = vld [vmem:[%s16975_s3 + $0xcc] ss:$16 sps:$4 sm:$0xff]  }
 0x20a   : > { %3124 = vmatprep.subr.bf16.mxu0 %v11636_v12  ;;  %v11711_v17 = vld [vmem:[%s16975_s3 + $0x2ec] ss:$16 sps:$4 sm:$0xff]   ;;  %v11703_v12 = vld [vmem:[%s16975_s3 + $0xc8] ss:$16 sps:$4 sm:$0xff]  }
 0x20c   : > { %3164 = vmatpush1.bf16.msra.mxu1 %v11631_v39  ;;  %v11708_v39 = vld [vmem:[%s16975_s3 + $0xac] ss:$16 sps:$4 sm:$0xff]  }
 0x20d   : > { %3165 = vmatprep.subr.bf16.mxu1 %v11639_v30  ;;  %3125 = vmatpush1.bf16.msra.mxu0 %v11634_v31  ;;  %v11709_v31 = vld [vmem:[%s16975_s3 + $0x2e8] ss:$16 sps:$4 sm:$0xff]   ;;  %v11717_v30 = vld [vmem:[%s16975_s3 + $0x2cc] ss:$16 sps:$4 sm:$0xff]  }
 0x20e   : > { %3126 = vmatprep.subr.bf16.mxu0 %v11642_v20  ;;  %v11706_v20 = vld [vmem:[%s16975_s3 + $0xa8] ss:$16 sps:$4 sm:$0xff]  }
 0x210   : > { %3166 = vmatpush1.bf16.msra.mxu1 %v11637_v28  ;;  %v11714_v28 = vld [vmem:[%s16975_s3 + $0x8c] ss:$16 sps:$4 sm:$0xff]  }
 0x211   : > { %3167 = vmatprep.subr.bf16.mxu1 %v11645_v29  ;;  %3127 = vmatpush1.bf16.msra.mxu0 %v11640_v47  ;;  %v11715_v47 = vld [vmem:[%s16975_s3 + $0x2c8] ss:$16 sps:$4 sm:$0xff]   ;;  %v11723_v29 = vld [vmem:[%s16975_s3 + $0x2ac] ss:$16 sps:$4 sm:$0xff]  }
 0x212   : > { %3128 = vmatprep.subr.bf16.mxu0 %v11648_v44  ;;  %v11712_v44 = vld [vmem:[%s16975_s3 + $0x88] ss:$16 sps:$4 sm:$0xff]  }
 0x214   : > { %3168 = vmatpush1.bf16.msra.mxu1 %v11643_v41  ;;  %v11720_v41 = vld [vmem:[%s16975_s3 + $0x6c] ss:$16 sps:$4 sm:$0xff]  }
 0x215   : > { %3169 = vmatprep.subr.bf16.mxu1 %v11651_v38  ;;  %3129 = vmatpush1.bf16.msra.mxu0 %v11646_v7  ;;  %v11721_v7 = vld [vmem:[%s16975_s3 + $0x2a8] ss:$16 sps:$4 sm:$0xff]   ;;  %v11729_v38 = vld [vmem:[%s16975_s3 + $0x28c] ss:$16 sps:$4 sm:$0xff]  }
 0x216   : > { %3130 = vmatprep.subr.bf16.mxu0 %v11654_v50  ;;  %v11718_v50 = vld [vmem:[%s16975_s3 + $0x68] ss:$16 sps:$4 sm:$0xff]  }
 0x218   : > { %3170 = vmatpush1.bf16.msra.mxu1 %v11649_v33  ;;  %v11726_v33 = vld [vmem:[%s16975_s3 + $0x4c] ss:$16 sps:$4 sm:$0xff]  }
 0x219   : > { %3171 = vmatprep.subr.bf16.mxu1 %v11657_v63  ;;  %3131 = vmatpush1.bf16.msra.mxu0 %v11652_v46  ;;  %v11727_v46 = vld [vmem:[%s16975_s3 + $0x288] ss:$16 sps:$4 sm:$0xff]   ;;  %v11735_v63 = vld [vmem:[%s16975_s3 + $0x26c] ss:$16 sps:$4 sm:$0xff]  }
 0x21a   : > { %3132 = vmatprep.subr.bf16.mxu0 %v11660_v48  ;;  %v11724_v48 = vld [vmem:[%s16975_s3 + $0x48] ss:$16 sps:$4 sm:$0xff]  }
 0x21c   : > { %3172 = vmatpush1.bf16.msra.mxu1 %v11655_v40  ;;  %v11732_v40 = vld [vmem:[%s16975_s3 + $0x2c] ss:$16 sps:$4 sm:$0xff]  }
 0x21d   : > { %3173 = vmatprep.subr.bf16.mxu1 %v11663_v51  ;;  %3133 = vmatpush2.bf16.msra.mxu0 %v11658_v27  ;;  %v11733_v27 = vld [vmem:[%s16975_s3 + $0x268] ss:$16 sps:$4 sm:$0xff]   ;;  %v11741_v51 = vld [vmem:[%s16975_s3 + $0x24c] ss:$16 sps:$4 sm:$0xff]  }
 0x21e   : > { %3134 = vmatprep.subr.bf16.mxu0 %v11666_v55  ;;  %v11730_v55 = vld [vmem:[%s16975_s3 + $0x28] ss:$16 sps:$4 sm:$0xff]  }
 0x220   : > { %3174 = vmatpush1.bf16.msra.mxu1 %v11661_v53  ;;  %v11738_v53 = vld [vmem:[%s16975_s3 + $0xc] ss:$16 sps:$4 sm:$0xff]  }
 0x221   : > { %9853 = vmatprep.subr.msk.bf16.mxu1 %vm420_vm0, %v11667_v18  ;;  %3135 = vmatpush2.bf16.msra.mxu0 %v11664_v56  ;;  %v11739_v56 = vld [vmem:[%s16975_s3 + $0x248] ss:$16 sps:$4 sm:$0xff]   ;;  %v11747_v18 = vld [vmem:[%s16975_s3 + $0x22c] ss:$16 sps:$4 sm:$0xff]  }
 0x222   : > { %3136 = vmatprep.subr.bf16.mxu0 %v11672_v35  ;;  %v11744_v35 = vld [vmem:[%s16975_s3 + $0x1ec] ss:$16 sps:$4 sm:$0xff]  }
 0x224   : > { %3182 = vmatpush2.bf16.msra.mxu1 %v3105_v1  ;;  %v11745_v1 = vld [vmem:[%s16975_s3 + $0x228] ss:$16 sps:$4 sm:$0xff]  }
 0x225   : > { %3183 = vmatprep.subr.bf16.mxu1 %v11675_v11  ;;  %3137 = vmatpush2.bf16.msra.mxu0 %v11670_v43  ;;  %v11753_v43 = vld [vmem:[%s16975_s3 + $0x20c] ss:$16 sps:$4 sm:$0xff]   ;;  %v11742_v11 = vld [vmem:[%s16975_s3 + $0x1e8] ss:$16 sps:$4 sm:$0xff]  }
 0x226   : > { %3138 = vmatprep.subr.bf16.mxu0 %v11678_v2  ;;  %v11750_v2 = vld [vmem:[%s16975_s3 + $0x1cc] ss:$16 sps:$4 sm:$0xff]  }
 0x228   : > { %3184 = vmatpush2.bf16.msra.mxu1 %v11673_v0  ;;  %v11751_v0 = vld [vmem:[%s16975_s3 + $0x208] ss:$16 sps:$4 sm:$0xff]  }
 0x229   : > { %3185 = vmatprep.subr.bf16.mxu1 %v11681_v6  ;;  %3139 = vmatpush2.bf16.msra.mxu0 %v11676_v26  ;;  %v11757_v26 = vld [vmem:[%s16975_s3 + $0x38c] ss:$16 sps:$4 sm:$0x3f]   ;;  %v11759_v6 = vld [vmem:[%s16975_s3 + $0x388] ss:$16 sps:$4 sm:$0x3f]  }
 0x22a   : > { %3140 = vmatprep.subr.bf16.mxu0 %v11684_v15  ;;  %v11748_v15 = vld [vmem:[%s16975_s3 + $0x1c8] ss:$16 sps:$4 sm:$0xff]  }
 0x22c   : > { %3186 = vmatpush2.bf16.msra.mxu1 %v11679_v45  ;;  %v11756_v45 = vld [vmem:[%s16975_s3 + $0x1ac] ss:$16 sps:$4 sm:$0xff]  }
 0x22d   : > { %3187 = vmatprep.subr.bf16.mxu1 %v11687_v9  ;;  %3141 = vmatpush2.bf16.msra.mxu0 %v11682_v25  ;;  %v3111_v25 = vsel %vm420_vm0, %v11759_v6, 0  ;;  %v11765_v9 = vld [vmem:[%s16975_s3 + $0x36c] ss:$16 sps:$4 sm:$0xff]   ;;  %v11822_v6 = vld [vmem:[%s16975_s3 + $0x764] ss:$16 sps:$4 sm:$0xff]  }
 0x22e   : > { %3142 = vmatprep.subr.bf16.mxu0 %v11690_v10  ;;  %v11754_v10 = vld [vmem:[%s16975_s3 + $0x1a8] ss:$16 sps:$4 sm:$0xff]  }
 0x230   : > { %3188 = vmatpush2.bf16.msra.mxu1 %v11685_v49  ;;  %v11762_v49 = vld [vmem:[%s16975_s3 + $0x18c] ss:$16 sps:$4 sm:$0xff]  }
 0x231   : > { %3189 = vmatprep.subr.bf16.mxu1 %v11693_v22  ;;  %3143 = vmatpush2.bf16.msra.mxu0 %v11688_v19  ;;  %v11763_v19 = vld [vmem:[%s16975_s3 + $0x368] ss:$16 sps:$4 sm:$0xff]   ;;  %v11771_v22 = vld [vmem:[%s16975_s3 + $0x34c] ss:$16 sps:$4 sm:$0xff]  }
 0x232   : > { %3144 = vmatprep.subr.bf16.mxu0 %v11696_v54  ;;  %v11760_v54 = vld [vmem:[%s16975_s3 + $0x188] ss:$16 sps:$4 sm:$0xff]  }
 0x234   : > { %3190 = vmatpush2.bf16.msra.mxu1 %v11691_v62  ;;  %v11768_v62 = vld [vmem:[%s16975_s3 + $0x16c] ss:$16 sps:$4 sm:$0xff]  }
 0x235   : > { %3202 = vmatprep.subr.bf16.mxu1 %v11699_v5  ;;  %3145 = vmatpush2.bf16.msra.mxu0 %v11694_v16  ;;  %v11769_v16 = vld [vmem:[%s16975_s3 + $0x348] ss:$16 sps:$4 sm:$0xff]   ;;  %v11777_v5 = vld [vmem:[%s16975_s3 + $0x32c] ss:$16 sps:$4 sm:$0xff]  }
 0x236   : > { %3146 = vmatprep.subr.bf16.mxu0 %v11702_v21  ;;  %v11766_v21 = vld [vmem:[%s16975_s3 + $0x168] ss:$16 sps:$4 sm:$0xff]  }
 0x237   : > { %3192 = vmatmul.mubr.bf16.vlgmr.msra.gmra.mxu1 %v13800_v42 }
 0x238   : > { %3203 = vmatpush1.bf16.msra.mxu1 %v11697_v36  ;;  %3234 = vmatprep.mubr.bf16.mxu1 %v13823_v34  ;;  %v11774_v36 = vld [vmem:[%s16975_s3 + $0x14c] ss:$16 sps:$4 sm:$0xff]  }
 0x239   : > { %3204 = vmatprep.subr.bf16.mxu1 %v11705_v24  ;;  %3147 = vmatpush2.bf16.msra.mxu0 %v11700_v14  ;;  %v11775_v14 = vld [vmem:[%s16975_s3 + $0x328] ss:$16 sps:$4 sm:$0xff]   ;;  %v11783_v24 = vld [vmem:[%s16975_s3 + $0x30c] ss:$16 sps:$4 sm:$0xff]  }
 0x23a   : > { %3245 = vmatprep.subr.bf16.mxu0 %v11711_v17  ;;  %v11772_v17 = vld [vmem:[%s16975_s3 + $0x148] ss:$16 sps:$4 sm:$0xff]  }
 0x23c   : > { %3205 = vmatpush1.bf16.msra.mxu1 %v11703_v12  ;;  %3149 = vmatmul.mubr.bf16.vlgmr.msra.gmra.mxu0 %v13825_v60  ;;  %v11780_v12 = vld [vmem:[%s16975_s3 + $0x12c] ss:$16 sps:$4 sm:$0xff]  }
 0x23d   : > { %3206 = vmatprep.subr.bf16.mxu1 %v11708_v39  ;;  %3246 = vmatpush1.bf16.msra.mxu0 %v11709_v31  ;;  %v11781_v39 = vld [vmem:[%s16975_s3 + $0x308] ss:$16 sps:$4 sm:$0xff]   ;;  %v11789_v31 = vld [vmem:[%s16975_s3 + $0x824] ss:$16 sps:$4 sm:$0xff]  }
 0x23e   : > { %9856 = vmatprep.mubr.msk.bf16.mxu0 %vm2337_vm6, %v13778_v23  ;;  %3247 = vmatprep.subr.bf16.mxu0 %v11717_v30  ;;  %v11778_v30 = vld [vmem:[%s16975_s3 + $0x128] ss:$16 sps:$4 sm:$0xff]  }
 0x240   : > { %3207 = vmatpush1.bf16.msra.mxu1 %v11706_v20  ;;  %v11786_v20 = vld [vmem:[%s16975_s3 + $0x10c] ss:$16 sps:$4 sm:$0xff]  }
 0x241   : > { %3208 = vmatprep.subr.bf16.mxu1 %v11714_v28  ;;  %3248 = vmatpush1.bf16.msra.mxu0 %v11715_v47  ;;  %v11787_v28 = vld [vmem:[%s16975_s3 + $0x820] ss:$16 sps:$4 sm:$0xff]   ;;  %v3408_v47 = vrot.slane %v13823_v34, 2 }
 0x242   : > { %3249 = vmatprep.subr.bf16.mxu0 %v11723_v29  ;;  %v3409_v29 = vrot.slane %v13832_v13, 2 }
 0x244   : > { %3209 = vmatpush1.bf16.msra.mxu1 %v11712_v44  ;;  %v11792_v44 = vld [vmem:[%s16975_s3 + $0x804] ss:$16 sps:$4 sm:$0xff]  }
 0x245   : > { %3210 = vmatprep.subr.bf16.mxu1 %v11720_v41  ;;  %3250 = vmatpush1.bf16.msra.mxu0 %v11721_v7  ;;  %v11784_v41 = vld [vmem:[%s16975_s3 + $0x108] ss:$16 sps:$4 sm:$0xff]   ;;  %v14391_v7 = vsel %vm420_vm0, %v3408_v47, %v3409_v29  ;;  %v11840_v47 = vld [vmem:[%s16975_s3 + $0x904] ss:$16 sps:$4 sm:$0xff]   ;;  %v11835_v29 = vld [vmem:[%s16975_s3 + $0x940] ss:$16 sps:$4 sm:$0xff]  }
 0x246   : > { %3251 = vmatprep.subr.bf16.mxu0 %v11729_v38  ;;  %v11790_v38 = vld [vmem:[%s16975_s3 + $0x800] ss:$16 sps:$4 sm:$0xff]  }
 0x248   : > { %3211 = vmatpush1.bf16.msra.mxu1 %v11718_v50  ;;  %v11795_v50 = vld [vmem:[%s16975_s3 + $0xa24] ss:$16 sps:$4 sm:$0xff]  }
 0x249   : > { %3212 = vmatprep.subr.bf16.mxu1 %v11726_v33  ;;  %3252 = vmatpush1.bf16.msra.mxu0 %v11727_v46  ;;  %v11798_v33 = vld [vmem:[%s16975_s3 + $0x7e4] ss:$16 sps:$4 sm:$0xff]   ;;  %v3415_v46 = vrot.slane %v13785_v37, 2 }
 0x24a   : > { %3253 = vmatprep.subr.bf16.mxu0 %v11735_v63  ;;  %v11793_v63 = vld [vmem:[%s16975_s3 + $0xa20] ss:$16 sps:$4 sm:$0xff]  }
 0x24c   : > { %3213 = vmatpush1.bf16.msra.mxu1 %v11724_v48  ;;  %v3414_v48 = vrot.slane %v13778_v23, 2 }
 0x24d   : > { %3214 = vmatprep.subr.bf16.mxu1 %v11732_v40  ;;  %3254 = vmatpush1.bf16.msra.mxu0 %v11733_v27  ;;  %v11796_v40 = vld [vmem:[%s16975_s3 + $0x7e0] ss:$16 sps:$4 sm:$0xff]   ;;  %v11801_v27 = vld [vmem:[%s16975_s3 + $0xa04] ss:$16 sps:$4 sm:$0xff]  }
 0x24e   : > { %3255 = vmatprep.subr.bf16.mxu0 %v11741_v51  ;;  %v11804_v51 = vld [vmem:[%s16975_s3 + $0x7c4] ss:$16 sps:$4 sm:$0xff]  }
 0x250   : > { %3215 = vmatpush1.bf16.msra.mxu1 %v11730_v55  ;;  %v14419_v55 = vsel %vm420_vm0, %v3414_v48, %v3415_v46  ;;  %v11844_v46 = vld [vmem:[%s16975_s3 + $0x8e0] ss:$16 sps:$4 sm:$0xff]   ;;  %v11852_v48 = vld [vmem:[%s16975_s3 + $0x8c4] ss:$16 sps:$4 sm:$0xff]  }
 0x251   : > { %3216 = vmatprep.subr.bf16.mxu1 %v11738_v53  ;;  %3256 = vmatpush1.bf16.msra.mxu0 %v11739_v56  ;;  %v11799_v53 = vld [vmem:[%s16975_s3 + $0xa00] ss:$16 sps:$4 sm:$0xff]  }
 0x252   : > { %3257 = vmatprep.subr.bf16.mxu0 %v11747_v18  ;;  %v11802_v56 = vld [vmem:[%s16975_s3 + $0x7c0] ss:$16 sps:$4 sm:$0xff]   ;;  %v11807_v18 = vld [vmem:[%s16975_s3 + $0x9e4] ss:$16 sps:$4 sm:$0xff]  }
 0x254   : > { %3217 = vmatpush1.bf16.msra.mxu1 %v11736_v32  ;;  %v11810_v32 = vld [vmem:[%s16975_s3 + $0x7a4] ss:$16 sps:$4 sm:$0xff]  }
 0x255   : > { %3218 = vmatprep.subr.bf16.mxu1 %v11744_v35  ;;  %3258 = vmatpush1.bf16.msra.mxu0 %v11745_v1  ;;  %v11805_v35 = vld [vmem:[%s16975_s3 + $0x9e0] ss:$16 sps:$4 sm:$0xff]  }
 0x256   : > { %3259 = vmatprep.subr.bf16.mxu0 %v11753_v43  ;;  %v11808_v1 = vld [vmem:[%s16975_s3 + $0x7a0] ss:$16 sps:$4 sm:$0xff]   ;;  %v11813_v43 = vld [vmem:[%s16975_s3 + $0x9c4] ss:$16 sps:$4 sm:$0xff]  }
 0x258   : > { %3219 = vmatpush2.bf16.msra.mxu1 %v11742_v11  ;;  %v11816_v11 = vld [vmem:[%s16975_s3 + $0x784] ss:$16 sps:$4 sm:$0xff]  }
 0x259   : > { %3220 = vmatprep.subr.bf16.mxu1 %v11750_v2  ;;  %3260 = vmatpush1.bf16.msra.mxu0 %v11751_v0  ;;  %v11811_v2 = vld [vmem:[%s16975_s3 + $0x9c0] ss:$16 sps:$4 sm:$0xff]  }
 0x25a   : > { %9855 = vmatprep.subr.msk.bf16.mxu0 %vm420_vm0, %v11757_v26  ;;  %v11814_v0 = vld [vmem:[%s16975_s3 + $0x780] ss:$16 sps:$4 sm:$0xff]   ;;  %v11819_v26 = vld [vmem:[%s16975_s3 + $0x9a4] ss:$16 sps:$4 sm:$0xff]  }
 0x25c   : > { %3221 = vmatpush2.bf16.msra.mxu1 %v11748_v15 }
 0x25d   : > { %3222 = vmatprep.subr.bf16.mxu1 %v11756_v45  ;;  %3268 = vmatpush2.bf16.msra.mxu0 %v3111_v25  ;;  %v11817_v45 = vld [vmem:[%s16975_s3 + $0x9a0] ss:$16 sps:$4 sm:$0xff]  }
 0x25e   : > { %3269 = vmatprep.subr.bf16.mxu0 %v11765_v9  ;;  %v11820_v9 = vld [vmem:[%s16975_s3 + $0x760] ss:$16 sps:$4 sm:$0xff]  }
 0x260   : > { %3223 = vmatpush2.bf16.msra.mxu1 %v11754_v10  ;;  %v11825_v10 = vld [vmem:[%s16975_s3 + $0x984] ss:$16 sps:$4 sm:$0xff]  }
 0x261   : > { %3224 = vmatprep.subr.bf16.mxu1 %v11762_v49  ;;  %3270 = vmatpush2.bf16.msra.mxu0 %v11763_v19  ;;  %v11828_v49 = vld [vmem:[%s16975_s3 + $0x744] ss:$16 sps:$4 sm:$0xff]  }
 0x262   : > { %3271 = vmatprep.subr.bf16.mxu0 %v11771_v22  ;;  %v11823_v22 = vld [vmem:[%s16975_s3 + $0x980] ss:$16 sps:$4 sm:$0xff]  }
 0x264   : > { %3225 = vmatpush2.bf16.msra.mxu1 %v11760_v54 }
 0x265   : > { %3226 = vmatprep.subr.bf16.mxu1 %v11768_v62  ;;  %3272 = vmatpush2.bf16.msra.mxu0 %v11769_v16 }
 0x266   : > { %3273 = vmatprep.subr.bf16.mxu0 %v11777_v5  ;;  %v11826_v5 = vld [vmem:[%s16975_s3 + $0x740] ss:$16 sps:$4 sm:$0xff]  }
 0x268   : > { %3227 = vmatpush2.bf16.msra.mxu1 %v11766_v21  ;;  %v11831_v21 = vld [vmem:[%s16975_s3 + $0x964] ss:$16 sps:$4 sm:$0xff]  }
 0x269   : > { %3228 = vmatprep.subr.bf16.mxu1 %v11774_v36  ;;  %3274 = vmatpush2.bf16.msra.mxu0 %v11775_v14  ;;  %v11834_v14 = vld [vmem:[%s16975_s3 + $0x924] ss:$16 sps:$4 sm:$0xff]  }
 0x26a   : > { %3275 = vmatprep.subr.bf16.mxu0 %v11783_v24 }
 0x26c   : > { %3229 = vmatpush2.bf16.msra.mxu1 %v11772_v17  ;;  %v11829_v17 = vld [vmem:[%s16975_s3 + $0x960] ss:$16 sps:$4 sm:$0xff]  }
 0x26d   : > { %3230 = vmatprep.subr.bf16.mxu1 %v11780_v12  ;;  %3276 = vmatpush2.bf16.msra.mxu0 %v11781_v39 }
 0x26e   : > { %4011 = vmatprep.subr.bf16.mxu0 %v11789_v31 }
 0x270   : > { %3231 = vmatpush2.bf16.msra.mxu1 %v11778_v30  ;;  %3278 = vmatmul.mubr.bf16.vlgmr.msra.gmra.mxu0 %v13800_v42  ;;  %v11832_v30 = vld [vmem:[%s16975_s3 + $0x920] ss:$16 sps:$4 sm:$0xff]  }
 0x271   : > { %3232 = vmatprep.subr.bf16.mxu1 %v11786_v20  ;;  %4012 = vmatpush1.bf16.msra.mxu0 %v11787_v28  ;;  %v11837_v20 = vld [vmem:[%s16975_s3 + $0x944] ss:$16 sps:$4 sm:$0xff]  }
 0x272   : > { %4043 = vmatprep.mubr.bf16.mxu0 %v14391_v7  ;;  %4013 = vmatprep.subr.bf16.mxu0 %v11792_v44  ;;  %v11838_v44 = vld [vmem:[%s16975_s3 + $0x900] ss:$16 sps:$4 sm:$0xff]  }
 0x274   : > { %3233 = vmatpush2.bf16.msra.mxu1 %v11784_v41  ;;  %v11841_v41 = vld [vmem:[%s16975_s3 + $0xac4] ss:$16 sps:$4 sm:$0x3f]  }
 0x275   : > { %4054 = vmatprep.subr.bf16.mxu1 %v11795_v50  ;;  %4014 = vmatpush1.bf16.msra.mxu0 %v11790_v38  ;;  %v11843_v38 = vld [vmem:[%s16975_s3 + $0xac0] ss:$16 sps:$4 sm:$0x3f]   ;;  %v11846_v50 = vld [vmem:[%s16975_s3 + $0x8e4] ss:$16 sps:$4 sm:$0xff]  }
 0x276   : > { %4015 = vmatprep.subr.bf16.mxu0 %v11798_v33  ;;  %v4000_v33 = vsel %vm420_vm0, %v11843_v38, 0  ;;  %v11901_v38 = vld [vmem:[%s16975_s3 + $0x9c8] ss:$16 sps:$4 sm:$0xff]  }
 0x277   : > { %3235 = vmatmul.mubr.bf16.vlgmr.msra.gmra.mxu1 %v13825_v60 }
 0x278   : > { %4055 = vmatpush1.bf16.msra.mxu1 %v11793_v63  ;;  %10090 = vmatprep.mubr.msk.bf16.mxu1 %vm2337_vm6, %v14419_v55  ;;  %v11849_v63 = vld [vmem:[%s16975_s3 + $0xaa4] ss:$16 sps:$4 sm:$0xff]  }
 0x279   : > { %4056 = vmatprep.subr.bf16.mxu1 %v11801_v27  ;;  %4016 = vmatpush1.bf16.msra.mxu0 %v11796_v40  ;;  %v11847_v40 = vld [vmem:[%s16975_s3 + $0xaa0] ss:$16 sps:$4 sm:$0xff]  }
 0x27a   : > { %4017 = vmatprep.subr.bf16.mxu0 %v11804_v51  ;;  %v11850_v27 = vld [vmem:[%s16975_s3 + $0x8c0] ss:$16 sps:$4 sm:$0xff]   ;;  %v11855_v51 = vld [vmem:[%s16975_s3 + $0xa84] ss:$16 sps:$4 sm:$0xff]  }
 0x27c   : > { %4057 = vmatpush1.bf16.msra.mxu1 %v11799_v53  ;;  %v11858_v53 = vld [vmem:[%s16975_s3 + $0x8a4] ss:$16 sps:$4 sm:$0xff]  }
 0x27d   : > { %4058 = vmatprep.subr.bf16.mxu1 %v11807_v18  ;;  %4018 = vmatpush1.bf16.msra.mxu0 %v11802_v56  ;;  %v11853_v56 = vld [vmem:[%s16975_s3 + $0xa80] ss:$16 sps:$4 sm:$0xff]  }
 0x27e   : > { %4019 = vmatprep.subr.bf16.mxu0 %v11810_v32  ;;  %v11856_v18 = vld [vmem:[%s16975_s3 + $0x8a0] ss:$16 sps:$4 sm:$0xff]   ;;  %v11861_v32 = vld [vmem:[%s16975_s3 + $0xa64] ss:$16 sps:$4 sm:$0xff]  }
 0x280   : > { %4059 = vmatpush1.bf16.msra.mxu1 %v11805_v35  ;;  %v11864_v35 = vld [vmem:[%s16975_s3 + $0x884] ss:$16 sps:$4 sm:$0xff]  }
 0x281   : > { %4060 = vmatprep.subr.bf16.mxu1 %v11813_v43  ;;  %4020 = vmatpush1.bf16.msra.mxu0 %v11808_v1  ;;  %v11859_v1 = vld [vmem:[%s16975_s3 + $0xa60] ss:$16 sps:$4 sm:$0xff]  }
 0x282   : > { %4021 = vmatprep.subr.bf16.mxu0 %v11816_v11  ;;  %v11862_v43 = vld [vmem:[%s16975_s3 + $0x880] ss:$16 sps:$4 sm:$0xff]   ;;  %v11867_v11 = vld [vmem:[%s16975_s3 + $0xa44] ss:$16 sps:$4 sm:$0xff]  }
 0x283   : > { %v2430_v15 = vpop.f32.mrf.mxu1 }
 0x284   : > { %4061 = vmatpush1.bf16.msra.mxu1 %v11811_v2  ;;  %v11870_v2 = vld [vmem:[%s16975_s3 + $0x864] ss:$16 sps:$4 sm:$0xff]  }
 0x285   : > { %v2432_v25 = vpop.f32.mrf.mxu1  ;;  %4062 = vmatprep.subr.bf16.mxu1 %v11819_v26  ;;  %4022 = vmatpush1.bf16.msra.mxu0 %v11814_v0  ;;  %v11865_v0 = vld [vmem:[%s16975_s3 + $0xa40] ss:$16 sps:$4 sm:$0xff]  }
 0x286   : > { %4023 = vmatprep.subr.bf16.mxu0 %v11822_v6  ;;  %v11868_v26 = vld [vmem:[%s16975_s3 + $0x860] ss:$16 sps:$4 sm:$0xff]   ;;  %v11873_v6 = vld [vmem:[%s16975_s3 + $0x82c] ss:$16 sps:$4 sm:$0xff]  }
 0x287   : > { %v2387_v19 = vpop.f32.mrf.mxu0  ;;  %v2434_v62 = vpop.f32.mrf.mxu1 }
 0x288   : > { %4063 = vmatpush1.bf16.msra.mxu1 %v11817_v45  ;;  %v14474_v54 = vadd.f32 %v2430_v15, %v2387_v19  ;;  %v3412_v15 = vrot.slane %v13804_v52, 2  ;;  %v11876_v45 = vld [vmem:[%s16975_s3 + $0x844] ss:$16 sps:$4 sm:$0xff]  }
 0x289   : > { %4064 = vmatprep.subr.bf16.mxu1 %v11825_v10  ;;  %4024 = vmatpush1.bf16.msra.mxu0 %v11820_v9  ;;  %v2389_v16 = vpop.f32.mrf.mxu0  ;;  %v2436_v39 = vpop.f32.mrf.mxu1  ;;  %v11871_v9 = vld [vmem:[%s16975_s3 + $0x828] ss:$16 sps:$4 sm:$0xff]   ;;  %v11874_v10 = vld [vmem:[%s16975_s3 + $0x840] ss:$16 sps:$4 sm:$0xff]  }
 0x28a   : > { %v14482_v36 = vadd.f32 %v2432_v25, %v2389_v16  ;;  %4025 = vmatprep.subr.bf16.mxu0 %v11828_v49  ;;  %v3411_v25 = vrot.slane %v13800_v42, 2  ;;  %v11879_v49 = vld [vmem:[%s16975_s3 + $0x80c] ss:$16 sps:$4 sm:$0xff]   ;;  %v3406_v16 = vrot.slane %v13827_v61, 2 }
 0x28b   : > { %v2391_v24 = vpop.f32.mrf.mxu0 }
 0x28c   : > { %4065 = vmatpush1.bf16.msra.mxu1 %v11823_v22  ;;  %v14490_v12 = vadd.f32 %v2434_v62, %v2391_v24  ;;  %v14589_v19 = vsel %vm420_vm0, %v3411_v25, %v3412_v15  ;;  %v11885_v22 = vld [vmem:[%s16975_s3 + $0xa2c] ss:$16 sps:$4 sm:$0xff]   ;;  %v3405_v62 = vrot.slane %v13825_v60, 2  ;;  %v11928_v25 = vld [vmem:[%s16975_s3 + $0x8e8] ss:$16 sps:$4 sm:$0xff]  }
 0x28d   : > { %4066 = vmatprep.subr.bf16.mxu1 %v11831_v21  ;;  %4026 = vmatpush1.bf16.msra.mxu0 %v11826_v5  ;;  %v2393_v31 = vpop.f32.mrf.mxu0  ;;  %v11877_v5 = vld [vmem:[%s16975_s3 + $0x808] ss:$16 sps:$4 sm:$0xff]   ;;  %v11882_v21 = vld [vmem:[%s16975_s3 + $0x7ec] ss:$16 sps:$4 sm:$0xff]  }
 0x28e   : > { %v14498_v28 = vadd.f32 %v2436_v39, %v2393_v31  ;;  %4027 = vmatprep.subr.bf16.mxu0 %v11834_v14  ;;  %v11883_v14 = vld [vmem:[%s16975_s3 + $0xa28] ss:$16 sps:$4 sm:$0xff]   ;;  %v11891_v24 = vld [vmem:[%s16975_s3 + $0xa0c] ss:$16 sps:$4 sm:$0xff]  }
 0x28f   : > { %v11888_v39 = vld [vmem:[%s16975_s3 + $0x7cc] ss:$16 sps:$4 sm:$0xff]   ;;  %v11889_v31 = vld [vmem:[%s16975_s3 + $0xa08] ss:$16 sps:$4 sm:$0xff]  }
 0x290   : > { %4067 = vmatpush1.bf16.msra.mxu1 %v11829_v17  ;;  %v11880_v17 = vld [vmem:[%s16975_s3 + $0x7e8] ss:$16 sps:$4 sm:$0xff]  }
 0x291   : > { %4068 = vmatprep.subr.bf16.mxu1 %v11837_v20  ;;  %4028 = vmatpush2.bf16.msra.mxu0 %v11832_v30  ;;  %v11897_v30 = vld [vmem:[%s16975_s3 + $0x9ec] ss:$16 sps:$4 sm:$0xff]   ;;  %v11886_v20 = vld [vmem:[%s16975_s3 + $0x7c8] ss:$16 sps:$4 sm:$0xff]  }
 0x292   : > { %4029 = vmatprep.subr.bf16.mxu0 %v11840_v47  ;;  %v11894_v47 = vld [vmem:[%s16975_s3 + $0x7ac] ss:$16 sps:$4 sm:$0xff]  }
 0x294   : > { %4069 = vmatpush1.bf16.msra.mxu1 %v11835_v29  ;;  %v11903_v29 = vld [vmem:[%s16975_s3 + $0x9cc] ss:$16 sps:$4 sm:$0xff]  }
 0x295   : > { %10089 = vmatprep.subr.msk.bf16.mxu1 %vm420_vm0, %v11841_v41  ;;  %4030 = vmatpush2.bf16.msra.mxu0 %v11838_v44  ;;  %v11892_v44 = vld [vmem:[%s16975_s3 + $0x7a8] ss:$16 sps:$4 sm:$0xff]   ;;  %v11900_v41 = vld [vmem:[%s16975_s3 + $0x78c] ss:$16 sps:$4 sm:$0xff]  }
 0x296   : > { %4031 = vmatprep.subr.bf16.mxu0 %v11846_v50  ;;  %v11909_v50 = vld [vmem:[%s16975_s3 + $0x9ac] ss:$16 sps:$4 sm:$0xff]  }
 0x298   : > { %4077 = vmatpush2.bf16.msra.mxu1 %v4000_v33  ;;  %v11898_v33 = vld [vmem:[%s16975_s3 + $0x788] ss:$16 sps:$4 sm:$0xff]  }
 0x299   : > { %4078 = vmatprep.subr.bf16.mxu1 %v11849_v63  ;;  %4032 = vmatpush2.bf16.msra.mxu0 %v11844_v46  ;;  %v11906_v46 = vld [vmem:[%s16975_s3 + $0x76c] ss:$16 sps:$4 sm:$0xff]   ;;  %v11907_v63 = vld [vmem:[%s16975_s3 + $0x9a8] ss:$16 sps:$4 sm:$0xff]  }
 0x29a   : > { %4033 = vmatprep.subr.bf16.mxu0 %v11852_v48  ;;  %v11915_v48 = vld [vmem:[%s16975_s3 + $0x98c] ss:$16 sps:$4 sm:$0xff]  }
 0x29c   : > { %4079 = vmatpush2.bf16.msra.mxu1 %v11847_v40  ;;  %v11904_v40 = vld [vmem:[%s16975_s3 + $0x768] ss:$16 sps:$4 sm:$0xff]  }
 0x29d   : > { %4080 = vmatprep.subr.bf16.mxu1 %v11855_v51  ;;  %4034 = vmatpush2.bf16.msra.mxu0 %v11850_v27  ;;  %v11912_v27 = vld [vmem:[%s16975_s3 + $0x74c] ss:$16 sps:$4 sm:$0xff]   ;;  %v11913_v51 = vld [vmem:[%s16975_s3 + $0x988] ss:$16 sps:$4 sm:$0xff]  }
 0x29e   : > { %4035 = vmatprep.subr.bf16.mxu0 %v11858_v53  ;;  %v11921_v53 = vld [vmem:[%s16975_s3 + $0x96c] ss:$16 sps:$4 sm:$0xff]  }
 0x2a0   : > { %4081 = vmatpush2.bf16.msra.mxu1 %v11853_v56  ;;  %v11910_v56 = vld [vmem:[%s16975_s3 + $0x748] ss:$16 sps:$4 sm:$0xff]  }
 0x2a1   : > { %4082 = vmatprep.subr.bf16.mxu1 %v11861_v32  ;;  %4036 = vmatpush2.bf16.msra.mxu0 %v11856_v18  ;;  %v11918_v18 = vld [vmem:[%s16975_s3 + $0x92c] ss:$16 sps:$4 sm:$0xff]   ;;  %v11919_v32 = vld [vmem:[%s16975_s3 + $0x968] ss:$16 sps:$4 sm:$0xff]  }
 0x2a2   : > { %4037 = vmatprep.subr.bf16.mxu0 %v11864_v35  ;;  %v11927_v35 = vld [vmem:[%s16975_s3 + $0x94c] ss:$16 sps:$4 sm:$0xff]  }
 0x2a4   : > { %4083 = vmatpush2.bf16.msra.mxu1 %v11859_v1  ;;  %v11916_v1 = vld [vmem:[%s16975_s3 + $0x928] ss:$16 sps:$4 sm:$0xff]  }
 0x2a5   : > { %4084 = vmatprep.subr.bf16.mxu1 %v11867_v11  ;;  %4038 = vmatpush2.bf16.msra.mxu0 %v11862_v43  ;;  %v11924_v43 = vld [vmem:[%s16975_s3 + $0x90c] ss:$16 sps:$4 sm:$0xff]   ;;  %v11925_v11 = vld [vmem:[%s16975_s3 + $0x948] ss:$16 sps:$4 sm:$0xff]  }
 0x2a6   : > { %4039 = vmatprep.subr.bf16.mxu0 %v11870_v2  ;;  %v11931_v2 = vld [vmem:[%s16975_s3 + $0xacc] ss:$16 sps:$4 sm:$0x3f]  }
 0x2a8   : > { %4085 = vmatpush2.bf16.msra.mxu1 %v11865_v0  ;;  %v11933_v0 = vld [vmem:[%s16975_s3 + $0xac8] ss:$16 sps:$4 sm:$0x3f]  }
 0x2a9   : > { %4097 = vmatprep.subr.bf16.mxu1 %v11873_v6  ;;  %4040 = vmatpush2.bf16.msra.mxu0 %v11868_v26  ;;  %v11922_v26 = vld [vmem:[%s16975_s3 + $0x908] ss:$16 sps:$4 sm:$0xff]   ;;  %v11930_v6 = vld [vmem:[%s16975_s3 + $0x8ec] ss:$16 sps:$4 sm:$0xff]   ;;  %v4006_v15 = vsel %vm420_vm0, %v11933_v0, 0 }
 0x2aa   : > { %4041 = vmatprep.subr.bf16.mxu0 %v11876_v45  ;;  %v11939_v45 = vld [vmem:[%s16975_s3 + $0xaac] ss:$16 sps:$4 sm:$0xff]   ;;  %v11996_v0 = vld [vmem:[%s16975_s3 + $0xb04] ss:$16 sps:$4 sm:$0xff]  }
 0x2ab   : > { %4087 = vmatmul.mubr.bf16.vlgmr.msra.gmra.mxu1 %v14589_v19 }
 0x2ac   : > { %4098 = vmatpush1.bf16.msra.mxu1 %v11871_v9  ;;  %4129 = vmatprep.mubr.bf16.mxu1 %v14391_v7  ;;  %v14611_v7 = vsel %vm420_vm0, %v3405_v62, %v3406_v16  ;;  %v11936_v9 = vld [vmem:[%s16975_s3 + $0x8cc] ss:$16 sps:$4 sm:$0xff]   ;;  %v11943_v16 = vld [vmem:[%s16975_s3 + $0xa88] ss:$16 sps:$4 sm:$0xff]  }
 0x2ad   : > { %4099 = vmatprep.subr.bf16.mxu1 %v11879_v49  ;;  %4042 = vmatpush2.bf16.msra.mxu0 %v11874_v10  ;;  %v11937_v10 = vld [vmem:[%s16975_s3 + $0xaa8] ss:$16 sps:$4 sm:$0xff]   ;;  %v11945_v49 = vld [vmem:[%s16975_s3 + $0xa8c] ss:$16 sps:$4 sm:$0xff]  }
 0x2ae   : > { %4140 = vmatprep.subr.bf16.mxu0 %v11885_v22  ;;  %v11934_v22 = vld [vmem:[%s16975_s3 + $0x8c8] ss:$16 sps:$4 sm:$0xff]   ;;  %v11942_v62 = vld [vmem:[%s16975_s3 + $0x8ac] ss:$16 sps:$4 sm:$0xff]  }
 0x2b0   : > { %4100 = vmatpush1.bf16.msra.mxu1 %v11877_v5  ;;  %4044 = vmatmul.mubr.bf16.vlgmr.msra.gmra.mxu0 %v14611_v7  ;;  %v11951_v5 = vld [vmem:[%s16975_s3 + $0xa6c] ss:$16 sps:$4 sm:$0xff]  }
 0x2b1   : > { %4101 = vmatprep.subr.bf16.mxu1 %v11882_v21  ;;  %4141 = vmatpush1.bf16.msra.mxu0 %v11883_v14  ;;  %v11940_v21 = vld [vmem:[%s16975_s3 + $0x8a8] ss:$16 sps:$4 sm:$0xff]   ;;  %v11948_v14 = vld [vmem:[%s16975_s3 + $0x88c] ss:$16 sps:$4 sm:$0xff]  }
 0x2b2   : > { %10092 = vmatprep.mubr.msk.bf16.mxu0 %vm2337_vm6, %v14419_v55  ;;  %4142 = vmatprep.subr.bf16.mxu0 %v11891_v24  ;;  %v11895_v55 = vld [vmem:[%s16975_s3 + $0x9e8] ss:$16 sps:$4 sm:$0xff]  }
 0x2b3   : > { %v11949_v24 = vld [vmem:[%s16975_s3 + $0xa68] ss:$16 sps:$4 sm:$0xff]  }
 0x2b4   : > { %4102 = vmatpush1.bf16.msra.mxu1 %v11880_v17  ;;  %v11957_v17 = vld [vmem:[%s16975_s3 + $0xa4c] ss:$16 sps:$4 sm:$0xff]  }
 0x2b5   : > { %4103 = vmatprep.subr.bf16.mxu1 %v11888_v39  ;;  %4143 = vmatpush1.bf16.msra.mxu0 %v11889_v31  ;;  %v11946_v39 = vld [vmem:[%s16975_s3 + $0x888] ss:$16 sps:$4 sm:$0xff]   ;;  %v11954_v31 = vld [vmem:[%s16975_s3 + $0x86c] ss:$16 sps:$4 sm:$0xff]  }
 0x2b6   : > { %4144 = vmatprep.subr.bf16.mxu0 %v11897_v30  ;;  %v11955_v30 = vld [vmem:[%s16975_s3 + $0xa48] ss:$16 sps:$4 sm:$0xff]  }
 0x2b8   : > { %4104 = vmatpush1.bf16.msra.mxu1 %v11886_v20  ;;  %v11963_v20 = vld [vmem:[%s16975_s3 + $0xbc4] ss:$16 sps:$4 sm:$0xff]  }
 0x2b9   : > { %4105 = vmatprep.subr.bf16.mxu1 %v11894_v47  ;;  %4145 = vmatpush1.bf16.msra.mxu0 %v11895_v55  ;;  %v11952_v47 = vld [vmem:[%s16975_s3 + $0x868] ss:$16 sps:$4 sm:$0xff]   ;;  %v11960_v55 = vld [vmem:[%s16975_s3 + $0x84c] ss:$16 sps:$4 sm:$0xff]  }
 0x2ba   : > { %4146 = vmatprep.subr.bf16.mxu0 %v11903_v29  ;;  %v11961_v29 = vld [vmem:[%s16975_s3 + $0xbc0] ss:$16 sps:$4 sm:$0xff]  }
 0x2bc   : > { %4106 = vmatpush1.bf16.msra.mxu1 %v11892_v44  ;;  %v4312_v44 = vrot.slane %v13823_v34, 3  ;;  %v11964_v34 = vld [vmem:[%s16975_s3 + $0xba0] ss:$16 sps:$4 sm:$0xff]  }
 0x2bd   : > { %4107 = vmatprep.subr.bf16.mxu1 %v11900_v41  ;;  %4147 = vmatpush1.bf16.msra.mxu0 %v11901_v38  ;;  %v4313_v41 = vrot.slane %v13832_v13, 3  ;;  %v11966_v38 = vld [vmem:[%s16975_s3 + $0xba4] ss:$16 sps:$4 sm:$0xff]  }
 0x2be   : > { %4148 = vmatprep.subr.bf16.mxu0 %v11909_v50  ;;  %v11958_v50 = vld [vmem:[%s16975_s3 + $0x848] ss:$16 sps:$4 sm:$0xff]   ;;  %v11969_v13 = vld [vmem:[%s16975_s3 + $0xdc4] ss:$16 sps:$4 sm:$0xff]  }
 0x2c0   : > { %4108 = vmatpush1.bf16.msra.mxu1 %v11898_v33  ;;  %v14781_v33 = vsel %vm4308_vm7, %v4312_v44, %v4313_v41  ;;  %v12029_v44 = vld [vmem:[%s16975_s3 + $0xe24] ss:$16 sps:$4 sm:$0xff]  }
 0x2c1   : > { %4109 = vmatprep.subr.bf16.mxu1 %v11906_v46  ;;  %4149 = vmatpush1.bf16.msra.mxu0 %v11907_v63  ;;  %v4319_v46 = vrot.slane %v13785_v37, 3  ;;  %v11967_v63 = vld [vmem:[%s16975_s3 + $0xdc0] ss:$16 sps:$4 sm:$0xff]   ;;  %v11978_v37 = vld [vmem:[%s16975_s3 + $0xb64] ss:$16 sps:$4 sm:$0xff]  }
 0x2c2   : > { %4150 = vmatprep.subr.bf16.mxu0 %v11915_v48  ;;  %v4318_v48 = vrot.slane %v13778_v23, 3  ;;  %v11973_v23 = vld [vmem:[%s16975_s3 + $0xda0] ss:$16 sps:$4 sm:$0xff]   ;;  %v12032_v41 = vld [vmem:[%s16975_s3 + $0xc44] ss:$16 sps:$4 sm:$0xff]  }
 0x2c4   : > { %4110 = vmatpush1.bf16.msra.mxu1 %v11904_v40  ;;  %v11970_v40 = vld [vmem:[%s16975_s3 + $0xb80] ss:$16 sps:$4 sm:$0xff]  }
 0x2c5   : > { %4111 = vmatprep.subr.bf16.mxu1 %v11912_v27  ;;  %4151 = vmatpush1.bf16.msra.mxu0 %v11913_v51  ;;  %v11975_v27 = vld [vmem:[%s16975_s3 + $0xda4] ss:$16 sps:$4 sm:$0xff]   ;;  %v14809_v51 = vsel %vm4308_vm7, %v4318_v48, %v4319_v46  ;;  %v12036_v46 = vld [vmem:[%s16975_s3 + $0xc20] ss:$16 sps:$4 sm:$0xff]  }
 0x2c6   : > { %4152 = vmatprep.subr.bf16.mxu0 %v11921_v53  ;;  %v11976_v53 = vld [vmem:[%s16975_s3 + $0xb60] ss:$16 sps:$4 sm:$0xff]   ;;  %v12044_v48 = vld [vmem:[%s16975_s3 + $0xc04] ss:$16 sps:$4 sm:$0xff]  }
 0x2c8   : > { %4112 = vmatpush1.bf16.msra.mxu1 %v11910_v56  ;;  %v11984_v56 = vld [vmem:[%s16975_s3 + $0xb44] ss:$16 sps:$4 sm:$0xff]  }
 0x2c9   : > { %4113 = vmatprep.subr.bf16.mxu1 %v11918_v18  ;;  %4153 = vmatpush1.bf16.msra.mxu0 %v11919_v32  ;;  %v11979_v18 = vld [vmem:[%s16975_s3 + $0xd80] ss:$16 sps:$4 sm:$0xff]  }
 0x2ca   : > { %4154 = vmatprep.subr.bf16.mxu0 %v11927_v35  ;;  %v11982_v32 = vld [vmem:[%s16975_s3 + $0xb40] ss:$16 sps:$4 sm:$0xff]   ;;  %v11987_v35 = vld [vmem:[%s16975_s3 + $0xd64] ss:$16 sps:$4 sm:$0xff]  }
 0x2cc   : > { %4114 = vmatpush2.bf16.msra.mxu1 %v11916_v1  ;;  %v11990_v1 = vld [vmem:[%s16975_s3 + $0xb24] ss:$16 sps:$4 sm:$0xff]  }
 0x2cd   : > { %4115 = vmatprep.subr.bf16.mxu1 %v11924_v43  ;;  %4155 = vmatpush1.bf16.msra.mxu0 %v11925_v11  ;;  %v11985_v43 = vld [vmem:[%s16975_s3 + $0xd60] ss:$16 sps:$4 sm:$0xff]  }
 0x2ce   : > { %10091 = vmatprep.subr.msk.bf16.mxu0 %vm420_vm0, %v11931_v2  ;;  %v11988_v11 = vld [vmem:[%s16975_s3 + $0xb20] ss:$16 sps:$4 sm:$0xff]   ;;  %v11993_v2 = vld [vmem:[%s16975_s3 + $0xd44] ss:$16 sps:$4 sm:$0xff]  }
 0x2d0   : > { %4116 = vmatpush2.bf16.msra.mxu1 %v11922_v26  ;;  %v11991_v26 = vld [vmem:[%s16975_s3 + $0xd40] ss:$16 sps:$4 sm:$0xff]  }
 0x2d1   : > { %4117 = vmatprep.subr.bf16.mxu1 %v11930_v6  ;;  %4163 = vmatpush2.bf16.msra.mxu0 %v4006_v15  ;;  %v11994_v6 = vld [vmem:[%s16975_s3 + $0xb00] ss:$16 sps:$4 sm:$0xff]   ;;  %v11999_v15 = vld [vmem:[%s16975_s3 + $0xd24] ss:$16 sps:$4 sm:$0xff]  }
 0x2d2   : > { %4164 = vmatprep.subr.bf16.mxu0 %v11939_v45  ;;  %v12002_v45 = vld [vmem:[%s16975_s3 + $0xae4] ss:$16 sps:$4 sm:$0xff]  }
 0x2d4   : > { %4118 = vmatpush2.bf16.msra.mxu1 %v11928_v25  ;;  %v11997_v25 = vld [vmem:[%s16975_s3 + $0xd20] ss:$16 sps:$4 sm:$0xff]  }
 0x2d5   : > { %4119 = vmatprep.subr.bf16.mxu1 %v11936_v9  ;;  %4165 = vmatpush2.bf16.msra.mxu0 %v11937_v10  ;;  %v12000_v9 = vld [vmem:[%s16975_s3 + $0xae0] ss:$16 sps:$4 sm:$0xff]   ;;  %v12005_v10 = vld [vmem:[%s16975_s3 + $0xd04] ss:$16 sps:$4 sm:$0xff]  }
 0x2d6   : > { %4166 = vmatprep.subr.bf16.mxu0 %v11945_v49  ;;  %v12008_v49 = vld [vmem:[%s16975_s3 + $0xcc4] ss:$16 sps:$4 sm:$0xff]  }
 0x2d8   : > { %4120 = vmatpush2.bf16.msra.mxu1 %v11934_v22  ;;  %v12003_v22 = vld [vmem:[%s16975_s3 + $0xd00] ss:$16 sps:$4 sm:$0xff]  }
 0x2d9   : > { %4121 = vmatprep.subr.bf16.mxu1 %v11942_v62  ;;  %4167 = vmatpush2.bf16.msra.mxu0 %v11943_v16  ;;  %v12006_v62 = vld [vmem:[%s16975_s3 + $0xcc0] ss:$16 sps:$4 sm:$0xff]   ;;  %v12011_v16 = vld [vmem:[%s16975_s3 + $0xce4] ss:$16 sps:$4 sm:$0xff]  }
 0x2da   : > { %4168 = vmatprep.subr.bf16.mxu0 %v11951_v5  ;;  %v12014_v5 = vld [vmem:[%s16975_s3 + $0xca4] ss:$16 sps:$4 sm:$0xff]  }
 0x2dc   : > { %4122 = vmatpush2.bf16.msra.mxu1 %v11940_v21  ;;  %v12009_v21 = vld [vmem:[%s16975_s3 + $0xce0] ss:$16 sps:$4 sm:$0xff]  }
 0x2dd   : > { %4123 = vmatprep.subr.bf16.mxu1 %v11948_v14  ;;  %4169 = vmatpush2.bf16.msra.mxu0 %v11949_v24  ;;  %v12012_v14 = vld [vmem:[%s16975_s3 + $0xca0] ss:$16 sps:$4 sm:$0xff]   ;;  %v12015_v24 = vld [vmem:[%s16975_s3 + $0xe64] ss:$16 sps:$4 sm:$0x3f]  }
 0x2de   : > { %4170 = vmatprep.subr.bf16.mxu0 %v11957_v17  ;;  %v12017_v17 = vld [vmem:[%s16975_s3 + $0xe60] ss:$16 sps:$4 sm:$0x3f]  }
 0x2e0   : > { %4124 = vmatpush2.bf16.msra.mxu1 %v11946_v39  ;;  %v12020_v39 = vld [vmem:[%s16975_s3 + $0xc84] ss:$16 sps:$4 sm:$0xff]  }
 0x2e1   : > { %4125 = vmatprep.subr.bf16.mxu1 %v11954_v31  ;;  %4171 = vmatpush2.bf16.msra.mxu0 %v11955_v30  ;;  %v4904_v31 = vsel %vm420_vm0, %v12017_v17, 0  ;;  %v12018_v30 = vld [vmem:[%s16975_s3 + $0xc80] ss:$16 sps:$4 sm:$0xff]   ;;  %v12087_v17 = vld [vmem:[%s16975_s3 + $0xd28] ss:$16 sps:$4 sm:$0xff]  }
 0x2e2   : > { %4915 = vmatprep.subr.bf16.mxu0 %v11963_v20  ;;  %v12023_v20 = vld [vmem:[%s16975_s3 + $0xe44] ss:$16 sps:$4 sm:$0xff]  }
 0x2e4   : > { %4126 = vmatpush2.bf16.msra.mxu1 %v11952_v47  ;;  %4173 = vmatmul.mubr.bf16.vlgmr.msra.gmra.mxu0 %v14589_v19  ;;  %v11972_v19 = vld [vmem:[%s16975_s3 + $0xb84] ss:$16 sps:$4 sm:$0xff]  }
 0x2e5   : > { %4127 = vmatprep.subr.bf16.mxu1 %v11960_v55  ;;  %4916 = vmatpush1.bf16.msra.mxu0 %v11961_v29  ;;  %v12026_v47 = vld [vmem:[%s16975_s3 + $0xc64] ss:$16 sps:$4 sm:$0xff]   ;;  %v12021_v55 = vld [vmem:[%s16975_s3 + $0xe40] ss:$16 sps:$4 sm:$0xff]  }
 0x2e6   : > { %4947 = vmatprep.mubr.bf16.mxu0 %v14781_v33  ;;  %4917 = vmatprep.subr.bf16.mxu0 %v11966_v38  ;;  %v12024_v29 = vld [vmem:[%s16975_s3 + $0xc60] ss:$16 sps:$4 sm:$0xff]  }
 0x2e7   : > { %v12027_v38 = vld [vmem:[%s16975_s3 + $0xe20] ss:$16 sps:$4 sm:$0xff]  }
 0x2e8   : > { %4128 = vmatpush2.bf16.msra.mxu1 %v11958_v50  ;;  %v12030_v50 = vld [vmem:[%s16975_s3 + $0xc40] ss:$16 sps:$4 sm:$0xff]  }
 0x2e9   : > { %4958 = vmatprep.subr.bf16.mxu1 %v11969_v13  ;;  %4918 = vmatpush1.bf16.msra.mxu0 %v11964_v34  ;;  %v12035_v34 = vld [vmem:[%s16975_s3 + $0xe04] ss:$16 sps:$4 sm:$0xff]  }
 0x2ea   : > { %4919 = vmatprep.subr.bf16.mxu0 %v11972_v19  ;;  %v12038_v13 = vld [vmem:[%s16975_s3 + $0xc24] ss:$16 sps:$4 sm:$0xff]   ;;  %v12033_v19 = vld [vmem:[%s16975_s3 + $0xe00] ss:$16 sps:$4 sm:$0xff]  }
 0x2eb   : > { %4130 = vmatmul.mubr.bf16.vlgmr.msra.gmra.mxu1 %v14611_v7  ;;  %v11981_v7 = vld [vmem:[%s16975_s3 + $0xd84] ss:$16 sps:$4 sm:$0xff]  }
 0x2ec   : > { %4959 = vmatpush1.bf16.msra.mxu1 %v11967_v63  ;;  %10326 = vmatprep.mubr.msk.bf16.mxu1 %vm2337_vm6, %v14809_v51  ;;  %v12041_v63 = vld [vmem:[%s16975_s3 + $0xde4] ss:$16 sps:$4 sm:$0xff]  }
 0x2ed   : > { %4960 = vmatprep.subr.bf16.mxu1 %v11975_v27  ;;  %4920 = vmatpush1.bf16.msra.mxu0 %v11970_v40  ;;  %v12039_v40 = vld [vmem:[%s16975_s3 + $0xde0] ss:$16 sps:$4 sm:$0xff]  }
 0x2ee   : > { %4921 = vmatprep.subr.bf16.mxu0 %v11978_v37  ;;  %v12042_v27 = vld [vmem:[%s16975_s3 + $0xc00] ss:$16 sps:$4 sm:$0xff]   ;;  %v12047_v37 = vld [vmem:[%s16975_s3 + $0xbcc] ss:$16 sps:$4 sm:$0xff]  }
 0x2f0   : > { %4961 = vmatpush1.bf16.msra.mxu1 %v11973_v23  ;;  %v4316_v23 = vrot.slane %v13804_v52, 3  ;;  %v12053_v52 = vld [vmem:[%s16975_s3 + $0xbac] ss:$16 sps:$4 sm:$0xff]  }
 0x2f1   : > { %4962 = vmatprep.subr.bf16.mxu1 %v11981_v7  ;;  %4922 = vmatpush1.bf16.msra.mxu0 %v11976_v53  ;;  %v12050_v53 = vld [vmem:[%s16975_s3 + $0xbe4] ss:$16 sps:$4 sm:$0xff]   ;;  %v4315_v7 = vrot.slane %v13800_v42, 3  ;;  %v12059_v42 = vld [vmem:[%s16975_s3 + $0xdcc] ss:$16 sps:$4 sm:$0xff]  }
 0x2f2   : > { %4923 = vmatprep.subr.bf16.mxu0 %v11984_v56  ;;  %v12045_v56 = vld [vmem:[%s16975_s3 + $0xbc8] ss:$16 sps:$4 sm:$0xff]  }
 0x2f4   : > { %4963 = vmatpush1.bf16.msra.mxu1 %v11979_v18  ;;  %v12048_v18 = vld [vmem:[%s16975_s3 + $0xbe0] ss:$16 sps:$4 sm:$0xff]  }
 0x2f5   : > { %4964 = vmatprep.subr.bf16.mxu1 %v11987_v35  ;;  %4924 = vmatpush1.bf16.msra.mxu0 %v11982_v32  ;;  %v14971_v32 = vsel %vm4308_vm7, %v4315_v7, %v4316_v23  ;;  %v4309_v35 = vrot.slane %v13825_v60, 3  ;;  %v12065_v60 = vld [vmem:[%s16975_s3 + $0xdac] ss:$16 sps:$4 sm:$0xff]   ;;  %v12117_v23 = vld [vmem:[%s16975_s3 + $0xe28] ss:$16 sps:$4 sm:$0xff]  }
 0x2f6   : > { %4925 = vmatprep.subr.bf16.mxu0 %v11990_v1  ;;  %v4310_v1 = vrot.slane %v13827_v61, 3  ;;  %v12114_v7 = vld [vmem:[%s16975_s3 + $0xc48] ss:$16 sps:$4 sm:$0xff]  }
 0x2f8   : > { %4965 = vmatpush1.bf16.msra.mxu1 %v11985_v43  ;;  %v12051_v43 = vld [vmem:[%s16975_s3 + $0xba8] ss:$16 sps:$4 sm:$0xff]   ;;  %v14993_v61 = vsel %vm4308_vm7, %v4309_v35, %v4310_v1  ;;  %v12128_v35 = vld [vmem:[%s16975_s3 + $0xc0c] ss:$16 sps:$4 sm:$0xff]  }
 0x2f9   : > { %4966 = vmatprep.subr.bf16.mxu1 %v11993_v2  ;;  %4926 = vmatpush1.bf16.msra.mxu0 %v11988_v11  ;;  %v12056_v11 = vld [vmem:[%s16975_s3 + $0xb8c] ss:$16 sps:$4 sm:$0xff]   ;;  %v12057_v2 = vld [vmem:[%s16975_s3 + $0xdc8] ss:$16 sps:$4 sm:$0xff]  }
 0x2fa   : > { %4927 = vmatprep.subr.bf16.mxu0 %v11996_v0  ;;  %v12062_v0 = vld [vmem:[%s16975_s3 + $0xb6c] ss:$16 sps:$4 sm:$0xff]   ;;  %v12129_v1 = vld [vmem:[%s16975_s3 + $0xde8] ss:$16 sps:$4 sm:$0xff]  }
 0x2fc   : > { %4967 = vmatpush1.bf16.msra.mxu1 %v11991_v26  ;;  %v12063_v26 = vld [vmem:[%s16975_s3 + $0xda8] ss:$16 sps:$4 sm:$0xff]  }
 0x2fd   : > { %4968 = vmatprep.subr.bf16.mxu1 %v11999_v15  ;;  %4928 = vmatpush1.bf16.msra.mxu0 %v11994_v6  ;;  %v12071_v6 = vld [vmem:[%s16975_s3 + $0xd8c] ss:$16 sps:$4 sm:$0xff]   ;;  %v12060_v15 = vld [vmem:[%s16975_s3 + $0xb68] ss:$16 sps:$4 sm:$0xff]  }
 0x2fe   : > { %4929 = vmatprep.subr.bf16.mxu0 %v12002_v45  ;;  %v12068_v45 = vld [vmem:[%s16975_s3 + $0xb4c] ss:$16 sps:$4 sm:$0xff]  }
 0x300   : > { %4969 = vmatpush1.bf16.msra.mxu1 %v11997_v25  ;;  %v12077_v25 = vld [vmem:[%s16975_s3 + $0xd6c] ss:$16 sps:$4 sm:$0xff]  }
 0x301   : > { %4970 = vmatprep.subr.bf16.mxu1 %v12005_v10  ;;  %4930 = vmatpush1.bf16.msra.mxu0 %v12000_v9  ;;  %v12066_v9 = vld [vmem:[%s16975_s3 + $0xb48] ss:$16 sps:$4 sm:$0xff]   ;;  %v12074_v10 = vld [vmem:[%s16975_s3 + $0xb2c] ss:$16 sps:$4 sm:$0xff]  }
 0x302   : > { %4931 = vmatprep.subr.bf16.mxu0 %v12008_v49  ;;  %v12075_v49 = vld [vmem:[%s16975_s3 + $0xd68] ss:$16 sps:$4 sm:$0xff]  }
 0x304   : > { %4971 = vmatpush1.bf16.msra.mxu1 %v12003_v22  ;;  %v12083_v22 = vld [vmem:[%s16975_s3 + $0xd4c] ss:$16 sps:$4 sm:$0xff]  }
 0x305   : > { %4972 = vmatprep.subr.bf16.mxu1 %v12011_v16  ;;  %4932 = vmatpush2.bf16.msra.mxu0 %v12006_v62  ;;  %v12072_v62 = vld [vmem:[%s16975_s3 + $0xb28] ss:$16 sps:$4 sm:$0xff]   ;;  %v12080_v16 = vld [vmem:[%s16975_s3 + $0xb0c] ss:$16 sps:$4 sm:$0xff]  }
 0x306   : > { %4933 = vmatprep.subr.bf16.mxu0 %v12014_v5  ;;  %v12081_v5 = vld [vmem:[%s16975_s3 + $0xd48] ss:$16 sps:$4 sm:$0xff]  }
 0x308   : > { %4973 = vmatpush1.bf16.msra.mxu1 %v12009_v21  ;;  %v12089_v21 = vld [vmem:[%s16975_s3 + $0xd2c] ss:$16 sps:$4 sm:$0xff]  }
 0x309   : > { %10325 = vmatprep.subr.msk.bf16.mxu1 %vm420_vm0, %v12015_v24  ;;  %4934 = vmatpush2.bf16.msra.mxu0 %v12012_v14  ;;  %v12078_v14 = vld [vmem:[%s16975_s3 + $0xb08] ss:$16 sps:$4 sm:$0xff]   ;;  %v12086_v24 = vld [vmem:[%s16975_s3 + $0xaec] ss:$16 sps:$4 sm:$0xff]  }
 0x30a   : > { %4935 = vmatprep.subr.bf16.mxu0 %v12020_v39  ;;  %v12095_v39 = vld [vmem:[%s16975_s3 + $0xd0c] ss:$16 sps:$4 sm:$0xff]  }
 0x30c   : > { %4981 = vmatpush2.bf16.msra.mxu1 %v4904_v31  ;;  %v12084_v31 = vld [vmem:[%s16975_s3 + $0xae8] ss:$16 sps:$4 sm:$0xff]  }
 0x30d   : > { %4982 = vmatprep.subr.bf16.mxu1 %v12023_v20  ;;  %4936 = vmatpush2.bf16.msra.mxu0 %v12018_v30  ;;  %v12092_v30 = vld [vmem:[%s16975_s3 + $0xccc] ss:$16 sps:$4 sm:$0xff]   ;;  %v12093_v20 = vld [vmem:[%s16975_s3 + $0xd08] ss:$16 sps:$4 sm:$0xff]  }
 0x30e   : > { %4937 = vmatprep.subr.bf16.mxu0 %v12026_v47  ;;  %v12101_v47 = vld [vmem:[%s16975_s3 + $0xcec] ss:$16 sps:$4 sm:$0xff]  }
 0x310   : > { %4983 = vmatpush2.bf16.msra.mxu1 %v12021_v55  ;;  %v12090_v55 = vld [vmem:[%s16975_s3 + $0xcc8] ss:$16 sps:$4 sm:$0xff]  }
 0x311   : > { %4984 = vmatprep.subr.bf16.mxu1 %v12029_v44  ;;  %4938 = vmatpush2.bf16.msra.mxu0 %v12024_v29  ;;  %v12098_v29 = vld [vmem:[%s16975_s3 + $0xcac] ss:$16 sps:$4 sm:$0xff]   ;;  %v12099_v44 = vld [vmem:[%s16975_s3 + $0xce8] ss:$16 sps:$4 sm:$0xff]  }
 0x312   : > { %4939 = vmatprep.subr.bf16.mxu0 %v12032_v41  ;;  %v12105_v41 = vld [vmem:[%s16975_s3 + $0xe6c] ss:$16 sps:$4 sm:$0x3f]  }
 0x314   : > { %4985 = vmatpush2.bf16.msra.mxu1 %v12027_v38  ;;  %v12107_v38 = vld [vmem:[%s16975_s3 + $0xe68] ss:$16 sps:$4 sm:$0x3f]  }
 0x315   : > { %4986 = vmatprep.subr.bf16.mxu1 %v12035_v34  ;;  %4940 = vmatpush2.bf16.msra.mxu0 %v12030_v50  ;;  %v12096_v50 = vld [vmem:[%s16975_s3 + $0xca8] ss:$16 sps:$4 sm:$0xff]   ;;  %v12104_v34 = vld [vmem:[%s16975_s3 + $0xc8c] ss:$16 sps:$4 sm:$0xff]  }
 0x316   : > { %4941 = vmatprep.subr.bf16.mxu0 %v12038_v13  ;;  %v4910_v13 = vsel %vm420_vm0, %v12107_v38, 0  ;;  %v12180_v38 = vld [vmem:[%s16975_s3 + $0x1060] ss:$16 sps:$4 sm:$0xff]  }
 0x318   : > { %4987 = vmatpush2.bf16.msra.mxu1 %v12033_v19  ;;  %v12113_v19 = vld [vmem:[%s16975_s3 + $0xe4c] ss:$16 sps:$4 sm:$0xff]  }
 0x319   : > { %4988 = vmatprep.subr.bf16.mxu1 %v12041_v63  ;;  %4942 = vmatpush2.bf16.msra.mxu0 %v12036_v46  ;;  %v12102_v46 = vld [vmem:[%s16975_s3 + $0xc88] ss:$16 sps:$4 sm:$0xff]   ;;  %v12110_v63 = vld [vmem:[%s16975_s3 + $0xc6c] ss:$16 sps:$4 sm:$0xff]  }
 0x31a   : > { %4943 = vmatprep.subr.bf16.mxu0 %v12044_v48  ;;  %v12111_v48 = vld [vmem:[%s16975_s3 + $0xe48] ss:$16 sps:$4 sm:$0xff]  }
 0x31c   : > { %4989 = vmatpush2.bf16.msra.mxu1 %v12039_v40  ;;  %v12119_v40 = vld [vmem:[%s16975_s3 + $0xe2c] ss:$16 sps:$4 sm:$0xff]  }
 0x31d   : > { %5001 = vmatprep.subr.bf16.mxu1 %v12047_v37  ;;  %4944 = vmatpush2.bf16.msra.mxu0 %v12042_v27  ;;  %v12108_v27 = vld [vmem:[%s16975_s3 + $0xc68] ss:$16 sps:$4 sm:$0xff]   ;;  %v12116_v37 = vld [vmem:[%s16975_s3 + $0xc4c] ss:$16 sps:$4 sm:$0xff]  }
 0x31e   : > { %4945 = vmatprep.subr.bf16.mxu0 %v12050_v53  ;;  %v12125_v53 = vld [vmem:[%s16975_s3 + $0xe0c] ss:$16 sps:$4 sm:$0xff]  }
 0x31f   : > { %4991 = vmatmul.mubr.bf16.vlgmr.msra.gmra.mxu1 %v14971_v32 }
 0x320   : > { %5002 = vmatpush1.bf16.msra.mxu1 %v12045_v56  ;;  %5033 = vmatprep.mubr.bf16.mxu1 %v14781_v33  ;;  %v12054_v33 = vld [vmem:[%s16975_s3 + $0xb88] ss:$16 sps:$4 sm:$0xff]   ;;  %v12122_v56 = vld [vmem:[%s16975_s3 + $0xc2c] ss:$16 sps:$4 sm:$0xff]  }
 0x321   : > { %5003 = vmatprep.subr.bf16.mxu1 %v12053_v52  ;;  %4946 = vmatpush2.bf16.msra.mxu0 %v12048_v18  ;;  %v12123_v18 = vld [vmem:[%s16975_s3 + $0xe08] ss:$16 sps:$4 sm:$0xff]   ;;  %v12131_v52 = vld [vmem:[%s16975_s3 + $0xdec] ss:$16 sps:$4 sm:$0xff]  }
 0x322   : > { %5044 = vmatprep.subr.bf16.mxu0 %v12059_v42  ;;  %v12120_v42 = vld [vmem:[%s16975_s3 + $0xc28] ss:$16 sps:$4 sm:$0xff]  }
 0x324   : > { %5004 = vmatpush1.bf16.msra.mxu1 %v12051_v43  ;;  %4948 = vmatmul.mubr.bf16.vlgmr.msra.gmra.mxu0 %v14993_v61  ;;  %v12137_v43 = vld [vmem:[%s16975_s3 + $0xf64] ss:$16 sps:$4 sm:$0xff]  }
 0x325   : > { %5005 = vmatprep.subr.bf16.mxu1 %v12056_v11  ;;  %5045 = vmatpush1.bf16.msra.mxu0 %v12057_v2  ;;  %v12126_v11 = vld [vmem:[%s16975_s3 + $0xc08] ss:$16 sps:$4 sm:$0xff]   ;;  %v12134_v2 = vld [vmem:[%s16975_s3 + $0xbec] ss:$16 sps:$4 sm:$0xff]  }
 0x326   : > { %10328 = vmatprep.mubr.msk.bf16.mxu0 %vm2337_vm6, %v14809_v51  ;;  %5046 = vmatprep.subr.bf16.mxu0 %v12065_v60  ;;  %v12069_v51 = vld [vmem:[%s16975_s3 + $0xd88] ss:$16 sps:$4 sm:$0xff]   ;;  %v12135_v60 = vld [vmem:[%s16975_s3 + $0xf60] ss:$16 sps:$4 sm:$0xff]  }
 0x328   : > { %5006 = vmatpush1.bf16.msra.mxu1 %v12054_v33  ;;  %v12140_v33 = vld [vmem:[%s16975_s3 + $0xf44] ss:$16 sps:$4 sm:$0xff]  }
 0x329   : > { %5007 = vmatprep.subr.bf16.mxu1 %v12062_v0  ;;  %5047 = vmatpush1.bf16.msra.mxu0 %v12063_v26  ;;  %v12132_v0 = vld [vmem:[%s16975_s3 + $0xbe8] ss:$16 sps:$4 sm:$0xff]   ;;  %v12138_v26 = vld [vmem:[%s16975_s3 + $0xf40] ss:$16 sps:$4 sm:$0xff]  }
 0x32a   : > { %5048 = vmatprep.subr.bf16.mxu0 %v12071_v6  ;;  %v12143_v6 = vld [vmem:[%s16975_s3 + $0x1164] ss:$16 sps:$4 sm:$0xff]  }
 0x32c   : > { %5008 = vmatpush1.bf16.msra.mxu1 %v12060_v15  ;;  %v12146_v15 = vld [vmem:[%s16975_s3 + $0xf24] ss:$16 sps:$4 sm:$0xff]  }
 0x32d   : > { %5009 = vmatprep.subr.bf16.mxu1 %v12068_v45  ;;  %5049 = vmatpush1.bf16.msra.mxu0 %v12069_v51  ;;  %v12144_v45 = vld [vmem:[%s16975_s3 + $0xf20] ss:$16 sps:$4 sm:$0xff]   ;;  %v12149_v51 = vld [vmem:[%s16975_s3 + $0x1144] ss:$16 sps:$4 sm:$0xff]  }
 0x32e   : > { %5050 = vmatprep.subr.bf16.mxu0 %v12077_v25  ;;  %v12152_v25 = vld [vmem:[%s16975_s3 + $0xf04] ss:$16 sps:$4 sm:$0xff]  }
 0x330   : > { %5010 = vmatpush1.bf16.msra.mxu1 %v12066_v9  ;;  %v12147_v9 = vld [vmem:[%s16975_s3 + $0x1140] ss:$16 sps:$4 sm:$0xff]  }
 0x331   : > { %5011 = vmatprep.subr.bf16.mxu1 %v12074_v10  ;;  %5051 = vmatpush1.bf16.msra.mxu0 %v12075_v49  ;;  %v12150_v10 = vld [vmem:[%s16975_s3 + $0xf00] ss:$16 sps:$4 sm:$0xff]   ;;  %v12155_v49 = vld [vmem:[%s16975_s3 + $0x1124] ss:$16 sps:$4 sm:$0xff]  }
 0x332   : > { %5052 = vmatprep.subr.bf16.mxu0 %v12083_v22  ;;  %v12153_v22 = vld [vmem:[%s16975_s3 + $0x1120] ss:$16 sps:$4 sm:$0xff]  }
 0x334   : > { %5012 = vmatpush1.bf16.msra.mxu1 %v12072_v62  ;;  %v12156_v62 = vld [vmem:[%s16975_s3 + $0xee0] ss:$16 sps:$4 sm:$0xff]  }
 0x335   : > { %5013 = vmatprep.subr.bf16.mxu1 %v12080_v16  ;;  %5053 = vmatpush1.bf16.msra.mxu0 %v12081_v5  ;;  %v12161_v16 = vld [vmem:[%s16975_s3 + $0x1104] ss:$16 sps:$4 sm:$0xff]  }
 0x336   : > { %5054 = vmatprep.subr.bf16.mxu0 %v12089_v21  ;;  %v12164_v5 = vld [vmem:[%s16975_s3 + $0xec4] ss:$16 sps:$4 sm:$0xff]   ;;  %v12159_v21 = vld [vmem:[%s16975_s3 + $0x1100] ss:$16 sps:$4 sm:$0xff]  }
 0x338   : > { %5014 = vmatpush1.bf16.msra.mxu1 %v12078_v14  ;;  %v12162_v14 = vld [vmem:[%s16975_s3 + $0xec0] ss:$16 sps:$4 sm:$0xff]  }
 0x339   : > { %5015 = vmatprep.subr.bf16.mxu1 %v12086_v24  ;;  %5055 = vmatpush1.bf16.msra.mxu0 %v12087_v17  ;;  %v12167_v24 = vld [vmem:[%s16975_s3 + $0x10e4] ss:$16 sps:$4 sm:$0xff]  }
 0x33a   : > { %5056 = vmatprep.subr.bf16.mxu0 %v12095_v39  ;;  %v12170_v17 = vld [vmem:[%s16975_s3 + $0xea4] ss:$16 sps:$4 sm:$0xff]   ;;  %v12165_v39 = vld [vmem:[%s16975_s3 + $0x10e0] ss:$16 sps:$4 sm:$0xff]  }
 0x33c   : > { %5016 = vmatpush1.bf16.msra.mxu1 %v12084_v31  ;;  %v12168_v31 = vld [vmem:[%s16975_s3 + $0xea0] ss:$16 sps:$4 sm:$0xff]  }
 0x33d   : > { %5017 = vmatprep.subr.bf16.mxu1 %v12092_v30  ;;  %5057 = vmatpush1.bf16.msra.mxu0 %v12093_v20  ;;  %v12173_v30 = vld [vmem:[%s16975_s3 + $0x10c4] ss:$16 sps:$4 sm:$0xff]  }
 0x33e   : > { %5058 = vmatprep.subr.bf16.mxu0 %v12101_v47  ;;  %v12176_v20 = vld [vmem:[%s16975_s3 + $0xe84] ss:$16 sps:$4 sm:$0xff]   ;;  %v12171_v47 = vld [vmem:[%s16975_s3 + $0x10c0] ss:$16 sps:$4 sm:$0xff]  }
 0x340   : > { %5018 = vmatpush2.bf16.msra.mxu1 %v12090_v55  ;;  %v12174_v55 = vld [vmem:[%s16975_s3 + $0xe80] ss:$16 sps:$4 sm:$0xff]  }
 0x341   : > { %5019 = vmatprep.subr.bf16.mxu1 %v12098_v29  ;;  %5059 = vmatpush1.bf16.msra.mxu0 %v12099_v44  ;;  %v12179_v29 = vld [vmem:[%s16975_s3 + $0x10a4] ss:$16 sps:$4 sm:$0xff]  }
 0x342   : > { %10327 = vmatprep.subr.msk.bf16.mxu0 %vm420_vm0, %v12105_v41  ;;  %v12182_v44 = vld [vmem:[%s16975_s3 + $0x1064] ss:$16 sps:$4 sm:$0xff]   ;;  %v12177_v41 = vld [vmem:[%s16975_s3 + $0x10a0] ss:$16 sps:$4 sm:$0xff]  }
 0x344   : > { %5020 = vmatpush2.bf16.msra.mxu1 %v12096_v50  ;;  %v12185_v50 = vld [vmem:[%s16975_s3 + $0x1084] ss:$16 sps:$4 sm:$0xff]  }
 0x345   : > { %5021 = vmatprep.subr.bf16.mxu1 %v12104_v34  ;;  %5067 = vmatpush2.bf16.msra.mxu0 %v4910_v13  ;;  %v12188_v34 = vld [vmem:[%s16975_s3 + $0x1044] ss:$16 sps:$4 sm:$0xff]   ;;  %v12183_v13 = vld [vmem:[%s16975_s3 + $0x1080] ss:$16 sps:$4 sm:$0xff]  }
 0x346   : > { %5068 = vmatprep.subr.bf16.mxu0 %v12113_v19  ;;  %v12186_v19 = vld [vmem:[%s16975_s3 + $0x1040] ss:$16 sps:$4 sm:$0xff]  }
 0x348   : > { %5022 = vmatpush2.bf16.msra.mxu1 %v12102_v46  ;;  %v12189_v46 = vld [vmem:[%s16975_s3 + $0x1204] ss:$16 sps:$4 sm:$0x3f]  }
 0x349   : > { %5023 = vmatprep.subr.bf16.mxu1 %v12110_v63  ;;  %5069 = vmatpush2.bf16.msra.mxu0 %v12111_v48  ;;  %v12191_v63 = vld [vmem:[%s16975_s3 + $0x1200] ss:$16 sps:$4 sm:$0x3f]   ;;  %v12194_v48 = vld [vmem:[%s16975_s3 + $0x1024] ss:$16 sps:$4 sm:$0xff]  }
 0x34a   : > { %5070 = vmatprep.subr.bf16.mxu0 %v12119_v40  ;;  %v5796_v40 = vsel %vm420_vm0, %v12191_v63, 0  ;;  %v12273_v63 = vld [vmem:[%s16975_s3 + $0x1088] ss:$16 sps:$4 sm:$0xff]  }
 0x34c   : > { %5024 = vmatpush2.bf16.msra.mxu1 %v12108_v27  ;;  %v12192_v27 = vld [vmem:[%s16975_s3 + $0x1020] ss:$16 sps:$4 sm:$0xff]  }
 0x34d   : > { %5025 = vmatprep.subr.bf16.mxu1 %v12116_v37  ;;  %5071 = vmatpush2.bf16.msra.mxu0 %v12117_v23  ;;  %v12197_v37 = vld [vmem:[%s16975_s3 + $0x11e4] ss:$16 sps:$4 sm:$0xff]  }
 0x34e   : > { %5072 = vmatprep.subr.bf16.mxu0 %v12125_v53  ;;  %v12200_v23 = vld [vmem:[%s16975_s3 + $0x1004] ss:$16 sps:$4 sm:$0xff]   ;;  %v12195_v53 = vld [vmem:[%s16975_s3 + $0x11e0] ss:$16 sps:$4 sm:$0xff]  }
 0x350   : > { %5026 = vmatpush2.bf16.msra.mxu1 %v12114_v7  ;;  %v12198_v7 = vld [vmem:[%s16975_s3 + $0x1000] ss:$16 sps:$4 sm:$0xff]  }
 0x351   : > { %5027 = vmatprep.subr.bf16.mxu1 %v12122_v56  ;;  %5073 = vmatpush2.bf16.msra.mxu0 %v12123_v18  ;;  %v12203_v56 = vld [vmem:[%s16975_s3 + $0x11c4] ss:$16 sps:$4 sm:$0xff]  }
 0x352   : > { %5074 = vmatprep.subr.bf16.mxu0 %v12131_v52  ;;  %v12206_v18 = vld [vmem:[%s16975_s3 + $0xfe4] ss:$16 sps:$4 sm:$0xff]   ;;  %v12201_v52 = vld [vmem:[%s16975_s3 + $0x11c0] ss:$16 sps:$4 sm:$0xff]  }
 0x354   : > { %5028 = vmatpush2.bf16.msra.mxu1 %v12120_v42  ;;  %v12204_v42 = vld [vmem:[%s16975_s3 + $0xfe0] ss:$16 sps:$4 sm:$0xff]  }
 0x355   : > { %5029 = vmatprep.subr.bf16.mxu1 %v12128_v35  ;;  %5075 = vmatpush2.bf16.msra.mxu0 %v12129_v1  ;;  %v12209_v35 = vld [vmem:[%s16975_s3 + $0x11a4] ss:$16 sps:$4 sm:$0xff]  }
 0x356   : > { %5807 = vmatprep.subr.bf16.mxu0 %v12137_v43  ;;  %v12212_v1 = vld [vmem:[%s16975_s3 + $0xfc4] ss:$16 sps:$4 sm:$0xff]   ;;  %v12207_v43 = vld [vmem:[%s16975_s3 + $0x11a0] ss:$16 sps:$4 sm:$0xff]  }
 0x358   : > { %5030 = vmatpush2.bf16.msra.mxu1 %v12126_v11  ;;  %5077 = vmatmul.mubr.bf16.vlgmr.msra.gmra.mxu0 %v14971_v32  ;;  %v12141_v32 = vld [vmem:[%s16975_s3 + $0x1160] ss:$16 sps:$4 sm:$0xff]  }
 0x359   : > { %5031 = vmatprep.subr.bf16.mxu1 %v12134_v2  ;;  %5808 = vmatpush1.bf16.msra.mxu0 %v12135_v60  ;;  %v12210_v11 = vld [vmem:[%s16975_s3 + $0xfc0] ss:$16 sps:$4 sm:$0xff]   ;;  %v12215_v2 = vld [vmem:[%s16975_s3 + $0x1184] ss:$16 sps:$4 sm:$0xff]  }
 0x35a   : > { %5839 = vmatprep.mubr.bf16.mxu0 %v13848_v4  ;;  %5809 = vmatprep.subr.bf16.mxu0 %v12140_v33  ;;  %v12218_v60 = vld [vmem:[%s16975_s3 + $0xfa4] ss:$16 sps:$4 sm:$0xff]   ;;  %v12213_v33 = vld [vmem:[%s16975_s3 + $0x1180] ss:$16 sps:$4 sm:$0xff]  }
 0x35c   : > { %5032 = vmatpush2.bf16.msra.mxu1 %v12132_v0  ;;  %v12216_v0 = vld [vmem:[%s16975_s3 + $0xfa0] ss:$16 sps:$4 sm:$0xff]  }
 0x35d   : > { %5850 = vmatprep.subr.bf16.mxu1 %v12143_v6  ;;  %5810 = vmatpush1.bf16.msra.mxu0 %v12138_v26  ;;  %v12221_v26 = vld [vmem:[%s16975_s3 + $0xf6c] ss:$16 sps:$4 sm:$0xff]   ;;  %v12224_v6 = vld [vmem:[%s16975_s3 + $0xf84] ss:$16 sps:$4 sm:$0xff]  }
 0x35e   : > { %5811 = vmatprep.subr.bf16.mxu0 %v12146_v15  ;;  %v12219_v15 = vld [vmem:[%s16975_s3 + $0xf68] ss:$16 sps:$4 sm:$0xff]  }
 0x35f   : > { %5034 = vmatmul.mubr.bf16.vlgmr.msra.gmra.mxu1 %v14993_v61  ;;  %v12158_v61 = vld [vmem:[%s16975_s3 + $0xee4] ss:$16 sps:$4 sm:$0xff]  }
 0x360   : > { %5851 = vmatpush1.bf16.msra.mxu1 %v12141_v32  ;;  %10562 = vmatprep.mubr.msk.bf16.mxu1 %vm2337_vm6, %v13808_v3  ;;  %v12222_v32 = vld [vmem:[%s16975_s3 + $0xf80] ss:$16 sps:$4 sm:$0xff]  }
 0x361   : > { %5852 = vmatprep.subr.bf16.mxu1 %v12149_v51  ;;  %5812 = vmatpush1.bf16.msra.mxu0 %v12144_v45  ;;  %v12227_v45 = vld [vmem:[%s16975_s3 + $0xf4c] ss:$16 sps:$4 sm:$0xff]  }
 0x362   : > { %5813 = vmatprep.subr.bf16.mxu0 %v12152_v25  ;;  %v12233_v51 = vld [vmem:[%s16975_s3 + $0x116c] ss:$16 sps:$4 sm:$0xff]   ;;  %v12225_v25 = vld [vmem:[%s16975_s3 + $0xf48] ss:$16 sps:$4 sm:$0xff]  }
 0x364   : > { %5853 = vmatpush1.bf16.msra.mxu1 %v12147_v9  ;;  %v12230_v9 = vld [vmem:[%s16975_s3 + $0xf2c] ss:$16 sps:$4 sm:$0xff]  }
 0x365   : > { %5854 = vmatprep.subr.bf16.mxu1 %v12155_v49  ;;  %5814 = vmatpush1.bf16.msra.mxu0 %v12150_v10  ;;  %v12231_v10 = vld [vmem:[%s16975_s3 + $0x1168] ss:$16 sps:$4 sm:$0xff]   ;;  %v12239_v49 = vld [vmem:[%s16975_s3 + $0x114c] ss:$16 sps:$4 sm:$0xff]  }
 0x366   : > { %5815 = vmatprep.subr.bf16.mxu0 %v12158_v61  ;;  %v12236_v61 = vld [vmem:[%s16975_s3 + $0xf0c] ss:$16 sps:$4 sm:$0xff]  }
 0x368   : > { %5855 = vmatpush1.bf16.msra.mxu1 %v12153_v22  ;;  %v12237_v22 = vld [vmem:[%s16975_s3 + $0x1148] ss:$16 sps:$4 sm:$0xff]  }
 0x369   : > { %5856 = vmatprep.subr.bf16.mxu1 %v12161_v16  ;;  %5816 = vmatpush1.bf16.msra.mxu0 %v12156_v62  ;;  %v12245_v62 = vld [vmem:[%s16975_s3 + $0x112c] ss:$16 sps:$4 sm:$0xff]   ;;  %v12234_v16 = vld [vmem:[%s16975_s3 + $0xf08] ss:$16 sps:$4 sm:$0xff]  }
 0x36a   : > { %5817 = vmatprep.subr.bf16.mxu0 %v12164_v5  ;;  %v12242_v5 = vld [vmem:[%s16975_s3 + $0xeec] ss:$16 sps:$4 sm:$0xff]  }
 0x36c   : > { %5857 = vmatpush1.bf16.msra.mxu1 %v12159_v21  ;;  %v12251_v21 = vld [vmem:[%s16975_s3 + $0x110c] ss:$16 sps:$4 sm:$0xff]  }
 0x36d   : > { %5858 = vmatprep.subr.bf16.mxu1 %v12167_v24  ;;  %5818 = vmatpush1.bf16.msra.mxu0 %v12162_v14  ;;  %v12240_v14 = vld [vmem:[%s16975_s3 + $0xee8] ss:$16 sps:$4 sm:$0xff]   ;;  %v12248_v24 = vld [vmem:[%s16975_s3 + $0xecc] ss:$16 sps:$4 sm:$0xff]  }
 0x36e   : > { %5819 = vmatprep.subr.bf16.mxu0 %v12170_v17  ;;  %v12249_v17 = vld [vmem:[%s16975_s3 + $0x1108] ss:$16 sps:$4 sm:$0xff]  }
 0x370   : > { %5859 = vmatpush1.bf16.msra.mxu1 %v12165_v39  ;;  %v12257_v39 = vld [vmem:[%s16975_s3 + $0x10ec] ss:$16 sps:$4 sm:$0xff]  }
 0x371   : > { %5860 = vmatprep.subr.bf16.mxu1 %v12173_v30  ;;  %5820 = vmatpush1.bf16.msra.mxu0 %v12168_v31  ;;  %v12246_v31 = vld [vmem:[%s16975_s3 + $0xec8] ss:$16 sps:$4 sm:$0xff]   ;;  %v12254_v30 = vld [vmem:[%s16975_s3 + $0xeac] ss:$16 sps:$4 sm:$0xff]  }
 0x372   : > { %5821 = vmatprep.subr.bf16.mxu0 %v12176_v20  ;;  %v12255_v20 = vld [vmem:[%s16975_s3 + $0x10e8] ss:$16 sps:$4 sm:$0xff]  }
 0x374   : > { %5861 = vmatpush1.bf16.msra.mxu1 %v12171_v47  ;;  %v12263_v47 = vld [vmem:[%s16975_s3 + $0x10cc] ss:$16 sps:$4 sm:$0xff]  }
 0x375   : > { %5862 = vmatprep.subr.bf16.mxu1 %v12179_v29  ;;  %5822 = vmatpush1.bf16.msra.mxu0 %v12174_v55  ;;  %v12252_v55 = vld [vmem:[%s16975_s3 + $0xea8] ss:$16 sps:$4 sm:$0xff]   ;;  %v12260_v29 = vld [vmem:[%s16975_s3 + $0xe8c] ss:$16 sps:$4 sm:$0xff]  }
 0x376   : > { %5823 = vmatprep.subr.bf16.mxu0 %v12182_v44  ;;  %v12261_v44 = vld [vmem:[%s16975_s3 + $0x10c8] ss:$16 sps:$4 sm:$0xff]  }
 0x378   : > { %5863 = vmatpush1.bf16.msra.mxu1 %v12177_v41  ;;  %v12269_v41 = vld [vmem:[%s16975_s3 + $0x10ac] ss:$16 sps:$4 sm:$0xff]  }
 0x379   : > { %5864 = vmatprep.subr.bf16.mxu1 %v12185_v50  ;;  %5824 = vmatpush2.bf16.msra.mxu0 %v12180_v38  ;;  %v12258_v38 = vld [vmem:[%s16975_s3 + $0xe88] ss:$16 sps:$4 sm:$0xff]   ;;  %v12266_v50 = vld [vmem:[%s16975_s3 + $0x106c] ss:$16 sps:$4 sm:$0xff]  }
 0x37a   : > { %5825 = vmatprep.subr.bf16.mxu0 %v12188_v34  ;;  %v12267_v34 = vld [vmem:[%s16975_s3 + $0x10a8] ss:$16 sps:$4 sm:$0xff]  }
 0x37c   : > { %5865 = vmatpush1.bf16.msra.mxu1 %v12183_v13  ;;  %v12275_v13 = vld [vmem:[%s16975_s3 + $0x108c] ss:$16 sps:$4 sm:$0xff]  }
 0x37d   : > { %10561 = vmatprep.subr.msk.bf16.mxu1 %vm420_vm0, %v12189_v46  ;;  %5826 = vmatpush2.bf16.msra.mxu0 %v12186_v19  ;;  %v12264_v19 = vld [vmem:[%s16975_s3 + $0x1068] ss:$16 sps:$4 sm:$0xff]   ;;  %v12272_v46 = vld [vmem:[%s16975_s3 + $0x104c] ss:$16 sps:$4 sm:$0xff]  }
 0x37e   : > { %5827 = vmatprep.subr.bf16.mxu0 %v12194_v48  ;;  %v12279_v48 = vld [vmem:[%s16975_s3 + $0x120c] ss:$16 sps:$4 sm:$0x3f]  }
 0x380   : > { %5873 = vmatpush2.bf16.msra.mxu1 %v5796_v40  ;;  %v12281_v40 = vld [vmem:[%s16975_s3 + $0x1208] ss:$16 sps:$4 sm:$0x3f]  }
 0x381   : > { %5874 = vmatprep.subr.bf16.mxu1 %v12197_v37  ;;  %5828 = vmatpush2.bf16.msra.mxu0 %v12192_v27  ;;  %v12270_v27 = vld [vmem:[%s16975_s3 + $0x1048] ss:$16 sps:$4 sm:$0xff]   ;;  %v12278_v37 = vld [vmem:[%s16975_s3 + $0x102c] ss:$16 sps:$4 sm:$0xff]  }
 0x382   : > { %5829 = vmatprep.subr.bf16.mxu0 %v12200_v23  ;;  %v5802_v23 = vsel %vm420_vm0, %v12281_v40, 0 }
 0x384   : > { %5875 = vmatpush2.bf16.msra.mxu1 %v12195_v53  ;;  %v12287_v53 = vld [vmem:[%s16975_s3 + $0x11ec] ss:$16 sps:$4 sm:$0xff]  }
 0x385   : > { %5876 = vmatprep.subr.bf16.mxu1 %v12203_v56  ;;  %5830 = vmatpush2.bf16.msra.mxu0 %v12198_v7  ;;  %v12276_v7 = vld [vmem:[%s16975_s3 + $0x1028] ss:$16 sps:$4 sm:$0xff]   ;;  %v12284_v56 = vld [vmem:[%s16975_s3 + $0x100c] ss:$16 sps:$4 sm:$0xff]  }
 0x386   : > { %5831 = vmatprep.subr.bf16.mxu0 %v12206_v18  ;;  %v12285_v18 = vld [vmem:[%s16975_s3 + $0x11e8] ss:$16 sps:$4 sm:$0xff]  }
 0x388   : > { %5877 = vmatpush2.bf16.msra.mxu1 %v12201_v52  ;;  %v12293_v52 = vld [vmem:[%s16975_s3 + $0x11cc] ss:$16 sps:$4 sm:$0xff]  }
 0x389   : > { %5878 = vmatprep.subr.bf16.mxu1 %v12209_v35  ;;  %5832 = vmatpush2.bf16.msra.mxu0 %v12204_v42  ;;  %v12282_v42 = vld [vmem:[%s16975_s3 + $0x1008] ss:$16 sps:$4 sm:$0xff]   ;;  %v12290_v35 = vld [vmem:[%s16975_s3 + $0xfec] ss:$16 sps:$4 sm:$0xff]  }
 0x38a   : > { %5833 = vmatprep.subr.bf16.mxu0 %v12212_v1  ;;  %v12291_v1 = vld [vmem:[%s16975_s3 + $0x11c8] ss:$16 sps:$4 sm:$0xff]  }
 0x38c   : > { %5879 = vmatpush2.bf16.msra.mxu1 %v12207_v43  ;;  %v12299_v43 = vld [vmem:[%s16975_s3 + $0x11ac] ss:$16 sps:$4 sm:$0xff]  }
 0x38d   : > { %5880 = vmatprep.subr.bf16.mxu1 %v12215_v2  ;;  %5834 = vmatpush2.bf16.msra.mxu0 %v12210_v11  ;;  %v12288_v11 = vld [vmem:[%s16975_s3 + $0xfe8] ss:$16 sps:$4 sm:$0xff]   ;;  %v12296_v2 = vld [vmem:[%s16975_s3 + $0xfcc] ss:$16 sps:$4 sm:$0xff]  }
 0x38e   : > { %5835 = vmatprep.subr.bf16.mxu0 %v12218_v60  ;;  %v12297_v60 = vld [vmem:[%s16975_s3 + $0x11a8] ss:$16 sps:$4 sm:$0xff]  }
 0x390   : > { %5881 = vmatpush2.bf16.msra.mxu1 %v12213_v33  ;;  %v12305_v33 = vld [vmem:[%s16975_s3 + $0x118c] ss:$16 sps:$4 sm:$0xff]  }
 0x391   : > { %5893 = vmatprep.subr.bf16.mxu1 %v12221_v26  ;;  %5836 = vmatpush2.bf16.msra.mxu0 %v12216_v0  ;;  %v12294_v0 = vld [vmem:[%s16975_s3 + $0xfc8] ss:$16 sps:$4 sm:$0xff]   ;;  %v12302_v26 = vld [vmem:[%s16975_s3 + $0xfac] ss:$16 sps:$4 sm:$0xff]  }
 0x392   : > { %5837 = vmatprep.subr.bf16.mxu0 %v12224_v6  ;;  %v12303_v6 = vld [vmem:[%s16975_s3 + $0x1188] ss:$16 sps:$4 sm:$0xff]  }
 0x393   : > { %5883 = vmatmul.mubr.bf16.vlgmr.msra.gmra.mxu1 %v13821_v57 }
 0x394   : > { %5894 = vmatpush1.bf16.msra.mxu1 %v12219_v15  ;;  %5925 = vmatprep.mubr.bf16.mxu1 %v13848_v4  ;;  %v12228_v4 = vld [vmem:[%s16975_s3 + $0xf28] ss:$16 sps:$4 sm:$0xff]  }
 0x395   : > { %5895 = vmatprep.subr.bf16.mxu1 %v12227_v45  ;;  %5838 = vmatpush2.bf16.msra.mxu0 %v12222_v32  ;;  %v12300_v15 = vld [vmem:[%s16975_s3 + $0xfa8] ss:$16 sps:$4 sm:$0xff]   ;;  %v12308_v32 = vld [vmem:[%s16975_s3 + $0xf8c] ss:$16 sps:$4 sm:$0xff]  }
 0x396   : > { %5936 = vmatprep.subr.bf16.mxu0 %v12233_v51  ;;  %v12306_v45 = vld [vmem:[%s16975_s3 + $0xf88] ss:$16 sps:$4 sm:$0xff]   ;;  %v17021_v51 = vmov 0  }
 0x398   : > { %5896 = vmatpush1.bf16.msra.mxu1 %v12225_v25  ;;  %5840 = vmatmul.mubr.bf16.vlgmr.msra.gmra.mxu0 %v13867_v8  ;;  %v15515_v25 = vpop.f32.mrf.mxu0 }
 0x399   : > { %5897 = vmatprep.subr.bf16.mxu1 %v12230_v9  ;;  %5937 = vmatpush1.bf16.msra.mxu0 %v12231_v10  ;;  %v15519_v10 = vpop.f32.mrf.mxu1 }
 0x39a   : > { %10564 = vmatprep.mubr.msk.bf16.mxu0 %vm2337_vm6, %v13808_v3  ;;  %5938 = vmatprep.subr.bf16.mxu0 %v12239_v49  ;;  %v12243_v3 = vld [vmem:[%s16975_s3 + $0x1128] ss:$16 sps:$4 sm:$0xff]   ;;  %v15517_v9 = vpop.f32.mrf.mxu0 }
 0x39c   : > { %5898 = vmatpush1.bf16.msra.mxu1 %v12228_v4  ;;  %v15521_v49 = vpop.f32.mrf.mxu0  ;;  %v15523_v4 = vpop.f32.mrf.mxu1 }
 0x39d   : > { %5899 = vmatprep.subr.bf16.mxu1 %v12236_v61  ;;  %5939 = vmatpush1.bf16.msra.mxu0 %v12237_v22  ;;  %v12314_v22 = vld [vmem:[%s16977_s5 + $0x384] ss:$16 sps:$4 sm:$0xff]  }
 0x39e   : > { %5940 = vmatprep.subr.bf16.mxu0 %v12245_v62  ;;  %v15531_v61 = vpop.f32.mrf.mxu0  ;;  %v15536_v62 = vpop.f32.mrf.mxu1 }
 0x3a0   : > { %5900 = vmatpush1.bf16.msra.mxu1 %v12234_v16  ;;  %v15538_v16 = vpop.f32.mrf.mxu0 }
 0x3a1   : > { %5901 = vmatprep.subr.bf16.mxu1 %v12242_v5  ;;  %5941 = vmatpush1.bf16.msra.mxu0 %v12243_v3  ;;  %v12312_v5 = vld [vmem:[%s16977_s5 + $0x380] ss:$16 sps:$4 sm:$0xff]   ;;  %v12317_v3 = vld [vmem:[%s16977_s5 + $0x364] ss:$16 sps:$4 sm:$0xff]   ;;  %v3151_v59 = vadd.f32 %v15538_v16, %v14474_v54 }
 0x3a2   : > { %5942 = vmatprep.subr.bf16.mxu0 %v12251_v21  ;;  %v12315_v21 = vld [vmem:[%s16977_s5 + $0x360] ss:$16 sps:$4 sm:$0xff]  }
 0x3a4   : > { %5902 = vmatpush1.bf16.msra.mxu1 %v12240_v14  ;;  %v15549_v14 = vpop.f32.mrf.mxu1 }
 0x3a5   : > { %5903 = vmatprep.subr.bf16.mxu1 %v12248_v24  ;;  %5943 = vmatpush1.bf16.msra.mxu0 %v12249_v17  ;;  %v15551_v24 = vpop.f32.mrf.mxu0  ;;  %v12339_v17 = vld [vmem:[%s16977_s5 + $0x564] ss:$16 sps:$4 sm:$0x7f]  }
 0x3a6   : > { %5944 = vmatprep.subr.bf16.mxu0 %v12257_v39  ;;  %v12341_v39 = vld [vmem:[%s16977_s5 + $0x560] ss:$16 sps:$4 sm:$0x7f]  }
 0x3a8   : > { %5904 = vmatpush1.bf16.msra.mxu1 %v12246_v31  ;;  %v12320_v31 = vld [vmem:[%s16977_s5 + $0x344] ss:$16 sps:$4 sm:$0xff]  }
 0x3a9   : > { %5905 = vmatprep.subr.bf16.mxu1 %v12254_v30  ;;  %5945 = vmatpush1.bf16.msra.mxu0 %v12255_v20  ;;  %v12347_v30 = vld [vmem:[%s16977_s5 + $0x544] ss:$16 sps:$4 sm:$0xff]   ;;  %v15565_v20 = vpop.f32.mrf.mxu1 }
 0x3aa   : > { %5946 = vmatprep.subr.bf16.mxu0 %v12263_v47  ;;  %v6724_v47 = vsel %vm709_vm3, %v12341_v39, 0 }
 0x3ac   : > { %5906 = vmatpush1.bf16.msra.mxu1 %v12252_v55  ;;  %v12345_v55 = vld [vmem:[%s16977_s5 + $0x540] ss:$16 sps:$4 sm:$0xff]  }
 0x3ad   : > { %5907 = vmatprep.subr.bf16.mxu1 %v12260_v29  ;;  %5947 = vmatpush1.bf16.msra.mxu0 %v12261_v44  ;;  %v15572_v29 = vpop.f32.mrf.mxu0  ;;  %v12318_v44 = vld [vmem:[%s16977_s5 + $0x340] ss:$16 sps:$4 sm:$0xff]  }
 0x3ae   : > { %5948 = vmatprep.subr.bf16.mxu0 %v12269_v41  ;;  %v12323_v41 = vld [vmem:[%s16977_s5 + $0x324] ss:$16 sps:$4 sm:$0xff]  }
 0x3b0   : > { %5908 = vmatpush1.bf16.msra.mxu1 %v12258_v38  ;;  %v15580_v38 = vpop.f32.mrf.mxu1 }
 0x3b1   : > { %5909 = vmatprep.subr.bf16.mxu1 %v12266_v50  ;;  %5949 = vmatpush1.bf16.msra.mxu0 %v12267_v34  ;;  %v15582_v50 = vpop.f32.mrf.mxu0  ;;  %v12321_v34 = vld [vmem:[%s16977_s5 + $0x320] ss:$16 sps:$4 sm:$0xff]  }
 0x3b2   : > { %5950 = vmatprep.subr.bf16.mxu0 %v12275_v13  ;;  %v12326_v13 = vld [vmem:[%s16977_s5 + $0x304] ss:$16 sps:$4 sm:$0xff]   ;;  %v3157_v16 = vadd.f32 %v15582_v50, %v14498_v28 }
 0x3b4   : > { %5910 = vmatpush2.bf16.msra.mxu1 %v12264_v19  ;;  %v15590_v19 = vpop.f32.mrf.mxu1 }
 0x3b5   : > { %5911 = vmatprep.subr.bf16.mxu1 %v12272_v46  ;;  %5951 = vmatpush1.bf16.msra.mxu0 %v12273_v63  ;;  %v15592_v46 = vpop.f32.mrf.mxu0  ;;  %v12324_v63 = vld [vmem:[%s16977_s5 + $0x300] ss:$16 sps:$4 sm:$0xff]  }
 0x3b6   : > { %10563 = vmatprep.subr.msk.bf16.mxu0 %vm420_vm0, %v12279_v48  ;;  %v12329_v48 = vld [vmem:[%s16977_s5 + $0x2e4] ss:$16 sps:$4 sm:$0xff]   ;;  %v15600_v40 = vpop.f32.mrf.mxu1 }
 0x3b8   : > { %5912 = vmatpush2.bf16.msra.mxu1 %v12270_v27  ;;  %v15602_v27 = vpop.f32.mrf.mxu0 }
 0x3b9   : > { %5913 = vmatprep.subr.bf16.mxu1 %v12278_v37  ;;  %5959 = vmatpush2.bf16.msra.mxu0 %v5802_v23  ;;  %v15604_v37 = vpop.f32.mrf.mxu1  ;;  %v12327_v23 = vld [vmem:[%s16977_s5 + $0x2e0] ss:$16 sps:$4 sm:$0xff]  }
 0x3ba   : > { %5960 = vmatprep.subr.bf16.mxu0 %v12287_v53  ;;  %v12332_v53 = vld [vmem:[%s16977_s5 + $0x2c4] ss:$16 sps:$4 sm:$0xff]  }
 0x3bc   : > { %5914 = vmatpush2.bf16.msra.mxu1 %v12276_v7  ;;  %v15612_v7 = vpop.f32.mrf.mxu0 }
 0x3bd   : > { %5915 = vmatprep.subr.bf16.mxu1 %v12284_v56  ;;  %5961 = vmatpush2.bf16.msra.mxu0 %v12285_v18  ;;  %v15614_v56 = vpop.f32.mrf.mxu1  ;;  %v12330_v18 = vld [vmem:[%s16977_s5 + $0x2c0] ss:$16 sps:$4 sm:$0xff]  }
 0x3be   : > { %5962 = vmatprep.subr.bf16.mxu0 %v12293_v52  ;;  %v12335_v52 = vld [vmem:[%s16977_s5 + $0x4a4] ss:$16 sps:$4 sm:$0xff]  }
 0x3c0   : > { %5916 = vmatpush2.bf16.msra.mxu1 %v12282_v42  ;;  %v15622_v42 = vpop.f32.mrf.mxu0 }
 0x3c1   : > { %5917 = vmatprep.subr.bf16.mxu1 %v12290_v35  ;;  %5963 = vmatpush2.bf16.msra.mxu0 %v12291_v1  ;;  %17022 = vst [vmem:[#allocation10_spill] sm:$0xff] %v15622_v42  ;;  %v3240_v35 = vpop.f32.mrf.mxu1 }
 0x3c2   : > { %5964 = vmatprep.subr.bf16.mxu0 %v12299_v43  ;;  %v15624_v1 = vpop.f32.mrf.mxu0  ;;  %v12333_v43 = vld [vmem:[%s16977_s5 + $0x4a0] ss:$16 sps:$4 sm:$0xff]  }
 0x3c4   : > { %5918 = vmatpush2.bf16.msra.mxu1 %v12288_v11  ;;  %v12338_v11 = vld [vmem:[%s16977_s5 + $0x484] ss:$16 sps:$4 sm:$0xff]  }
 0x3c5   : > { %5919 = vmatprep.subr.bf16.mxu1 %v12296_v2  ;;  %5965 = vmatpush2.bf16.msra.mxu0 %v12297_v60  ;;  %v3242_v2 = vpop.f32.mrf.mxu1  ;;  %v4047_v60 = vpop.f32.mrf.mxu0 }
 0x3c6   : > { %5966 = vmatprep.subr.bf16.mxu0 %v12305_v33  ;;  %v12336_v33 = vld [vmem:[%s16977_s5 + $0x480] ss:$16 sps:$4 sm:$0xff]  }
 0x3c8   : > { %5920 = vmatpush2.bf16.msra.mxu1 %v12294_v0  ;;  %v12344_v0 = vld [vmem:[%s16977_s5 + $0x464] ss:$16 sps:$4 sm:$0xff]  }
 0x3c9   : > { %5921 = vmatprep.subr.bf16.mxu1 %v12302_v26  ;;  %5967 = vmatpush2.bf16.msra.mxu0 %v12303_v6  ;;  %v4088_v26 = vpop.f32.mrf.mxu1  ;;  %v4049_v6 = vpop.f32.mrf.mxu0 }
 0x3cc   : > { %5922 = vmatpush2.bf16.msra.mxu1 %v12300_v15  ;;  %5969 = vmatmul.mubr.bf16.vlgmr.msra.gmra.mxu0 %v13821_v57  ;;  %v12309_v57 = vld [vmem:[%s16977_s5 + $0x3a0] ss:$16 sps:$4 sm:$0xff]  }
 0x3cd   : > { %5923 = vmatprep.subr.bf16.mxu1 %v12308_v32  ;;  %v12342_v15 = vld [vmem:[%s16977_s5 + $0x460] ss:$16 sps:$4 sm:$0xff]   ;;  %v4090_v32 = vpop.f32.mrf.mxu1 }
 0x3d0   : > { %5924 = vmatpush2.bf16.msra.mxu1 %v12306_v45  ;;  %v4051_v45 = vpop.f32.mrf.mxu0 }
 0x3d1   : > { %10741 = vmatprep.subr.msk.bf16.mxu1 %vm709_vm3, %v12339_v17 }
 0x3d3   : > { %5926 = vmatmul.mubr.bf16.vlgmr.msra.gmra.mxu1 %v13867_v8  ;;  %v12311_v8 = vld [vmem:[%s16977_s5 + $0x3a4] ss:$16 sps:$4 sm:$0xff]  }
 0x3d4   : > { %6808 = vmatprep.mubr.bf16.mxu1 %v17021_v51  ;;  %6735 = vmatprep.subr.bf16.mxu0 %v12311_v8  ;;  %v4174_v8 = vpop.f32.mrf.mxu0 }
 0x3d5   : > { %6736 = vmatpush1.bf16.msra.mxu0 %v12309_v57  ;;  %6781 = vmatpush1.bf16.msra.mxu1 %v6724_v47  ;;  %v4092_v57 = vpop.f32.mrf.mxu1 }
 0x3d6   : > { %6737 = vmatprep.subr.bf16.mxu0 %v12314_v22  ;;  %6782 = vmatprep.subr.bf16.mxu1 %v12347_v30 }
 0x3d7   : > { %v4094_v22 = vpop.f32.mrf.mxu1 }
 0x3d9   : > { %6738 = vmatpush1.bf16.msra.mxu0 %v12312_v5  ;;  %6783 = vmatpush1.bf16.msra.mxu1 %v12345_v55  ;;  %v4176_v5 = vpop.f32.mrf.mxu0 }
 0x3da   : > { %6739 = vmatprep.subr.bf16.mxu0 %v12317_v3  ;;  %v4131_v3 = vpop.f32.mrf.mxu1 }
 0x3db   : > { %v4175_v42 = vadd.f32 %v4174_v8, %v4131_v3 }
 0x3dc   : > { %v4133_v17 = vpop.f32.mrf.mxu1 }
 0x3dd   : > { %6740 = vmatpush1.bf16.msra.mxu0 %v12315_v21  ;;  %v4178_v21 = vpop.f32.mrf.mxu0  ;;  %v4177_v28 = vadd.f32 %v4176_v5, %v4133_v17 }
 0x3de   : > { %6741 = vmatprep.subr.bf16.mxu0 %v12320_v31  ;;  %v4135_v31 = vpop.f32.mrf.mxu1 }
 0x3df   : > { %v4180_v39 = vpop.f32.mrf.mxu0 }
 0x3e0   : > { %v4137_v47 = vpop.f32.mrf.mxu1 }
 0x3e1   : > { %6742 = vmatpush1.bf16.msra.mxu0 %v12318_v44 }
 0x3e2   : > { %6743 = vmatprep.subr.bf16.mxu0 %v12323_v41  ;;  %v15643_v44 = vpop.f32.mrf.mxu1 }
 0x3e3   : > { %17024 = vst [vmem:[#allocation16_spill] sm:$0xff] %v15643_v44  ;;  %v2517_v44 = vadd.f32 %v15515_v25, %v15519_v10 }
 0x3e4   : > { %v15641_v30 = vpop.f32.mrf.mxu0 }
 0x3e5   : > { %6744 = vmatpush1.bf16.msra.mxu0 %v12321_v34  ;;  %17023 = vst [vmem:[#allocation5_spill] sm:$0xff] %v15641_v30  ;;  %v4994_v34 = vpop.f32.mrf.mxu1  ;;  %v2523_v30 = vadd.f32 %v15531_v61, %v15549_v14  ;;  %v3237_v25 = vadd.f32 %v15604_v37, %v2517_v44  ;;  %v4089_v61 = vadd.f32 %v4088_v26, %v15624_v1  ;;  %v17030_v1 = vld [vmem:[#allocation10_spill] sm:$0xff]  ;;  %v5987_v44 = vld [vmem:[%s16976_s4] sm:$0xf] }
 0x3e6   : > { %6745 = vmatprep.subr.bf16.mxu0 %v12326_v13  ;;  %v4951_v55 = vpop.f32.mrf.mxu0  ;;  %v4093_v14 = vadd.f32 %v4092_v57, %v4049_v6 }
 0x3e8   : > { %v15645_v41 = vpop.f32.mrf.mxu0 }
 0x3e9   : > { %6746 = vmatpush1.bf16.msra.mxu0 %v12324_v63  ;;  %17025 = vst [vmem:[#allocation6_spill] sm:$0xff] %v15645_v41  ;;  %v4996_v63 = vpop.f32.mrf.mxu1 }
 0x3ea   : > { %6747 = vmatprep.subr.bf16.mxu0 %v12329_v48  ;;  %v4955_v13 = vpop.f32.mrf.mxu0 }
 0x3ed   : > { %6748 = vmatpush1.bf16.msra.mxu0 %v12327_v23  ;;  %v4998_v23 = vpop.f32.mrf.mxu1 }
 0x3ee   : > { %6749 = vmatprep.subr.bf16.mxu0 %v12332_v53  ;;  %v4999_v26 = vadd.f32 %v4998_v23, %v4955_v13 }
 0x3f1   : > { %6750 = vmatpush1.bf16.msra.mxu0 %v12330_v18 }
 0x3f2   : > { %6751 = vmatprep.subr.bf16.mxu0 %v12335_v52 }
 0x3f5   : > { %6752 = vmatpush2.bf16.msra.mxu0 %v12333_v43 }
 0x3f6   : > { %6753 = vmatprep.subr.bf16.mxu0 %v12338_v11 }
 0x3f9   : > { %6754 = vmatpush2.bf16.msra.mxu0 %v12336_v33 }
 0x3fa   : > { %6755 = vmatprep.subr.bf16.mxu0 %v12344_v0 }
 0x3fd   : > { %6756 = vmatpush2.bf16.msra.mxu0 %v12342_v15 }
 0x418   : > { %v5078_v48 = vpop.f32.mrf.mxu0 }
 0x41a   : > { %v5080_v53 = vpop.f32.mrf.mxu0 }
 0x41c   : > { %v15647_v52 = vpop.f32.mrf.mxu0 }
 0x41d   : > { %17026 = vst [vmem:[#allocation9_spill] sm:$0xff] %v15647_v52  ;;  %v3153_v52 = vadd.f32 %v15551_v24, %v14482_v36  ;;  %v3194_v36 = vadd.f32 %v15565_v20, %v3151_v59  ;;  %v3200_v59 = vadd.f32 %v15600_v40, %v3157_v16  ;;  %v3280_v20 = vadd.f32 %v15592_v46, %v3237_v25 }
 0x41e   : > { %v15649_v11 = vpop.f32.mrf.mxu0 }
 0x41f   : > { %v5035_v18 = vpop.f32.mrf.mxu1  ;;  %17027 = vst [vmem:[#allocation7_spill] sm:$0xff] %v15649_v11  ;;  %v2519_v11 = vadd.f32 %v15517_v9, %v15523_v4  ;;  %v3243_v4 = vadd.f32 %v3242_v2, %v2523_v30  ;;  %v4183_v6 = vadd.f32 %v4089_v61, %v3194_v36  ;;  %v4185_v57 = vadd.f32 %v4175_v42, %v3280_v20 }
 0x421   : > { %v5037_v43 = vpop.f32.mrf.mxu1  ;;  %v3239_v10 = vadd.f32 %v15614_v56, %v2519_v11  ;;  %v4179_v56 = vadd.f32 %v4178_v21, %v4135_v31  ;;  %v17033_v31 = vld [vmem:[#allocation6_spill] sm:$0xff] }
 0x422   : > { %v5081_v21 = vadd.f32 %v5080_v53, %v5037_v43  ;;  %v4997_v30 = vadd.f32 %v4996_v63, %v17033_v31  ;;  %v17037_v63 = vld [vmem:[#allocation14_spill] sm:$0xff] }
 0x423   : > { %v5039_v33 = vpop.f32.mrf.mxu1  ;;  %v3282_v2 = vadd.f32 %v15602_v27, %v3239_v10  ;;  %v17031_v27 = vld [vmem:[#allocation5_spill] sm:$0xff]  ;;  %v6004_v36 = vrot.slane %v5987_v44, %v17037_v63 }
 0x425   : > { %v5041_v15 = vpop.f32.mrf.mxu1  ;;  %v4186_v8 = vadd.f32 %v4177_v28, %v3282_v2 }
 0x426   : > { %v17036_v43 = vld [vmem:[#allocation7_spill] sm:$0xff] }
 0x427   : > { %v5085_v11 = vadd.f32 %v17036_v43, %v5041_v15  ;;  %v5090_v10 = vadd.f32 %v5081_v21, %v4186_v8  ;;  %v12363_v43 = vld [vmem:[%s16977_s5 + $0x4e0] ss:$16 sps:$4 sm:$0xff]  }
 0x453   : > { %v15653_v58 = vpop.f32.mrf.mxu1 }
 0x454   : > { %17029 = vst [vmem:[#allocation18_spill] sm:$0xff] %v15653_v58  ;;  %v3155_v58 = vadd.f32 %v15572_v29, %v14490_v12  ;;  %v4095_v29 = vadd.f32 %v4094_v22, %v4051_v45  ;;  %v4995_v22 = vadd.f32 %v4994_v34, %v4951_v55  ;;  %v17034_v55 = vld [vmem:[#allocation9_spill] sm:$0xff] }
 0x455   : > { %v5886_v54 = vpop.f32.mrf.mxu1  ;;  %v5083_v34 = vadd.f32 %v17034_v55, %v5039_v33 }
 0x456   : > { %v3198_v12 = vadd.f32 %v15590_v19, %v3155_v58  ;;  %v4188_v45 = vadd.f32 %v4095_v29, %v3200_v59  ;;  %v12351_v59 = vld [vmem:[%s16977_s5 + $0x520] ss:$16 sps:$4 sm:$0xff]  }
 0x457   : > { %v5888_v50 = vpop.f32.mrf.mxu1 }
 0x458   : > { %v15651_v0 = vpop.f32.mrf.mxu0  ;;  %v4187_v19 = vadd.f32 %v4093_v14, %v3198_v12 }
 0x459   : > { %17028 = vst [vmem:[#allocation8_spill] sm:$0xff] %v15651_v0  ;;  %v2521_v0 = vadd.f32 %v15521_v49, %v15536_v62  ;;  %v3196_v49 = vadd.f32 %v15580_v38, %v3153_v52  ;;  %v4091_v62 = vadd.f32 %v4090_v32, %v4047_v60  ;;  %v3286_v60 = vadd.f32 %v17030_v1, %v3243_v4  ;;  %v5890_v40 = vpop.f32.mrf.mxu1  ;;  %v12353_v1 = vld [vmem:[%s16977_s5 + $0x524] ss:$16 sps:$4 sm:$0xff]  }
 0x45a   : > { %v5843_v51 = vpop.f32.mrf.mxu0  ;;  %v5079_v32 = vadd.f32 %v5078_v48, %v5035_v18  ;;  %v17035_v18 = vld [vmem:[#allocation12_spill] sm:$0xff]  ;;  %6784 = vmatprep.subr.bf16.mxu1 %v12353_v1 }
 0x45b   : > { %v3241_v9 = vadd.f32 %v3240_v35, %v2521_v0  ;;  %v4181_v35 = vadd.f32 %v4180_v39, %v4137_v47  ;;  %v4184_v58 = vadd.f32 %v4091_v62, %v3196_v49  ;;  %v17032_v39 = vld [vmem:[#allocation16_spill] sm:$0xff]  ;;  %v5092_v47 = vadd.f32 %v4999_v26, %v4188_v45  ;;  %v17039_v49 = vld [vmem:[#allocation18_spill] sm:$0xff]  ;;  %v17040_v62 = vld [vmem:[#allocation13_spill] sm:$0xff]  ;;  %6785 = vmatpush1.bf16.msra.mxu1 %v12351_v59 }
 0x45c   : > { %v5845_v41 = vpop.f32.mrf.mxu0  ;;  %v5887_v13 = vadd.f32 %v5886_v54, %v5843_v51  ;;  %v5089_v48 = vadd.f32 %v5079_v32, %v4185_v57  ;;  %v6000_v52 = vrot.slane %v5987_v44, %v17035_v18  ;;  %v5091_v51 = vadd.f32 %v4997_v30, %v4187_v19  ;;  %v17041_v45 = vld [vmem:[#allocation11_spill] sm:$0xff] }
 0x45d   : > { %v3284_v38 = vadd.f32 %v15612_v7, %v3241_v9  ;;  %v4190_v3 = vadd.f32 %v4181_v35, %v3286_v60  ;;  %v4993_v7 = vadd.f32 %v17032_v39, %v17031_v27  ;;  %v5088_v53 = vadd.f32 %v4995_v22, %v4184_v58  ;;  %v12356_v30 = vld [vmem:[%s16977_s5 + $0x424] ss:$16 sps:$4 sm:$0xff]  }
 0x45e   : > { %v5847_v24 = vpop.f32.mrf.mxu0  ;;  %v5889_v0 = vadd.f32 %v5888_v50, %v5845_v41  ;;  %v5996_v14 = vrot.slane %v5987_v44, %v17040_v62  ;;  %v12348_v50 = vld [vmem:[%s16977_s5 + $0x440] ss:$16 sps:$4 sm:$0xff]   ;;  %v5992_v57 = vrot.slane %v5987_v44, %v17041_v45 }
 0x45f   : > { %v4189_v46 = vadd.f32 %v4179_v56, %v3284_v38  ;;  %v5891_v17 = vadd.f32 %v5890_v40, %v5847_v24  ;;  %v5980_v33 = vadd.f32 %v5887_v13, %v5088_v53  ;;  %v5087_v20 = vadd.f32 %v4993_v7, %v4183_v6  ;;  %v12354_v44 = vld [vmem:[%s16977_s5 + $0x420] ss:$16 sps:$4 sm:$0xff]  }
 0x460   : > { %v17038_v54 = vld [vmem:[#allocation8_spill] sm:$0xff]  ;;  %v5094_v56 = vadd.f32 %v5085_v11, %v4190_v3  ;;  %v5983_v35 = vadd.f32 %v5889_v0, %v5091_v51  ;;  %v12368_v0 = vld [vmem:[%s16977_s5 + $0x3e4] ss:$16 sps:$4 sm:$0xff]  }
 0x461   : > { %v5984_v9 = vadd.f32 %v5891_v17, %v5092_v47  ;;  %v5885_v61 = vadd.f32 %v17039_v49, %v17038_v54  ;;  %v5093_v29 = vadd.f32 %v5083_v34, %v4189_v46  ;;  %v15712_v8 = vadd.f32 %v5996_v14, %v5980_v33  ;;  %v12359_v47 = vld [vmem:[%s16977_s5 + $0x504] ss:$16 sps:$4 sm:$0xff]   ;;  %v12357_v13 = vld [vmem:[%s16977_s5 + $0x500] ss:$16 sps:$4 sm:$0xff]  }
 0x462   : > { %v15717_v46 = vadd.f32 %v5992_v57, %v5983_v35  ;;  %6786 = vmatprep.subr.bf16.mxu1 %v12359_v47  ;;  %v12360_v53 = vld [vmem:[%s16977_s5 + $0x400] ss:$16 sps:$4 sm:$0xff]  }
 0x463   : > { %v15709_v60 = vadd.f32 %v5996_v14, %v5984_v9  ;;  %v5979_v32 = vadd.f32 %v5885_v61, %v5087_v20  ;;  %v6018_v27 = vmax.f32 %v15712_v8, 0.0  ;;  %6787 = vmatpush1.bf16.msra.mxu1 %v12357_v13  ;;  %v12377_v9 = vld [vmem:[%s16977_s5 + $0x3ac] ss:$16 sps:$4 sm:$0xff]  }
 0x465   : > { %v6022_v3 = vmax.f32 %v15709_v60, 0.0  ;;  %v15723_v39 = vadd.f32 %v5992_v57, %v5979_v32 }
 0x467   : > { %v11369_v55 = vpack.i.bf16 %v6022_v3, %v6018_v27  ;;  %v6017_v34 = vmax.f32 %v15723_v39, 0.0 }
 0x48c   : > { %v5970_v37 = vpop.f32.mrf.mxu0 }
 0x48e   : > { %v5972_v5 = vpop.f32.mrf.mxu0 }
 0x490   : > { %v5974_v16 = vpop.f32.mrf.mxu0 }
 0x492   : > { %v5976_v2 = vpop.f32.mrf.mxu0 }
 0x493   : > { %v5927_v42 = vpop.f32.mrf.mxu1 }
 0x494   : > { %v5971_v23 = vadd.f32 %v5970_v37, %v5927_v42  ;;  %v12350_v37 = vld [vmem:[%s16977_s5 + $0x444] ss:$16 sps:$4 sm:$0xff]   ;;  %v6021_v42 = vmax.f32 %v15717_v46, 0.0 }
 0x495   : > { %v5929_v25 = vpop.f32.mrf.mxu1  ;;  %6757 = vmatprep.subr.bf16.mxu0 %v12350_v37 }
 0x496   : > { %v5981_v4 = vadd.f32 %v5971_v23, %v5089_v48  ;;  %v5973_v24 = vadd.f32 %v5972_v5, %v5929_v25  ;;  %6758 = vmatpush2.bf16.msra.mxu0 %v12348_v50  ;;  %v12362_v23 = vld [vmem:[%s16977_s5 + $0x404] ss:$16 sps:$4 sm:$0xff]   ;;  %v11374_v11 = vpack.i.bf16 %v6021_v42, %v6017_v34  ;;  %v12366_v25 = vld [vmem:[%s16977_s5 + $0x3e0] ss:$16 sps:$4 sm:$0xff]  }
 0x497   : > { %v5931_v12 = vpop.f32.mrf.mxu1  ;;  %6759 = vmatprep.subr.bf16.mxu0 %v12356_v30  ;;  %v12375_v30 = vld [vmem:[%s16977_s5 + $0x3a8] ss:$16 sps:$4 sm:$0xff]  }
 0x498   : > { %v15695_v28 = vadd.f32 %v6000_v52, %v5981_v4  ;;  %v5982_v41 = vadd.f32 %v5973_v24, %v5090_v10  ;;  %v5975_v15 = vadd.f32 %v5974_v16, %v5931_v12  ;;  %v12371_v16 = vld [vmem:[%s16977_s5 + $0x4c4] ss:$16 sps:$4 sm:$0xff]   ;;  %v12372_v4 = vld [vmem:[%s16977_s5 + $0x3c0] ss:$16 sps:$4 sm:$0xff]  }
 0x499   : > { %v5933_v38 = vpop.f32.mrf.mxu1  ;;  %v12374_v10 = vld [vmem:[%s16977_s5 + $0x3c4] ss:$16 sps:$4 sm:$0xff]   ;;  %v12381_v24 = vld [vmem:[%s16977_s5 + $0x56c] ss:$16 sps:$4 sm:$0x7f]  }
 0x49a   : > { %v6012_v26 = vadd.f32 %v6004_v36, %v5982_v41  ;;  %v5985_v58 = vadd.f32 %v5975_v15, %v5093_v29  ;;  %v5977_v19 = vadd.f32 %v5976_v2, %v5933_v38  ;;  %v6019_v6 = vmax.f32 %v15695_v28, 0.0  ;;  %6760 = vmatpush2.bf16.msra.mxu0 %v12354_v44 }
 0x49b   : > { %6761 = vmatprep.subr.bf16.mxu0 %v12362_v23  ;;  %v12378_v23 = vld [vmem:[%s16977_s5 + $0x388] ss:$16 sps:$4 sm:$0xff]  }
 0x49c   : > { %v6020_v22 = vmax.f32 %v6012_v26, 0.0  ;;  %v15715_v40 = vadd.f32 %v6000_v52, %v5985_v58  ;;  %v5986_v5 = vadd.f32 %v5977_v19, %v5094_v56  ;;  %v12365_v52 = vld [vmem:[%s16977_s5 + $0x4e4] ss:$16 sps:$4 sm:$0xff]  }
 0x49d   : > { %6788 = vmatprep.subr.bf16.mxu1 %v12365_v52 }
 0x49e   : > { %v6016_v21 = vadd.f32 %v6004_v36, %v5986_v5  ;;  %v11359_v17 = vpack.i.bf16 %v6020_v22, %v6019_v6  ;;  %v6023_v7 = vmax.f32 %v15715_v40, 0.0  ;;  %6762 = vmatpush2.bf16.msra.mxu0 %v12360_v53  ;;  %6789 = vmatpush1.bf16.msra.mxu1 %v12363_v43  ;;  %v12369_v36 = vld [vmem:[%s16977_s5 + $0x4c0] ss:$16 sps:$4 sm:$0xff]   ;;  %v12386_v43 = vld [vmem:[%s16977_s5 + $0x36c] ss:$16 sps:$4 sm:$0xff]  }
 0x49f   : > { %6763 = vmatprep.subr.bf16.mxu0 %v12368_v0  ;;  %6790 = vmatprep.subr.bf16.mxu1 %v12371_v16  ;;  %v12384_v0 = vld [vmem:[%s16977_s5 + $0x368] ss:$16 sps:$4 sm:$0xff]  }
 0x4a0   : > { %v6024_v31 = vmax.f32 %v6016_v21, 0.0  ;;  %11360 = vrot.lane.b32.xlu0 %v11359_v17, %s12937_s26  ;;  %v12387_v16 = vld [vmem:[%s16977_s5 + $0x548] ss:$16 sps:$4 sm:$0xff]  }
 0x4a2   : > { %v11364_v48 = vpack.i.bf16 %v6024_v31, %v6023_v7  ;;  %6764 = vmatpush2.bf16.msra.mxu0 %v12366_v25  ;;  %6791 = vmatpush1.bf16.msra.mxu1 %v12369_v36  ;;  %v12392_v25 = vld [vmem:[%s16977_s5 + $0x34c] ss:$16 sps:$4 sm:$0xff]  }
 0x4a3   : > { %6765 = vmatprep.subr.bf16.mxu0 %v12374_v10  ;;  %6817 = vmatprep.subr.bf16.mxu1 %v12377_v9  ;;  %v12395_v36 = vld [vmem:[%s16977_s5 + $0x52c] ss:$16 sps:$4 sm:$0xff]   ;;  %v17042_v10 = vmov 0   ;;  %v12390_v9 = vld [vmem:[%s16977_s5 + $0x348] ss:$16 sps:$4 sm:$0xff]  }
 0x4a4   : > { %11365 = vrot.lane.b32.xlu1 %v11364_v48, %s12937_s26  ;;  %11370 = vrot.lane.b32.xlu0 %v11369_v55, %s12937_s26  ;;  %v12383_v48 = vld [vmem:[%s16977_s5 + $0x568] ss:$16 sps:$4 sm:$0x7f]  }
 0x4a5   : > { %v6730_v53 = vsel %vm709_vm3, %v12383_v48, 0  ;;  %v12458_v48 = vld [vmem:[%s16977_s5 + $0x3ec] ss:$16 sps:$4 sm:$0xff]  }
 0x4a6   : > { %6766 = vmatpush2.bf16.msra.mxu0 %v12372_v4  ;;  %v12393_v4 = vld [vmem:[%s16977_s5 + $0x528] ss:$16 sps:$4 sm:$0xff]  }
 0x4a7   : > { %10743 = vmatprep.subr.msk.bf16.mxu0 %vm709_vm3, %v12381_v24  ;;  %v12398_v24 = vld [vmem:[%s16977_s5 + $0x32c] ss:$16 sps:$4 sm:$0xff]  }
 0x4a8   : > { %11375 = vrot.lane.b32.xlu1 %v11374_v11, %s12937_s26  ;;  %v12389_v11 = vld [vmem:[%s16977_s5 + $0x54c] ss:$16 sps:$4 sm:$0xff]   ;;  %s9339_s26 = sshll.u32 %s324_s22, 4  ;;  %s9340_s26 = int_to_ptr.vmem [resolvable:$true] %s9339_s26 }
 0x4a9   : > { %s12873_s28 = scalar_lea.vmem %s9340_s26, 16  ;;  %p12880_p0 = scmp.lt.s32.totalorder %s9340_s26, %s12878_s14 }
 0x4aa   : > { %p12874_p11 = scmp.ne.s32.totalorder %s9340_s26, %s12873_s28  ;;  %p12881_p1 = scmp.lt.s32.totalorder %s12879_s13, %s12873_s28 }
 0x4ac   : > { %p12875_p12 = pnand %p12874_p11, %p13027_p5  ;;  %p12882_p2 = por %p12881_p1, %p12880_p0 }
 0x4ae   : > { %p12876_p13 = pneg %p12875_p12 }
 0x4b0   : > { %p12883_p3 = pnand %p12882_p2, %p12876_p13 }
 0x512   : > { %v11361_v51 = vpop.permute.xlu0 %11360 }
 0x513   : > { %v11363_v54 = vunpack.i.h.bf16 %v11361_v51  ;;  %v11362_v49 = vunpack.i.l.bf16 %v11361_v51  ;;  %v12401_v51 = vld [vmem:[%s16977_s5 + $0x50c] ss:$16 sps:$4 sm:$0xff]  }
 0x515   : > { %v6052_v61 = vsel %vm6049_vm8, %v11362_v49, %v11363_v54  ;;  %v12396_v54 = vld [vmem:[%s16977_s5 + $0x328] ss:$16 sps:$4 sm:$0xff]  }
 0x516   : > { %v11366_v33 = vpop.permute.xlu1 %11365  ;;  %v11371_v14 = vpop.permute.xlu0 %11370  ;;  %v6064_v50 = vmax.f32 %v6019_v6, %v6052_v61  ;;  %v12404_v61 = vld [vmem:[%s16977_s5 + $0x30c] ss:$16 sps:$4 sm:$0xff]  }
 0x517   : > { %v11368_v12 = vunpack.i.h.bf16 %v11366_v33  ;;  %v11367_v29 = vunpack.i.l.bf16 %v11366_v33  ;;  %v11373_v41 = vunpack.i.h.bf16 %v11371_v14  ;;  %v11372_v15 = vunpack.i.l.bf16 %v11371_v14  ;;  %v12407_v33 = vld [vmem:[%s16977_s5 + $0x4ec] ss:$16 sps:$4 sm:$0xff]   ;;  %v12402_v14 = vld [vmem:[%s16977_s5 + $0x308] ss:$16 sps:$4 sm:$0xff]  }
 0x518   : > { %v6080_v58 = vrot.slane %v6064_v50, 2 }
 0x519   : > { %v6055_v37 = vsel %vm6049_vm8, %v11367_v29, %v11368_v12  ;;  %v6054_v59 = vsel %vm6049_vm8, %v11373_v41, %v11367_v29  ;;  %v6051_v20 = vsel %vm6049_vm8, %v11372_v15, %v11362_v49  ;;  %v12399_v49 = vld [vmem:[%s16977_s5 + $0x508] ss:$16 sps:$4 sm:$0xff]   ;;  %v12410_v29 = vld [vmem:[%s16977_s5 + $0x2ec] ss:$16 sps:$4 sm:$0xff]  }
 0x51a   : > { %v6067_v56 = vmax.f32 %v6023_v7, %v6055_v37  ;;  %v6066_v35 = vmax.f32 %v6022_v3, %v6054_v59  ;;  %v6063_v2 = vmax.f32 %v6018_v27, %v6051_v20  ;;  %v11376_v38 = vpop.permute.xlu1 %11375  ;;  %v12405_v12 = vld [vmem:[%s16977_s5 + $0x4e8] ss:$16 sps:$4 sm:$0xff]   ;;  %v12416_v37 = vld [vmem:[%s16977_s5 + $0x2cc] ss:$16 sps:$4 sm:$0xff]   ;;  %v12419_v59 = vld [vmem:[%s16977_s5 + $0xe4] ss:$16 sps:$4 sm:$0xff]  }
 0x51b   : > { %v11378_v1 = vunpack.i.h.bf16 %v11376_v38  ;;  %v11377_v26 = vunpack.i.l.bf16 %v11376_v38  ;;  %v12414_v20 = vld [vmem:[%s16977_s5 + $0x2c8] ss:$16 sps:$4 sm:$0xff]  }
 0x51c   : > { %v6081_v19 = vrot.slane %v6067_v56, 2  ;;  %v6078_v28 = vrot.slane %v6066_v35, 2  ;;  %v6077_v32 = vrot.slane %v6063_v2, 2  ;;  %v12420_v38 = vld [vmem:[%s16977_s5 + $0x4a8] ss:$16 sps:$4 sm:$0xff]  }
 0x51d   : > { %v6050_v57 = vsel %vm6049_vm8, %v11377_v26, %v11372_v15  ;;  %v6053_v6 = vsel %vm6049_vm8, %v11378_v1, %v11373_v41  ;;  %v12413_v41 = vld [vmem:[%s16977_s5 + $0x4cc] ss:$16 sps:$4 sm:$0xff]   ;;  %v12408_v15 = vld [vmem:[%s16977_s5 + $0x2e8] ss:$16 sps:$4 sm:$0xff]   ;;  %v12423_v1 = vld [vmem:[%s16977_s5 + $0xc0] ss:$16 sps:$4 sm:$0xff]  }
 0x51e   : > { %v6082_v22 = vsel %vm420_vm0, %v6080_v58, %v6081_v19  ;;  %v15796_v40 = vmax.f32 %v6067_v56, %v6081_v19  ;;  %v6062_v60 = vmax.f32 %v6017_v34, %v6050_v57  ;;  %v6065_v8 = vmax.f32 %v6021_v42, %v6053_v6  ;;  %v12380_v42 = vld [vmem:[%s16977_s5 + $0x38c] ss:$16 sps:$4 sm:$0xff]   ;;  %v12417_v56 = vld [vmem:[%s16977_s5 + $0xe0] ss:$16 sps:$4 sm:$0xff]   ;;  %v12431_v58 = vld [vmem:[%s16977_s5 + $0xa4] ss:$16 sps:$4 sm:$0xff]  }
 0x51f   : > { %v6091_v5 = vmax.f32 %v6064_v50, %v6082_v22  ;;  %v6079_v3 = vsel %vm420_vm0, %v6077_v32, %v6078_v28  ;;  %v15801_v21 = vmax.f32 %v6066_v35, %v6078_v28  ;;  %v12411_v50 = vld [vmem:[%s16977_s5 + $0x4c8] ss:$16 sps:$4 sm:$0xff]   ;;  %v12422_v35 = vld [vmem:[%s16977_s5 + $0x4ac] ss:$16 sps:$4 sm:$0xff]   ;;  %v12429_v28 = vld [vmem:[%s16977_s5 + $0xa0] ss:$16 sps:$4 sm:$0xff]  }
 0x520   : > { %v6074_v17 = vrot.slane %v6062_v60, 2  ;;  %v6075_v27 = vrot.slane %v6065_v8, 2  ;;  %v6090_v39 = vmax.f32 %v6063_v2, %v6079_v3  ;;  %v12425_v2 = vld [vmem:[%s16977_s5 + $0xc4] ss:$16 sps:$4 sm:$0xff]   ;;  %v12428_v26 = vld [vmem:[%s16977_s5 + $0x48c] ss:$16 sps:$4 sm:$0xff]  }
 0x521   : > { %v15803_v7 = vpack.c.bf16 %v6091_v5, %v6091_v5  ;;  %v12426_v19 = vld [vmem:[%s16977_s5 + $0x488] ss:$16 sps:$4 sm:$0xff]   ;;  %v12434_v32 = vld [vmem:[%s16977_s5 + $0x46c] ss:$16 sps:$4 sm:$0xff]   ;;  %v12437_v57 = vld [vmem:[%s16977_s5 + $0x84] ss:$16 sps:$4 sm:$0xff]  }
 0x522   : > { %v6076_v31 = vsel %vm420_vm0, %v6074_v17, %v6075_v27  ;;  %v15809_v47 = vpack.c.bf16 %v6090_v39, %v6090_v39  ;;  %v15811_v46 = vmax.f32 %v6065_v8, %v6075_v27  ;;  %v12432_v6 = vld [vmem:[%s16977_s5 + $0x468] ss:$16 sps:$4 sm:$0xff]   ;;  %v12435_v22 = vld [vmem:[%s16977_s5 + $0x80] ss:$16 sps:$4 sm:$0xff]   ;;  %v12443_v8 = vld [vmem:[%s16977_s5 + $0x64] ss:$16 sps:$4 sm:$0xff]  }
 0x523   : > { %v6089_v44 = vmax.f32 %v6062_v60, %v6076_v31  ;;  %v6280_v13 = vrot.slane %v15803_v7, 2  ;;  %v12440_v60 = vld [vmem:[%s16977_s5 + $0x44c] ss:$16 sps:$4 sm:$0xff]   ;;  %v12438_v5 = vld [vmem:[%s16977_s5 + $0x448] ss:$16 sps:$4 sm:$0xff]  }
 0x524   : > { %v6279_v55 = vrot.slane %v15809_v47, 2  ;;  %v12441_v3 = vld [vmem:[%s16977_s5 + $0x60] ss:$16 sps:$4 sm:$0xff]   ;;  %v12446_v17 = vld [vmem:[%s16977_s5 + $0x42c] ss:$16 sps:$4 sm:$0xff]  }
 0x525   : > { %v15821_v34 = vpack.c.bf16 %v6089_v44, %v6089_v44  ;;  %10742 = vmatmul.mubr.msk.bf16.vlgmr.msra.gmra.mxu1 %vm6719_vm9, %v6280_v13  ;;  %v12449_v27 = vld [vmem:[%s16977_s5 + $0x44] ss:$16 sps:$4 sm:$0xff]   ;;  %v12444_v39 = vld [vmem:[%s16977_s5 + $0x428] ss:$16 sps:$4 sm:$0xff]   ;;  %v12447_v31 = vld [vmem:[%s16977_s5 + $0x40] ss:$16 sps:$4 sm:$0xff]  }
 0x526   : > { %6767 = vmatprep.mubr.bf16.mxu0 %v6279_v55  ;;  %6818 = vmatpush1.bf16.msra.mxu1 %v12375_v30  ;;  %v12452_v30 = vld [vmem:[%s16977_s5 + $0x40c] ss:$16 sps:$4 sm:$0xff]   ;;  %v12455_v44 = vld [vmem:[%s16977_s5 + $0x24] ss:$16 sps:$4 sm:$0xff]  }
 0x527   : > { %6849 = vmatprep.mubr.bf16.mxu1 %v6279_v55  ;;  %6819 = vmatprep.subr.bf16.mxu1 %v12380_v42  ;;  %v6278_v52 = vrot.slane %v15821_v34, 2  ;;  %v12453_v42 = vld [vmem:[%s16977_s5 + $0x20] ss:$16 sps:$4 sm:$0xff]   ;;  %v12461_v55 = vld [vmem:[%s16977_s5 + $0x4] ss:$16 sps:$4 sm:$0xff]  }
 0x529   : > { %6768 = vmatmul.mubr.bf16.vlgmr.msra.gmra.mxu0 %v6278_v52 }
 0x52a   : > { %6820 = vmatpush1.bf16.msra.mxu1 %v12378_v23  ;;  %6863 = vmatpush1.bf16.msra.mxu0 %v6730_v53  ;;  %v12456_v23 = vld [vmem:[%s16977_s5 + $0x3e8] ss:$16 sps:$4 sm:$0xff]   ;;  %v12459_v53 = vld [vmem:[%s16977_s5] ss:$16 sps:$4 sm:$0xff]  }
 0x52b   : > { %6821 = vmatprep.subr.bf16.mxu1 %v12386_v43  ;;  %6864 = vmatprep.subr.bf16.mxu0 %v12389_v11  ;;  %v12464_v43 = vld [vmem:[%s16977_s5 + $0x3cc] ss:$16 sps:$4 sm:$0xff]   ;;  %v12467_v11 = vld [vmem:[%s16977_s5 + $0x1e4] ss:$16 sps:$4 sm:$0xff]  }
 0x52c   : > { %6890 = vmatprep.mubr.bf16.mxu0 %v17042_v10 }
 0x52e   : > { %6822 = vmatpush1.bf16.msra.mxu1 %v12384_v0  ;;  %6865 = vmatpush1.bf16.msra.mxu0 %v12387_v16  ;;  %v12462_v0 = vld [vmem:[%s16977_s5 + $0x3c8] ss:$16 sps:$4 sm:$0xff]   ;;  %v12465_v16 = vld [vmem:[%s16977_s5 + $0x1e0] ss:$16 sps:$4 sm:$0xff]  }
 0x52f   : > { %6823 = vmatprep.subr.bf16.mxu1 %v12392_v25  ;;  %6866 = vmatprep.subr.bf16.mxu0 %v12395_v36  ;;  %v12470_v25 = vld [vmem:[%s16977_s5 + $0x1c4] ss:$16 sps:$4 sm:$0xff]  }
 0x530   : > { %v12471_v36 = vld [vmem:[%s16977_s5 + $0x2a4] ss:$16 sps:$4 sm:$0x7f]  }
 0x532   : > { %6824 = vmatpush1.bf16.msra.mxu1 %v12390_v9  ;;  %6867 = vmatpush1.bf16.msra.mxu0 %v12393_v4  ;;  %v12473_v9 = vld [vmem:[%s16977_s5 + $0x2a0] ss:$16 sps:$4 sm:$0x7f]  }
 0x533   : > { %6825 = vmatprep.subr.bf16.mxu1 %v12398_v24  ;;  %6868 = vmatprep.subr.bf16.mxu0 %v12401_v51  ;;  %v12468_v4 = vld [vmem:[%s16977_s5 + $0x1c0] ss:$16 sps:$4 sm:$0xff]   ;;  %v7339_v24 = vsel %vm709_vm3, %v12473_v9, 0  ;;  %v12476_v51 = vld [vmem:[%s16977_s5 + $0x1a4] ss:$16 sps:$4 sm:$0xff]  }
 0x534   : > { %v12546_v9 = vld [vmem:[%s16977_s5 + $0x8] ss:$16 sps:$4 sm:$0xff]  }
 0x536   : > { %6826 = vmatpush1.bf16.msra.mxu1 %v12396_v54  ;;  %6869 = vmatpush1.bf16.msra.mxu0 %v12399_v49  ;;  %v12479_v54 = vld [vmem:[%s16977_s5 + $0x284] ss:$16 sps:$4 sm:$0xff]   ;;  %v12474_v49 = vld [vmem:[%s16977_s5 + $0x1a0] ss:$16 sps:$4 sm:$0xff]  }
 0x537   : > { %6827 = vmatprep.subr.bf16.mxu1 %v12404_v61  ;;  %6870 = vmatprep.subr.bf16.mxu0 %v12407_v33  ;;  %v12477_v61 = vld [vmem:[%s16977_s5 + $0x280] ss:$16 sps:$4 sm:$0xff]   ;;  %v12482_v33 = vld [vmem:[%s16977_s5 + $0x184] ss:$16 sps:$4 sm:$0xff]  }
 0x53a   : > { %6828 = vmatpush1.bf16.msra.mxu1 %v12402_v14  ;;  %6871 = vmatpush1.bf16.msra.mxu0 %v12405_v12  ;;  %v12480_v14 = vld [vmem:[%s16977_s5 + $0x180] ss:$16 sps:$4 sm:$0xff]  }
 0x53b   : > { %6829 = vmatprep.subr.bf16.mxu1 %v12410_v29  ;;  %6872 = vmatprep.subr.bf16.mxu0 %v12413_v41  ;;  %v12483_v12 = vld [vmem:[%s16977_s5 + $0x260] ss:$16 sps:$4 sm:$0xff]   ;;  %v12488_v29 = vld [vmem:[%s16977_s5 + $0x164] ss:$16 sps:$4 sm:$0xff]  }
 0x53c   : > { %v12491_v41 = vld [vmem:[%s16977_s5 + $0x244] ss:$16 sps:$4 sm:$0xff]  }
 0x53e   : > { %6830 = vmatpush1.bf16.msra.mxu1 %v12408_v15  ;;  %6873 = vmatpush1.bf16.msra.mxu0 %v12411_v50  ;;  %v12486_v15 = vld [vmem:[%s16977_s5 + $0x160] ss:$16 sps:$4 sm:$0xff]  }
 0x53f   : > { %6831 = vmatprep.subr.bf16.mxu1 %v12416_v37  ;;  %7350 = vmatprep.subr.bf16.mxu0 %v12419_v59  ;;  %v12489_v50 = vld [vmem:[%s16977_s5 + $0x240] ss:$16 sps:$4 sm:$0xff]   ;;  %v12494_v37 = vld [vmem:[%s16977_s5 + $0x144] ss:$16 sps:$4 sm:$0xff]  }
 0x540   : > { %v12497_v59 = vld [vmem:[%s16977_s5 + $0x224] ss:$16 sps:$4 sm:$0xff]  }
 0x541   : > { %10744 = vmatmul.mubr.msk.bf16.vlgmr.msra.gmra.mxu0 %vm6719_vm9, %v6280_v13  ;;  %v12450_v13 = vld [vmem:[%s16977_s5 + $0x408] ss:$16 sps:$4 sm:$0xff]  }
 0x542   : > { %6832 = vmatpush1.bf16.msra.mxu1 %v12414_v20  ;;  %7351 = vmatpush1.bf16.msra.mxu0 %v12417_v56  ;;  %v12492_v20 = vld [vmem:[%s16977_s5 + $0x140] ss:$16 sps:$4 sm:$0xff]  }
 0x543   : > { %7382 = vmatprep.mubr.bf16.mxu0 %v15809_v47  ;;  %6833 = vmatprep.subr.bf16.mxu1 %v12422_v35  ;;  %v12495_v56 = vld [vmem:[%s16977_s5 + $0x220] ss:$16 sps:$4 sm:$0xff]   ;;  %v12500_v35 = vld [vmem:[%s16977_s5 + $0x124] ss:$16 sps:$4 sm:$0xff]  }
 0x544   : > { %7352 = vmatprep.subr.bf16.mxu0 %v12425_v2  ;;  %v12503_v2 = vld [vmem:[%s16977_s5 + $0x204] ss:$16 sps:$4 sm:$0xff]  }
 0x546   : > { %6834 = vmatpush2.bf16.msra.mxu1 %v12420_v38  ;;  %7353 = vmatpush1.bf16.msra.mxu0 %v12423_v1  ;;  %v12498_v38 = vld [vmem:[%s16977_s5 + $0x120] ss:$16 sps:$4 sm:$0xff]  }
 0x547   : > { %6835 = vmatprep.subr.bf16.mxu1 %v12428_v26  ;;  %7354 = vmatprep.subr.bf16.mxu0 %v12431_v58  ;;  %v12501_v1 = vld [vmem:[%s16977_s5 + $0x200] ss:$16 sps:$4 sm:$0xff]   ;;  %v12506_v26 = vld [vmem:[%s16977_s5 + $0x104] ss:$16 sps:$4 sm:$0xff]   ;;  %v12509_v58 = vld [vmem:[%s16977_s5 + $0xec] ss:$16 sps:$4 sm:$0xff]  }
 0x54a   : > { %6836 = vmatpush2.bf16.msra.mxu1 %v12426_v19  ;;  %7355 = vmatpush1.bf16.msra.mxu0 %v12429_v28  ;;  %v12504_v19 = vld [vmem:[%s16977_s5 + $0x100] ss:$16 sps:$4 sm:$0xff]   ;;  %v12507_v28 = vld [vmem:[%s16977_s5 + $0xe8] ss:$16 sps:$4 sm:$0xff]  }
 0x54b   : > { %6837 = vmatprep.subr.bf16.mxu1 %v12434_v32  ;;  %7356 = vmatprep.subr.bf16.mxu0 %v12437_v57  ;;  %v12512_v32 = vld [vmem:[%s16977_s5 + $0xcc] ss:$16 sps:$4 sm:$0xff]   ;;  %v12515_v57 = vld [vmem:[%s16977_s5 + $0x2a8] ss:$16 sps:$4 sm:$0x7f]  }
 0x54e   : > { %6838 = vmatpush2.bf16.msra.mxu1 %v12432_v6  ;;  %7357 = vmatpush1.bf16.msra.mxu0 %v12435_v22  ;;  %v12513_v6 = vld [vmem:[%s16977_s5 + $0x2ac] ss:$16 sps:$4 sm:$0x7f]   ;;  %v12510_v22 = vld [vmem:[%s16977_s5 + $0xc8] ss:$16 sps:$4 sm:$0xff]  }
 0x54f   : > { %6839 = vmatprep.subr.bf16.mxu1 %v12440_v60  ;;  %7358 = vmatprep.subr.bf16.mxu0 %v12443_v8  ;;  %v7345_v60 = vsel %vm709_vm3, %v12515_v57, 0  ;;  %v12518_v8 = vld [vmem:[%s16977_s5 + $0xac] ss:$16 sps:$4 sm:$0xff]   ;;  %v12591_v57 = vld [vmem:[%s16977_s5 + $0x580] ss:$16 sps:$4 sm:$0xff]  }
 0x552   : > { %6840 = vmatpush2.bf16.msra.mxu1 %v12438_v5  ;;  %7359 = vmatpush1.bf16.msra.mxu0 %v12441_v3  ;;  %v12521_v5 = vld [vmem:[%s16977_s5 + $0x28c] ss:$16 sps:$4 sm:$0xff]   ;;  %v12519_v3 = vld [vmem:[%s16977_s5 + $0x288] ss:$16 sps:$4 sm:$0xff]  }
 0x553   : > { %6841 = vmatprep.subr.bf16.mxu1 %v12446_v17  ;;  %7360 = vmatprep.subr.bf16.mxu0 %v12449_v27  ;;  %v12524_v17 = vld [vmem:[%s16977_s5 + $0x8c] ss:$16 sps:$4 sm:$0xff]  }
 0x554   : > { %v12527_v27 = vld [vmem:[%s16977_s5 + $0x26c] ss:$16 sps:$4 sm:$0xff]  }
 0x556   : > { %6842 = vmatpush2.bf16.msra.mxu1 %v12444_v39  ;;  %7361 = vmatpush1.bf16.msra.mxu0 %v12447_v31  ;;  %v12522_v39 = vld [vmem:[%s16977_s5 + $0x88] ss:$16 sps:$4 sm:$0xff]  }
 0x557   : > { %6843 = vmatprep.subr.bf16.mxu1 %v12452_v30  ;;  %7362 = vmatprep.subr.bf16.mxu0 %v12455_v44  ;;  %v12525_v31 = vld [vmem:[%s16977_s5 + $0x268] ss:$16 sps:$4 sm:$0xff]   ;;  %v12530_v30 = vld [vmem:[%s16977_s5 + $0x6c] ss:$16 sps:$4 sm:$0xff]  }
 0x558   : > { %v12533_v44 = vld [vmem:[%s16977_s5 + $0x24c] ss:$16 sps:$4 sm:$0xff]  }
 0x55a   : > { %6844 = vmatpush2.bf16.msra.mxu1 %v12450_v13  ;;  %7363 = vmatpush1.bf16.msra.mxu0 %v12453_v42  ;;  %v12528_v13 = vld [vmem:[%s16977_s5 + $0x68] ss:$16 sps:$4 sm:$0xff]  }
 0x55b   : > { %6845 = vmatprep.subr.bf16.mxu1 %v12458_v48  ;;  %7364 = vmatprep.subr.bf16.mxu0 %v12461_v55  ;;  %v12531_v42 = vld [vmem:[%s16977_s5 + $0x248] ss:$16 sps:$4 sm:$0xff]   ;;  %v12536_v48 = vld [vmem:[%s16977_s5 + $0x4c] ss:$16 sps:$4 sm:$0xff]  }
 0x55c   : > { %v12539_v55 = vld [vmem:[%s16977_s5 + $0x22c] ss:$16 sps:$4 sm:$0xff]  }
 0x55e   : > { %6846 = vmatpush2.bf16.msra.mxu1 %v12456_v23  ;;  %7365 = vmatpush1.bf16.msra.mxu0 %v12459_v53  ;;  %v12534_v23 = vld [vmem:[%s16977_s5 + $0x48] ss:$16 sps:$4 sm:$0xff]  }
 0x55f   : > { %6847 = vmatprep.subr.bf16.mxu1 %v12464_v43  ;;  %7366 = vmatprep.subr.bf16.mxu0 %v12467_v11  ;;  %v12537_v53 = vld [vmem:[%s16977_s5 + $0x228] ss:$16 sps:$4 sm:$0xff]   ;;  %v12542_v43 = vld [vmem:[%s16977_s5 + $0x2c] ss:$16 sps:$4 sm:$0xff]  }
 0x560   : > { %v12545_v11 = vld [vmem:[%s16977_s5 + $0x20c] ss:$16 sps:$4 sm:$0xff]  }
 0x562   : > { %6848 = vmatpush2.bf16.msra.mxu1 %v12462_v0  ;;  %7367 = vmatpush2.bf16.msra.mxu0 %v12465_v16  ;;  %v12540_v0 = vld [vmem:[%s16977_s5 + $0x28] ss:$16 sps:$4 sm:$0xff]  }
 0x563   : > { %7368 = vmatprep.subr.bf16.mxu0 %v12470_v25  ;;  %10833 = vmatprep.subr.msk.bf16.mxu1 %vm709_vm3, %v12471_v36  ;;  %v12543_v16 = vld [vmem:[%s16977_s5 + $0x208] ss:$16 sps:$4 sm:$0xff]   ;;  %v12548_v25 = vld [vmem:[%s16977_s5 + $0xc] ss:$16 sps:$4 sm:$0xff]   ;;  %v12551_v36 = vld [vmem:[%s16977_s5 + $0x664] ss:$16 sps:$4 sm:$0xff]  }
 0x565   : > { %6850 = vmatmul.mubr.bf16.vlgmr.msra.gmra.mxu1 %v6278_v52  ;;  %v12485_v52 = vld [vmem:[%s16977_s5 + $0x264] ss:$16 sps:$4 sm:$0xff]  }
 0x566   : > { %7369 = vmatpush2.bf16.msra.mxu0 %v12468_v4  ;;  %7396 = vmatpush1.bf16.msra.mxu1 %v7339_v24  ;;  %v12549_v4 = vld [vmem:[%s16977_s5 + $0x660] ss:$16 sps:$4 sm:$0xff]   ;;  %v12554_v24 = vld [vmem:[%s16977_s5 + $0x1ec] ss:$16 sps:$4 sm:$0xff]  }
 0x567   : > { %7370 = vmatprep.subr.bf16.mxu0 %v12476_v51  ;;  %7397 = vmatprep.subr.bf16.mxu1 %v12479_v54  ;;  %v12557_v51 = vld [vmem:[%s16977_s5 + $0x644] ss:$16 sps:$4 sm:$0xff]   ;;  %v16196_v54 = vpack.c.bf16 %v15801_v21, %v15801_v21 }
 0x568   : > { %7423 = vmatprep.mubr.bf16.mxu1 %v17042_v10  ;;  %v12563_v21 = vld [vmem:[%s16977_s5 + $0x624] ss:$16 sps:$4 sm:$0xff]  }
 0x56a   : > { %7371 = vmatpush2.bf16.msra.mxu0 %v12474_v49  ;;  %7398 = vmatpush1.bf16.msra.mxu1 %v12477_v61  ;;  %v12552_v49 = vld [vmem:[%s16977_s5 + $0x1e8] ss:$16 sps:$4 sm:$0xff]   ;;  %v12555_v61 = vld [vmem:[%s16977_s5 + $0x640] ss:$16 sps:$4 sm:$0xff]  }
 0x56b   : > { %7372 = vmatprep.subr.bf16.mxu0 %v12482_v33  ;;  %7399 = vmatprep.subr.bf16.mxu1 %v12485_v52  ;;  %v12558_v33 = vld [vmem:[%s16977_s5 + $0x1c8] ss:$16 sps:$4 sm:$0xff]   ;;  %v12561_v52 = vld [vmem:[%s16977_s5 + $0x620] ss:$16 sps:$4 sm:$0xff]  }
 0x56e   : > { %7373 = vmatpush2.bf16.msra.mxu0 %v12480_v14  ;;  %7400 = vmatpush1.bf16.msra.mxu1 %v12483_v12  ;;  %v12566_v14 = vld [vmem:[%s16977_s5 + $0x1ac] ss:$16 sps:$4 sm:$0xff]   ;;  %v12569_v12 = vld [vmem:[%s16977_s5 + $0x604] ss:$16 sps:$4 sm:$0xff]  }
 0x56f   : > { %7374 = vmatprep.subr.bf16.mxu0 %v12488_v29  ;;  %7401 = vmatprep.subr.bf16.mxu1 %v12491_v41  ;;  %v12564_v29 = vld [vmem:[%s16977_s5 + $0x1a8] ss:$16 sps:$4 sm:$0xff]   ;;  %v12567_v41 = vld [vmem:[%s16977_s5 + $0x600] ss:$16 sps:$4 sm:$0xff]  }
 0x572   : > { %7375 = vmatpush2.bf16.msra.mxu0 %v12486_v15  ;;  %7402 = vmatpush1.bf16.msra.mxu1 %v12489_v50  ;;  %v12572_v15 = vld [vmem:[%s16977_s5 + $0x18c] ss:$16 sps:$4 sm:$0xff]   ;;  %v12575_v50 = vld [vmem:[%s16977_s5 + $0x5e4] ss:$16 sps:$4 sm:$0xff]  }
 0x573   : > { %7376 = vmatprep.subr.bf16.mxu0 %v12494_v37  ;;  %7403 = vmatprep.subr.bf16.mxu1 %v12497_v59  ;;  %v12570_v37 = vld [vmem:[%s16977_s5 + $0x188] ss:$16 sps:$4 sm:$0xff]   ;;  %v12573_v59 = vld [vmem:[%s16977_s5 + $0x5e0] ss:$16 sps:$4 sm:$0xff]  }
 0x576   : > { %7377 = vmatpush2.bf16.msra.mxu0 %v12492_v20  ;;  %7404 = vmatpush1.bf16.msra.mxu1 %v12495_v56  ;;  %v12578_v20 = vld [vmem:[%s16977_s5 + $0x16c] ss:$16 sps:$4 sm:$0xff]   ;;  %v12581_v56 = vld [vmem:[%s16977_s5 + $0x5c4] ss:$16 sps:$4 sm:$0xff]  }
 0x577   : > { %7378 = vmatprep.subr.bf16.mxu0 %v12500_v35  ;;  %7405 = vmatprep.subr.bf16.mxu1 %v12503_v2  ;;  %v12576_v35 = vld [vmem:[%s16977_s5 + $0x168] ss:$16 sps:$4 sm:$0xff]   ;;  %v12579_v2 = vld [vmem:[%s16977_s5 + $0x5c0] ss:$16 sps:$4 sm:$0xff]  }
 0x57a   : > { %7379 = vmatpush2.bf16.msra.mxu0 %v12498_v38  ;;  %7406 = vmatpush1.bf16.msra.mxu1 %v12501_v1  ;;  %v12584_v38 = vld [vmem:[%s16977_s5 + $0x14c] ss:$16 sps:$4 sm:$0xff]   ;;  %v12587_v1 = vld [vmem:[%s16977_s5 + $0x5a4] ss:$16 sps:$4 sm:$0xff]  }
 0x57b   : > { %7380 = vmatprep.subr.bf16.mxu0 %v12506_v26  ;;  %7432 = vmatprep.subr.bf16.mxu1 %v12509_v58  ;;  %v12582_v26 = vld [vmem:[%s16977_s5 + $0x148] ss:$16 sps:$4 sm:$0xff]   ;;  %v12585_v58 = vld [vmem:[%s16977_s5 + $0x5a0] ss:$16 sps:$4 sm:$0xff]  }
 0x57d   : > { %10834 = vmatmul.mubr.msk.bf16.vlgmr.msra.gmra.mxu1 %vm6719_vm9, %v15803_v7 }
 0x57e   : > { %7381 = vmatpush2.bf16.msra.mxu0 %v12504_v19  ;;  %7433 = vmatpush1.bf16.msra.mxu1 %v12507_v28  ;;  %v12590_v19 = vld [vmem:[%s16977_s5 + $0x12c] ss:$16 sps:$4 sm:$0xff]   ;;  %v12593_v28 = vld [vmem:[%s16977_s5 + $0x584] ss:$16 sps:$4 sm:$0xff]  }
 0x57f   : > { %7464 = vmatprep.mubr.bf16.mxu1 %v15809_v47  ;;  %7434 = vmatprep.subr.bf16.mxu1 %v12512_v32  ;;  %v12516_v47 = vld [vmem:[%s16977_s5 + $0xa8] ss:$16 sps:$4 sm:$0xff]  }
 0x580   : > { %10835 = vmatprep.subr.msk.bf16.mxu0 %vm709_vm3, %v12513_v6  ;;  %v12588_v32 = vld [vmem:[%s16977_s5 + $0x128] ss:$16 sps:$4 sm:$0xff]   ;;  %v12596_v6 = vld [vmem:[%s16977_s5 + $0x10c] ss:$16 sps:$4 sm:$0xff]  }
 0x581   : > { %7383 = vmatmul.mubr.bf16.vlgmr.msra.gmra.mxu0 %v15821_v34 }
 0x582   : > { %7435 = vmatpush1.bf16.msra.mxu1 %v12510_v22  ;;  %7478 = vmatpush1.bf16.msra.mxu0 %v7345_v60  ;;  %v12599_v22 = vld [vmem:[%s16977_s5 + $0x764] ss:$16 sps:$4 sm:$0xff]   ;;  %v12594_v60 = vld [vmem:[%s16977_s5 + $0x108] ss:$16 sps:$4 sm:$0xff]  }
 0x583   : > { %7436 = vmatprep.subr.bf16.mxu1 %v12518_v8  ;;  %7479 = vmatprep.subr.bf16.mxu0 %v12521_v5  ;;  %v12597_v8 = vld [vmem:[%s16977_s5 + $0x760] ss:$16 sps:$4 sm:$0xff]   ;;  %v12602_v5 = vld [vmem:[%s16977_s5 + $0x744] ss:$16 sps:$4 sm:$0xff]  }
 0x584   : > { %7505 = vmatprep.mubr.bf16.mxu0 %v17042_v10 }
 0x586   : > { %7437 = vmatpush1.bf16.msra.mxu1 %v12516_v47  ;;  %7480 = vmatpush1.bf16.msra.mxu0 %v12519_v3  ;;  %v12603_v47 = vld [vmem:[%s16977_s5 + $0x824] ss:$16 sps:$4 sm:$0x7f]   ;;  %v12605_v3 = vld [vmem:[%s16977_s5 + $0x820] ss:$16 sps:$4 sm:$0x7f]  }
 0x587   : > { %7438 = vmatprep.subr.bf16.mxu1 %v12524_v17  ;;  %7481 = vmatprep.subr.bf16.mxu0 %v12527_v27  ;;  %v12600_v17 = vld [vmem:[%s16977_s5 + $0x740] ss:$16 sps:$4 sm:$0xff]   ;;  %v8046_v27 = vsel %vm709_vm3, %v12605_v3, 0  ;;  %v12675_v3 = vld [vmem:[%s16977_s5 + $0x788] ss:$16 sps:$4 sm:$0xff]  }
 0x58a   : > { %7439 = vmatpush1.bf16.msra.mxu1 %v12522_v39  ;;  %7482 = vmatpush1.bf16.msra.mxu0 %v12525_v31  ;;  %v12608_v39 = vld [vmem:[%s16977_s5 + $0x724] ss:$16 sps:$4 sm:$0xff]  }
 0x58b   : > { %7440 = vmatprep.subr.bf16.mxu1 %v12530_v30  ;;  %7483 = vmatprep.subr.bf16.mxu0 %v12533_v44  ;;  %v12611_v31 = vld [vmem:[%s16977_s5 + $0x804] ss:$16 sps:$4 sm:$0xff]   ;;  %v12606_v30 = vld [vmem:[%s16977_s5 + $0x720] ss:$16 sps:$4 sm:$0xff]  }
 0x58c   : > { %v12609_v44 = vld [vmem:[%s16977_s5 + $0x800] ss:$16 sps:$4 sm:$0xff]  }
 0x58e   : > { %7441 = vmatpush1.bf16.msra.mxu1 %v12528_v13  ;;  %7484 = vmatpush1.bf16.msra.mxu0 %v12531_v42  ;;  %v12614_v13 = vld [vmem:[%s16977_s5 + $0x704] ss:$16 sps:$4 sm:$0xff]   ;;  %v12612_v42 = vld [vmem:[%s16977_s5 + $0x700] ss:$16 sps:$4 sm:$0xff]  }
 0x58f   : > { %7442 = vmatprep.subr.bf16.mxu1 %v12536_v48  ;;  %7485 = vmatprep.subr.bf16.mxu0 %v12539_v55  ;;  %v12615_v48 = vld [vmem:[%s16977_s5 + $0x7e0] ss:$16 sps:$4 sm:$0xff]   ;;  %v12620_v55 = vld [vmem:[%s16977_s5 + $0x6e4] ss:$16 sps:$4 sm:$0xff]  }
 0x592   : > { %7443 = vmatpush1.bf16.msra.mxu1 %v12534_v23  ;;  %7486 = vmatpush1.bf16.msra.mxu0 %v12537_v53  ;;  %v12623_v23 = vld [vmem:[%s16977_s5 + $0x7c4] ss:$16 sps:$4 sm:$0xff]   ;;  %v12618_v53 = vld [vmem:[%s16977_s5 + $0x6e0] ss:$16 sps:$4 sm:$0xff]  }
 0x593   : > { %7444 = vmatprep.subr.bf16.mxu1 %v12542_v43  ;;  %7487 = vmatprep.subr.bf16.mxu0 %v12545_v11  ;;  %v12621_v43 = vld [vmem:[%s16977_s5 + $0x7c0] ss:$16 sps:$4 sm:$0xff]   ;;  %v12626_v11 = vld [vmem:[%s16977_s5 + $0x6c4] ss:$16 sps:$4 sm:$0xff]  }
 0x596   : > { %7445 = vmatpush1.bf16.msra.mxu1 %v12540_v0  ;;  %7488 = vmatpush1.bf16.msra.mxu0 %v12543_v16  ;;  %v12629_v0 = vld [vmem:[%s16977_s5 + $0x7a4] ss:$16 sps:$4 sm:$0xff]   ;;  %v12624_v16 = vld [vmem:[%s16977_s5 + $0x6c0] ss:$16 sps:$4 sm:$0xff]  }
 0x597   : > { %7446 = vmatprep.subr.bf16.mxu1 %v12548_v25  ;;  %8057 = vmatprep.subr.bf16.mxu0 %v12551_v36  ;;  %v12627_v25 = vld [vmem:[%s16977_s5 + $0x7a0] ss:$16 sps:$4 sm:$0xff]   ;;  %v12632_v36 = vld [vmem:[%s16977_s5 + $0x6a4] ss:$16 sps:$4 sm:$0xff]  }
 0x599   : > { %10836 = vmatmul.mubr.msk.bf16.vlgmr.msra.gmra.mxu0 %vm6719_vm9, %v15803_v7  ;;  %v12560_v7 = vld [vmem:[%s16977_s5 + $0x1cc] ss:$16 sps:$4 sm:$0xff]  }
 0x59a   : > { %7447 = vmatpush1.bf16.msra.mxu1 %v12546_v9  ;;  %8058 = vmatpush1.bf16.msra.mxu0 %v12549_v4  ;;  %v12635_v9 = vld [vmem:[%s16977_s5 + $0x784] ss:$16 sps:$4 sm:$0xff]   ;;  %v12630_v4 = vld [vmem:[%s16977_s5 + $0x6a0] ss:$16 sps:$4 sm:$0xff]  }
 0x59b   : > { %8089 = vmatprep.mubr.bf16.mxu0 %v16196_v54  ;;  %7448 = vmatprep.subr.bf16.mxu1 %v12554_v24  ;;  %v12633_v24 = vld [vmem:[%s16977_s5 + $0x780] ss:$16 sps:$4 sm:$0xff]  }
 0x59c   : > { %8059 = vmatprep.subr.bf16.mxu0 %v12557_v51  ;;  %v12638_v51 = vld [vmem:[%s16977_s5 + $0x684] ss:$16 sps:$4 sm:$0xff]  }
 0x59e   : > { %7449 = vmatpush2.bf16.msra.mxu1 %v12552_v49  ;;  %8060 = vmatpush1.bf16.msra.mxu0 %v12555_v61  ;;  %v12641_v49 = vld [vmem:[%s16977_s5 + $0x66c] ss:$16 sps:$4 sm:$0xff]   ;;  %v12636_v61 = vld [vmem:[%s16977_s5 + $0x680] ss:$16 sps:$4 sm:$0xff]  }
 0x59f   : > { %7450 = vmatprep.subr.bf16.mxu1 %v12560_v7  ;;  %8061 = vmatprep.subr.bf16.mxu0 %v12563_v21  ;;  %v12639_v7 = vld [vmem:[%s16977_s5 + $0x668] ss:$16 sps:$4 sm:$0xff]   ;;  %v16379_v21 = vpack.c.bf16 %v15796_v40, %v15796_v40 }
 0x5a0   : > { %v12642_v40 = vld [vmem:[%s16977_s5 + $0x648] ss:$16 sps:$4 sm:$0xff]  }
 0x5a2   : > { %7451 = vmatpush2.bf16.msra.mxu1 %v12558_v33  ;;  %8062 = vmatpush1.bf16.msra.mxu0 %v12561_v52  ;;  %v12644_v33 = vld [vmem:[%s16977_s5 + $0x64c] ss:$16 sps:$4 sm:$0xff]   ;;  %v12647_v52 = vld [vmem:[%s16977_s5 + $0x828] ss:$16 sps:$4 sm:$0x7f]  }
 0x5a3   : > { %7452 = vmatprep.subr.bf16.mxu1 %v12566_v14  ;;  %8063 = vmatprep.subr.bf16.mxu0 %v12569_v12  ;;  %v12645_v14 = vld [vmem:[%s16977_s5 + $0x82c] ss:$16 sps:$4 sm:$0x7f]   ;;  %v16398_v12 = vpack.c.bf16 %v15811_v46, %v15811_v46  ;;  %v12648_v46 = vld [vmem:[%s16977_s5 + $0x628] ss:$16 sps:$4 sm:$0xff]  }
 0x5a6   : > { %7453 = vmatpush2.bf16.msra.mxu1 %v12564_v29  ;;  %8064 = vmatpush1.bf16.msra.mxu0 %v12567_v41  ;;  %v8052_v29 = vsel %vm709_vm3, %v12647_v52, 0  ;;  %v12650_v41 = vld [vmem:[%s16977_s5 + $0x62c] ss:$16 sps:$4 sm:$0xff]   ;;  %v12713_v52 = vld [vmem:[%s16977_s5 + $0x884] ss:$16 sps:$4 sm:$0xff]  }
 0x5a7   : > { %7454 = vmatprep.subr.bf16.mxu1 %v12572_v15  ;;  %8065 = vmatprep.subr.bf16.mxu0 %v12575_v50  ;;  %v12653_v15 = vld [vmem:[%s16977_s5 + $0x80c] ss:$16 sps:$4 sm:$0xff]   ;;  %v12651_v50 = vld [vmem:[%s16977_s5 + $0x808] ss:$16 sps:$4 sm:$0xff]  }
 0x5aa   : > { %7455 = vmatpush2.bf16.msra.mxu1 %v12570_v37  ;;  %8066 = vmatpush1.bf16.msra.mxu0 %v12573_v59  ;;  %v12656_v37 = vld [vmem:[%s16977_s5 + $0x60c] ss:$16 sps:$4 sm:$0xff]  }
 0x5ab   : > { %7456 = vmatprep.subr.bf16.mxu1 %v12578_v20  ;;  %8067 = vmatprep.subr.bf16.mxu0 %v12581_v56  ;;  %v12659_v59 = vld [vmem:[%s16977_s5 + $0x7ec] ss:$16 sps:$4 sm:$0xff]   ;;  %v12654_v20 = vld [vmem:[%s16977_s5 + $0x608] ss:$16 sps:$4 sm:$0xff]  }
 0x5ac   : > { %v12657_v56 = vld [vmem:[%s16977_s5 + $0x7e8] ss:$16 sps:$4 sm:$0xff]  }
 0x5ae   : > { %7457 = vmatpush2.bf16.msra.mxu1 %v12576_v35  ;;  %8068 = vmatpush1.bf16.msra.mxu0 %v12579_v2  ;;  %v12662_v35 = vld [vmem:[%s16977_s5 + $0x5ec] ss:$16 sps:$4 sm:$0xff]  }
 0x5af   : > { %7458 = vmatprep.subr.bf16.mxu1 %v12584_v38  ;;  %8069 = vmatprep.subr.bf16.mxu0 %v12587_v1  ;;  %v12665_v2 = vld [vmem:[%s16977_s5 + $0x7cc] ss:$16 sps:$4 sm:$0xff]   ;;  %v12660_v38 = vld [vmem:[%s16977_s5 + $0x5e8] ss:$16 sps:$4 sm:$0xff]  }
 0x5b0   : > { %v12663_v1 = vld [vmem:[%s16977_s5 + $0x7c8] ss:$16 sps:$4 sm:$0xff]  }
 0x5b2   : > { %7459 = vmatpush2.bf16.msra.mxu1 %v12582_v26  ;;  %8070 = vmatpush1.bf16.msra.mxu0 %v12585_v58  ;;  %v12668_v26 = vld [vmem:[%s16977_s5 + $0x5cc] ss:$16 sps:$4 sm:$0xff]  }
 0x5b3   : > { %7460 = vmatprep.subr.bf16.mxu1 %v12590_v19  ;;  %8071 = vmatprep.subr.bf16.mxu0 %v12593_v28  ;;  %v12671_v58 = vld [vmem:[%s16977_s5 + $0x7ac] ss:$16 sps:$4 sm:$0xff]   ;;  %v12666_v28 = vld [vmem:[%s16977_s5 + $0x5c8] ss:$16 sps:$4 sm:$0xff]  }
 0x5b6   : > { %7461 = vmatpush2.bf16.msra.mxu1 %v12588_v32  ;;  %8072 = vmatpush1.bf16.msra.mxu0 %v12591_v57  ;;  %v12669_v32 = vld [vmem:[%s16977_s5 + $0x7a8] ss:$16 sps:$4 sm:$0xff]  }
 0x5b7   : > { %7462 = vmatprep.subr.bf16.mxu1 %v12596_v6  ;;  %8073 = vmatprep.subr.bf16.mxu0 %v12599_v22  ;;  %v12674_v6 = vld [vmem:[%s16977_s5 + $0x5ac] ss:$16 sps:$4 sm:$0xff]  }
 0x5b8   : > { %v12677_v22 = vld [vmem:[%s16977_s5 + $0x78c] ss:$16 sps:$4 sm:$0xff]  }
 0x5ba   : > { %7463 = vmatpush2.bf16.msra.mxu1 %v12594_v60  ;;  %8074 = vmatpush2.bf16.msra.mxu0 %v12597_v8 }
 0x5bb   : > { %8075 = vmatprep.subr.bf16.mxu0 %v12602_v5  ;;  %11013 = vmatprep.subr.msk.bf16.mxu1 %vm709_vm3, %v12603_v47  ;;  %v12672_v47 = vld [vmem:[%s16977_s5 + $0x5a8] ss:$16 sps:$4 sm:$0xff]  }
 0x5bd   : > { %7465 = vmatmul.mubr.bf16.vlgmr.msra.gmra.mxu1 %v15821_v34  ;;  %v12617_v34 = vld [vmem:[%s16977_s5 + $0x7e4] ss:$16 sps:$4 sm:$0xff]  }
 0x5be   : > { %8076 = vmatpush2.bf16.msra.mxu0 %v12600_v17  ;;  %8103 = vmatpush1.bf16.msra.mxu1 %v8046_v27 }
 0x5bf   : > { %8077 = vmatprep.subr.bf16.mxu0 %v12608_v39  ;;  %8104 = vmatprep.subr.bf16.mxu1 %v12611_v31  ;;  %v12680_v39 = vld [vmem:[%s16977_s5 + $0x58c] ss:$16 sps:$4 sm:$0xff]   ;;  %v12683_v31 = vld [vmem:[%s16977_s5 + $0x924] ss:$16 sps:$4 sm:$0xff]  }
 0x5c0   : > { %8130 = vmatprep.mubr.bf16.mxu1 %v17042_v10 }
 0x5c2   : > { %8078 = vmatpush2.bf16.msra.mxu0 %v12606_v30  ;;  %8105 = vmatpush1.bf16.msra.mxu1 %v12609_v44 }
 0x5c3   : > { %8079 = vmatprep.subr.bf16.mxu0 %v12614_v13  ;;  %8106 = vmatprep.subr.bf16.mxu1 %v12617_v34  ;;  %v12678_v13 = vld [vmem:[%s16977_s5 + $0x588] ss:$16 sps:$4 sm:$0xff]   ;;  %v12681_v34 = vld [vmem:[%s16977_s5 + $0x920] ss:$16 sps:$4 sm:$0xff]  }
 0x5c6   : > { %8080 = vmatpush2.bf16.msra.mxu0 %v12612_v42  ;;  %8107 = vmatpush1.bf16.msra.mxu1 %v12615_v48  ;;  %v12686_v48 = vld [vmem:[%s16977_s5 + $0x76c] ss:$16 sps:$4 sm:$0xff]  }
 0x5c7   : > { %8081 = vmatprep.subr.bf16.mxu0 %v12620_v55  ;;  %8108 = vmatprep.subr.bf16.mxu1 %v12623_v23  ;;  %v12689_v55 = vld [vmem:[%s16977_s5 + $0x904] ss:$16 sps:$4 sm:$0xff]   ;;  %v8318_v23 = vrot.slane %v16196_v54, 2 }
 0x5ca   : > { %8082 = vmatpush2.bf16.msra.mxu0 %v12618_v53  ;;  %8109 = vmatpush1.bf16.msra.mxu1 %v12621_v43  ;;  %v12684_v53 = vld [vmem:[%s16977_s5 + $0x768] ss:$16 sps:$4 sm:$0xff]   ;;  %v12687_v43 = vld [vmem:[%s16977_s5 + $0x900] ss:$16 sps:$4 sm:$0xff]  }
 0x5cb   : > { %8083 = vmatprep.subr.bf16.mxu0 %v12626_v11  ;;  %8110 = vmatprep.subr.bf16.mxu1 %v12629_v0  ;;  %v12692_v11 = vld [vmem:[%s16977_s5 + $0x74c] ss:$16 sps:$4 sm:$0xff]   ;;  %v12695_v0 = vld [vmem:[%s16977_s5 + $0x8e4] ss:$16 sps:$4 sm:$0xff]  }
 0x5ce   : > { %8084 = vmatpush2.bf16.msra.mxu0 %v12624_v16  ;;  %8111 = vmatpush1.bf16.msra.mxu1 %v12627_v25  ;;  %v12690_v16 = vld [vmem:[%s16977_s5 + $0x748] ss:$16 sps:$4 sm:$0xff]   ;;  %v12693_v25 = vld [vmem:[%s16977_s5 + $0x8e0] ss:$16 sps:$4 sm:$0xff]  }
 0x5cf   : > { %8085 = vmatprep.subr.bf16.mxu0 %v12632_v36  ;;  %8112 = vmatprep.subr.bf16.mxu1 %v12635_v9  ;;  %v12698_v36 = vld [vmem:[%s16977_s5 + $0x72c] ss:$16 sps:$4 sm:$0xff]   ;;  %v12701_v9 = vld [vmem:[%s16977_s5 + $0x8c4] ss:$16 sps:$4 sm:$0xff]  }
 0x5d2   : > { %8086 = vmatpush2.bf16.msra.mxu0 %v12630_v4  ;;  %8113 = vmatpush1.bf16.msra.mxu1 %v12633_v24  ;;  %v12696_v4 = vld [vmem:[%s16977_s5 + $0x728] ss:$16 sps:$4 sm:$0xff]   ;;  %v12699_v24 = vld [vmem:[%s16977_s5 + $0x8c0] ss:$16 sps:$4 sm:$0xff]  }
 0x5d3   : > { %8087 = vmatprep.subr.bf16.mxu0 %v12638_v51  ;;  %8139 = vmatprep.subr.bf16.mxu1 %v12641_v49  ;;  %v12704_v51 = vld [vmem:[%s16977_s5 + $0x70c] ss:$16 sps:$4 sm:$0xff]   ;;  %v12707_v49 = vld [vmem:[%s16977_s5 + $0x8a4] ss:$16 sps:$4 sm:$0xff]  }
 0x5d5   : > { %11014 = vmatmul.mubr.msk.bf16.vlgmr.msra.gmra.mxu1 %vm6719_vm9, %v16379_v21 }
 0x5d6   : > { %8088 = vmatpush2.bf16.msra.mxu0 %v12636_v61  ;;  %8140 = vmatpush1.bf16.msra.mxu1 %v12639_v7  ;;  %v12702_v61 = vld [vmem:[%s16977_s5 + $0x708] ss:$16 sps:$4 sm:$0xff]   ;;  %v12705_v7 = vld [vmem:[%s16977_s5 + $0x8a0] ss:$16 sps:$4 sm:$0xff]  }
 0x5d7   : > { %8171 = vmatprep.mubr.bf16.mxu1 %v16196_v54  ;;  %8141 = vmatprep.subr.bf16.mxu1 %v12644_v33  ;;  %v12710_v33 = vld [vmem:[%s16977_s5 + $0x6ec] ss:$16 sps:$4 sm:$0xff]   ;;  %v12780_v54 = vld [vmem:[%s16977_s5 + $0x8e8] ss:$16 sps:$4 sm:$0xff]  }
 0x5d8   : > { %11015 = vmatprep.subr.msk.bf16.mxu0 %vm709_vm3, %v12645_v14 }
 0x5d9   : > { %8090 = vmatmul.mubr.bf16.vlgmr.msra.gmra.mxu0 %v16398_v12 }
 0x5da   : > { %8142 = vmatpush1.bf16.msra.mxu1 %v12642_v40  ;;  %8185 = vmatpush1.bf16.msra.mxu0 %v8052_v29  ;;  %v12708_v40 = vld [vmem:[%s16977_s5 + $0x6e8] ss:$16 sps:$4 sm:$0xff]   ;;  %v12711_v29 = vld [vmem:[%s16977_s5 + $0x880] ss:$16 sps:$4 sm:$0xff]  }
 0x5db   : > { %8143 = vmatprep.subr.bf16.mxu1 %v12650_v41  ;;  %8186 = vmatprep.subr.bf16.mxu0 %v12653_v15  ;;  %v12716_v15 = vld [vmem:[%s16977_s5 + $0x6cc] ss:$16 sps:$4 sm:$0xff]  }
 0x5dc   : > { %8212 = vmatprep.mubr.bf16.mxu0 %v17042_v10 }
 0x5de   : > { %8144 = vmatpush1.bf16.msra.mxu1 %v12648_v46  ;;  %8187 = vmatpush1.bf16.msra.mxu0 %v12651_v50  ;;  %v12719_v46 = vld [vmem:[%s16977_s5 + $0x864] ss:$16 sps:$4 sm:$0xff]  }
 0x5df   : > { %8145 = vmatprep.subr.bf16.mxu1 %v12656_v37  ;;  %8188 = vmatprep.subr.bf16.mxu0 %v12659_v59  ;;  %v12714_v37 = vld [vmem:[%s16977_s5 + $0x6c8] ss:$16 sps:$4 sm:$0xff]   ;;  %v12717_v59 = vld [vmem:[%s16977_s5 + $0x860] ss:$16 sps:$4 sm:$0xff]  }
 0x5e2   : > { %8146 = vmatpush1.bf16.msra.mxu1 %v12654_v20  ;;  %8189 = vmatpush1.bf16.msra.mxu0 %v12657_v56  ;;  %v12722_v56 = vld [vmem:[%s16977_s5 + $0x6ac] ss:$16 sps:$4 sm:$0xff]  }
 0x5e3   : > { %8147 = vmatprep.subr.bf16.mxu1 %v12662_v35  ;;  %8190 = vmatprep.subr.bf16.mxu0 %v12665_v2  ;;  %v12725_v35 = vld [vmem:[%s16977_s5 + $0x844] ss:$16 sps:$4 sm:$0xff]   ;;  %v12720_v2 = vld [vmem:[%s16977_s5 + $0x6a8] ss:$16 sps:$4 sm:$0xff]  }
 0x5e5   : > { %v6810_v19 = vpop.f32.mrf.mxu1 }
 0x5e6   : > { %8148 = vmatpush1.bf16.msra.mxu1 %v12660_v38  ;;  %8191 = vmatpush1.bf16.msra.mxu0 %v12663_v1  ;;  %v12723_v38 = vld [vmem:[%s16977_s5 + $0x840] ss:$16 sps:$4 sm:$0xff]   ;;  %v12728_v1 = vld [vmem:[%s16977_s5 + $0x68c] ss:$16 sps:$4 sm:$0xff]  }
 0x5e7   : > { %v6812_v57 = vpop.f32.mrf.mxu1  ;;  %8149 = vmatprep.subr.bf16.mxu1 %v12668_v26  ;;  %8192 = vmatprep.subr.bf16.mxu0 %v12671_v58  ;;  %v12731_v26 = vld [vmem:[%s16977_s5 + $0xa24] ss:$16 sps:$4 sm:$0xff]   ;;  %v12726_v58 = vld [vmem:[%s16977_s5 + $0x688] ss:$16 sps:$4 sm:$0xff]  }
 0x5e9   : > { %v6769_v60 = vpop.f32.mrf.mxu0  ;;  %v6814_v8 = vpop.f32.mrf.mxu1 }
 0x5ea   : > { %v16458_v5 = vadd.f32 %v6810_v19, %v6769_v60  ;;  %8150 = vmatpush1.bf16.msra.mxu1 %v12666_v28  ;;  %8193 = vmatpush1.bf16.msra.mxu0 %v12669_v32  ;;  %v12729_v19 = vld [vmem:[%s16977_s5 + $0xa20] ss:$16 sps:$4 sm:$0xff]   ;;  %v12734_v28 = vld [vmem:[%s16977_s5 + $0xa04] ss:$16 sps:$4 sm:$0xff]  }
 0x5eb   : > { %v6771_v17 = vpop.f32.mrf.mxu0  ;;  %v6815_v27 = vpop.f32.mrf.mxu1  ;;  %8151 = vmatprep.subr.bf16.mxu1 %v12674_v6  ;;  %8194 = vmatprep.subr.bf16.mxu0 %v12677_v22  ;;  %v12735_v32 = vld [vmem:[%s16977_s5 + $0xae4] ss:$16 sps:$4 sm:$0x7f]   ;;  %v12732_v6 = vld [vmem:[%s16977_s5 + $0xa00] ss:$16 sps:$4 sm:$0xff]  }
 0x5ec   : > { %v16472_v30 = vadd.f32 %v6812_v57, %v6771_v17  ;;  %v12737_v57 = vld [vmem:[%s16977_s5 + $0xae0] ss:$16 sps:$4 sm:$0x7f]   ;;  %v12740_v60 = vld [vmem:[%s16977_s5 + $0x9e4] ss:$16 sps:$4 sm:$0xff]  }
 0x5ed   : > { %v6773_v44 = vpop.f32.mrf.mxu0  ;;  %v8762_v22 = vsel %vm709_vm3, %v12737_v57, 0  ;;  %v12743_v8 = vld [vmem:[%s16977_s5 + $0xac4] ss:$16 sps:$4 sm:$0xff]   ;;  %v12801_v57 = vld [vmem:[%s16977_s5 + $0xa68] ss:$16 sps:$4 sm:$0xff]  }
 0x5ee   : > { %8152 = vmatpush1.bf16.msra.mxu1 %v12672_v47  ;;  %8195 = vmatpush1.bf16.msra.mxu0 %v12675_v3  ;;  %v12738_v47 = vld [vmem:[%s16977_s5 + $0x9e0] ss:$16 sps:$4 sm:$0xff]   ;;  %v12746_v17 = vld [vmem:[%s16977_s5 + $0x9c4] ss:$16 sps:$4 sm:$0xff]  }
 0x5ef   : > { %v6774_v42 = vpop.f32.mrf.mxu0  ;;  %8153 = vmatprep.subr.bf16.mxu1 %v12680_v39  ;;  %8773 = vmatprep.subr.bf16.mxu0 %v12683_v31  ;;  %v12741_v3 = vld [vmem:[%s16977_s5 + $0xac0] ss:$16 sps:$4 sm:$0xff]   ;;  %v12749_v27 = vld [vmem:[%s16977_s5 + $0xaa4] ss:$16 sps:$4 sm:$0xff]  }
 0x5f0   : > { %v12744_v39 = vld [vmem:[%s16977_s5 + $0x9c0] ss:$16 sps:$4 sm:$0xff]   ;;  %v12752_v44 = vld [vmem:[%s16977_s5 + $0x9a4] ss:$16 sps:$4 sm:$0xff]  }
 0x5f1   : > { %11016 = vmatmul.mubr.msk.bf16.vlgmr.msra.gmra.mxu0 %vm6719_vm9, %v16379_v21  ;;  %v12747_v31 = vld [vmem:[%s16977_s5 + $0xaa0] ss:$16 sps:$4 sm:$0xff]  }
 0x5f2   : > { %8154 = vmatpush1.bf16.msra.mxu1 %v12678_v13  ;;  %8774 = vmatpush1.bf16.msra.mxu0 %v12681_v34  ;;  %v12755_v13 = vld [vmem:[%s16977_s5 + $0xa84] ss:$16 sps:$4 sm:$0xff]   ;;  %v12750_v34 = vld [vmem:[%s16977_s5 + $0x9a0] ss:$16 sps:$4 sm:$0xff]  }
 0x5f3   : > { %8805 = vmatprep.mubr.bf16.mxu0 %v8318_v23  ;;  %8155 = vmatprep.subr.bf16.mxu1 %v12686_v48  ;;  %v12753_v42 = vld [vmem:[%s16977_s5 + $0xa80] ss:$16 sps:$4 sm:$0xff]   ;;  %v12758_v48 = vld [vmem:[%s16977_s5 + $0x984] ss:$16 sps:$4 sm:$0xff]  }
 0x5f4   : > { %8775 = vmatprep.subr.bf16.mxu0 %v12689_v55  ;;  %v12761_v55 = vld [vmem:[%s16977_s5 + $0xa64] ss:$16 sps:$4 sm:$0xff]  }
 0x5f6   : > { %8156 = vmatpush2.bf16.msra.mxu1 %v12684_v53  ;;  %8776 = vmatpush1.bf16.msra.mxu0 %v12687_v43  ;;  %v12756_v53 = vld [vmem:[%s16977_s5 + $0x980] ss:$16 sps:$4 sm:$0xff]  }
 0x5f7   : > { %8157 = vmatprep.subr.bf16.mxu1 %v12692_v11  ;;  %8777 = vmatprep.subr.bf16.mxu0 %v12695_v0  ;;  %v12759_v43 = vld [vmem:[%s16977_s5 + $0xa60] ss:$16 sps:$4 sm:$0xff]   ;;  %v12764_v11 = vld [vmem:[%s16977_s5 + $0x964] ss:$16 sps:$4 sm:$0xff]  }
 0x5f8   : > { %v12767_v0 = vld [vmem:[%s16977_s5 + $0xa44] ss:$16 sps:$4 sm:$0xff]  }
 0x5fa   : > { %8158 = vmatpush2.bf16.msra.mxu1 %v12690_v16  ;;  %8778 = vmatpush1.bf16.msra.mxu0 %v12693_v25 }
 0x5fb   : > { %8159 = vmatprep.subr.bf16.mxu1 %v12698_v36  ;;  %8779 = vmatprep.subr.bf16.mxu0 %v12701_v9  ;;  %v12762_v36 = vld [vmem:[%s16977_s5 + $0x960] ss:$16 sps:$4 sm:$0xff]  }
 0x5fc   : > { %v12765_v9 = vld [vmem:[%s16977_s5 + $0xa40] ss:$16 sps:$4 sm:$0xff]  }
 0x5fe   : > { %8160 = vmatpush2.bf16.msra.mxu1 %v12696_v4  ;;  %8780 = vmatpush1.bf16.msra.mxu0 %v12699_v24  ;;  %v12770_v24 = vld [vmem:[%s16977_s5 + $0x944] ss:$16 sps:$4 sm:$0xff]  }
 0x5ff   : > { %8161 = vmatprep.subr.bf16.mxu1 %v12704_v51  ;;  %8781 = vmatprep.subr.bf16.mxu0 %v12707_v49  ;;  %v12773_v51 = vld [vmem:[%s16977_s5 + $0x92c] ss:$16 sps:$4 sm:$0xff]  }
 0x601   : > { %v16539_v14 = vpop.f32.mrf.mxu0 }
 0x602   : > { %8162 = vmatpush2.bf16.msra.mxu1 %v12702_v61  ;;  %8782 = vmatpush1.bf16.msra.mxu0 %v12705_v7  ;;  %v12768_v7 = vld [vmem:[%s16977_s5 + $0x940] ss:$16 sps:$4 sm:$0xff]  }
 0x603   : > { %v16547_v41 = vpop.f32.mrf.mxu0  ;;  %8163 = vmatprep.subr.bf16.mxu1 %v12710_v33  ;;  %8783 = vmatprep.subr.bf16.mxu0 %v12713_v52  ;;  %v12771_v33 = vld [vmem:[%s16977_s5 + $0x928] ss:$16 sps:$4 sm:$0xff]  }
 0x605   : > { %v6896_v50 = vpop.f32.mrf.mxu0 }
 0x606   : > { %8164 = vmatpush2.bf16.msra.mxu1 %v12708_v40  ;;  %8784 = vmatpush1.bf16.msra.mxu0 %v12711_v29  ;;  %v12776_v40 = vld [vmem:[%s16977_s5 + $0x90c] ss:$16 sps:$4 sm:$0xff]   ;;  %v12779_v29 = vld [vmem:[%s16977_s5 + $0xae8] ss:$16 sps:$4 sm:$0x7f]  }
 0x607   : > { %v6897_v20 = vpop.f32.mrf.mxu0  ;;  %8165 = vmatprep.subr.bf16.mxu1 %v12716_v15  ;;  %8785 = vmatprep.subr.bf16.mxu0 %v12719_v46  ;;  %v12774_v15 = vld [vmem:[%s16977_s5 + $0x908] ss:$16 sps:$4 sm:$0xff]   ;;  %v8317_v46 = vrot.slane %v16398_v12, 2  ;;  %v8768_v50 = vsel %vm709_vm3, %v12779_v29, 0  ;;  %v12840_v29 = vld [vmem:[%s16979_s7 + $0x30] sm:$0xff]  }
 0x608   : > { %v12788_v20 = vld [vmem:[%s16977_s5 + $0x8cc] ss:$16 sps:$4 sm:$0xff]  }
 0x60a   : > { %8166 = vmatpush2.bf16.msra.mxu1 %v12714_v37  ;;  %8786 = vmatpush1.bf16.msra.mxu0 %v12717_v59  ;;  %v12782_v37 = vld [vmem:[%s16977_s5 + $0x8ec] ss:$16 sps:$4 sm:$0xff]  }
 0x60b   : > { %8167 = vmatprep.subr.bf16.mxu1 %v12722_v56  ;;  %8787 = vmatprep.subr.bf16.mxu0 %v12725_v35  ;;  %v12785_v59 = vld [vmem:[%s16977_s5 + $0xacc] ss:$16 sps:$4 sm:$0xff]   ;;  %v12786_v35 = vld [vmem:[%s16977_s5 + $0x8c8] ss:$16 sps:$4 sm:$0xff]  }
 0x60c   : > { %v12791_v56 = vld [vmem:[%s16977_s5 + $0xaac] ss:$16 sps:$4 sm:$0xff]  }
 0x60e   : > { %8168 = vmatpush2.bf16.msra.mxu1 %v12720_v2  ;;  %8788 = vmatpush1.bf16.msra.mxu0 %v12723_v38  ;;  %v12789_v2 = vld [vmem:[%s16977_s5 + $0xaa8] ss:$16 sps:$4 sm:$0xff]   ;;  %v12794_v38 = vld [vmem:[%s16977_s5 + $0x8ac] ss:$16 sps:$4 sm:$0xff]  }
 0x60f   : > { %8169 = vmatprep.subr.bf16.mxu1 %v12728_v1  ;;  %8789 = vmatprep.subr.bf16.mxu0 %v12731_v26  ;;  %v12792_v1 = vld [vmem:[%s16977_s5 + $0x8a8] ss:$16 sps:$4 sm:$0xff]  }
 0x610   : > { %v12795_v26 = vld [vmem:[%s16977_s5 + $0xa88] ss:$16 sps:$4 sm:$0xff]  }
 0x612   : > { %8170 = vmatpush2.bf16.msra.mxu1 %v12726_v58  ;;  %8790 = vmatpush2.bf16.msra.mxu0 %v12729_v19  ;;  %v12800_v58 = vld [vmem:[%s16977_s5 + $0x88c] ss:$16 sps:$4 sm:$0xff]  }
 0x613   : > { %8791 = vmatprep.subr.bf16.mxu0 %v12734_v28  ;;  %11193 = vmatprep.subr.msk.bf16.mxu1 %vm709_vm3, %v12735_v32  ;;  %v12803_v19 = vld [vmem:[%s16977_s5 + $0xa6c] ss:$16 sps:$4 sm:$0xff]   ;;  %v12798_v32 = vld [vmem:[%s16977_s5 + $0x888] ss:$16 sps:$4 sm:$0xff]  }
 0x615   : > { %8172 = vmatmul.mubr.bf16.vlgmr.msra.gmra.mxu1 %v16398_v12  ;;  %v12849_v12 = vld [vmem:[%s16979_s7 + $0x48] sm:$0xff]  }
 0x616   : > { %8792 = vmatpush2.bf16.msra.mxu0 %v12732_v6  ;;  %8819 = vmatpush1.bf16.msra.mxu1 %v8762_v22  ;;  %v12806_v22 = vld [vmem:[%s16977_s5 + $0x86c] ss:$16 sps:$4 sm:$0xff]  }
 0x617   : > { %8793 = vmatprep.subr.bf16.mxu0 %v12740_v60  ;;  %8820 = vmatprep.subr.bf16.mxu1 %v12743_v8  ;;  %v12809_v60 = vld [vmem:[%s16977_s5 + $0xa4c] ss:$16 sps:$4 sm:$0xff]  }
 0x618   : > { %8846 = vmatprep.mubr.bf16.mxu1 %v17042_v10 }
 0x61a   : > { %8794 = vmatpush2.bf16.msra.mxu0 %v12738_v47  ;;  %8821 = vmatpush1.bf16.msra.mxu1 %v12741_v3 }
 0x61b   : > { %8795 = vmatprep.subr.bf16.mxu0 %v12746_v17  ;;  %8822 = vmatprep.subr.bf16.mxu1 %v12749_v27  ;;  %v12804_v17 = vld [vmem:[%s16977_s5 + $0x868] ss:$16 sps:$4 sm:$0xff]  }
 0x61c   : > { %v12807_v27 = vld [vmem:[%s16977_s5 + $0xa48] ss:$16 sps:$4 sm:$0xff]  }
 0x61e   : > { %8796 = vmatpush2.bf16.msra.mxu0 %v12744_v39  ;;  %8823 = vmatpush1.bf16.msra.mxu1 %v12747_v31 }
 0x61f   : > { %8797 = vmatprep.subr.bf16.mxu0 %v12752_v44  ;;  %8824 = vmatprep.subr.bf16.mxu1 %v12755_v13  ;;  %v12812_v44 = vld [vmem:[%s16977_s5 + $0x84c] ss:$16 sps:$4 sm:$0xff]  }
 0x622   : > { %8798 = vmatpush2.bf16.msra.mxu0 %v12750_v34  ;;  %8825 = vmatpush1.bf16.msra.mxu1 %v12753_v42 }
 0x623   : > { %8799 = vmatprep.subr.bf16.mxu0 %v12758_v48  ;;  %8826 = vmatprep.subr.bf16.mxu1 %v12761_v55  ;;  %v12810_v48 = vld [vmem:[%s16977_s5 + $0x848] ss:$16 sps:$4 sm:$0xff]  }
 0x625   : > { %v6851_v16 = vpop.f32.mrf.mxu1 }
 0x626   : > { %v16656_v25 = vadd.f32 %v16539_v14, %v6851_v16  ;;  %8800 = vmatpush2.bf16.msra.mxu0 %v12756_v53  ;;  %8827 = vmatpush1.bf16.msra.mxu1 %v12759_v43  ;;  %v8319_v14 = vrot.slane %v16379_v21, 2  ;;  %v12815_v53 = vld [vmem:[%s16977_s5 + $0xa2c] ss:$16 sps:$4 sm:$0xff]  }
 0x627   : > { %v6853_v4 = vpop.f32.mrf.mxu1  ;;  %8801 = vmatprep.subr.bf16.mxu0 %v12764_v11  ;;  %8828 = vmatprep.subr.bf16.mxu1 %v12767_v0  ;;  %v12818_v43 = vld [vmem:[%s16977_s5 + $0xa0c] ss:$16 sps:$4 sm:$0xff]   ;;  %v12816_v11 = vld [vmem:[%s16977_s5 + $0xa08] ss:$16 sps:$4 sm:$0xff]  }
 0x628   : > { %v16671_v49 = vadd.f32 %v16547_v41, %v6853_v4  ;;  %v12777_v41 = vld [vmem:[%s16977_s5 + $0xaec] ss:$16 sps:$4 sm:$0x7f]   ;;  %v12819_v0 = vld [vmem:[%s16977_s5 + $0x9e8] ss:$16 sps:$4 sm:$0xff]  }
 0x629   : > { %v6855_v61 = vpop.f32.mrf.mxu1  ;;  %v12821_v21 = vld [vmem:[%s16977_s5 + $0x9ec] ss:$16 sps:$4 sm:$0xff]  }
 0x62a   : > { %8802 = vmatpush2.bf16.msra.mxu0 %v12762_v36  ;;  %8829 = vmatpush1.bf16.msra.mxu1 %v12765_v9  ;;  %v12824_v16 = vld [vmem:[%s16977_s5 + $0x9cc] ss:$16 sps:$4 sm:$0xff]   ;;  %v12822_v36 = vld [vmem:[%s16977_s5 + $0x9c8] ss:$16 sps:$4 sm:$0xff]  }
 0x62b   : > { %v6856_v52 = vpop.f32.mrf.mxu1  ;;  %8803 = vmatprep.subr.bf16.mxu0 %v12770_v24  ;;  %8855 = vmatprep.subr.bf16.mxu1 %v12773_v51  ;;  %v12827_v9 = vld [vmem:[%s16977_s5 + $0x9ac] ss:$16 sps:$4 sm:$0xff]   ;;  %v12825_v24 = vld [vmem:[%s16977_s5 + $0x9a8] ss:$16 sps:$4 sm:$0xff]  }
 0x62c   : > { %v12830_v51 = vld [vmem:[%s16977_s5 + $0x98c] ss:$16 sps:$4 sm:$0xff]   ;;  %v12839_v52 = vld [vmem:[%s16979_s7 + $0x70] sm:$0xff]  }
 0x62d   : > { %11194 = vmatmul.mubr.msk.bf16.vlgmr.msra.gmra.mxu1 %vm6719_vm9, %v8319_v14 }
 0x62e   : > { %8804 = vmatpush2.bf16.msra.mxu0 %v12768_v7  ;;  %8856 = vmatpush1.bf16.msra.mxu1 %v12771_v33  ;;  %v12837_v7 = vld [vmem:[%s16979_s7 + $0x78] sm:$0xff]  }
 0x62f   : > { %8887 = vmatprep.mubr.bf16.mxu1 %v8318_v23  ;;  %8857 = vmatprep.subr.bf16.mxu1 %v12776_v40  ;;  %v12783_v23 = vld [vmem:[%s16977_s5 + $0xac8] ss:$16 sps:$4 sm:$0xff]  }
 0x630   : > { %11195 = vmatprep.subr.msk.bf16.mxu0 %vm709_vm3, %v12777_v41  ;;  %v12838_v33 = vld [vmem:[%s16979_s7 + $0x38] sm:$0xff]  }
 0x631   : > { %8806 = vmatmul.mubr.bf16.vlgmr.msra.gmra.mxu0 %v8317_v46  ;;  %v12828_v40 = vld [vmem:[%s16977_s5 + $0x988] ss:$16 sps:$4 sm:$0xff]  }
 0x632   : > { %8858 = vmatpush1.bf16.msra.mxu1 %v12774_v15  ;;  %8901 = vmatpush1.bf16.msra.mxu0 %v8768_v50  ;;  %v12833_v15 = vld [vmem:[%s16977_s5 + $0x96c] ss:$16 sps:$4 sm:$0xff]  }
 0x633   : > { %8859 = vmatprep.subr.bf16.mxu1 %v12782_v37  ;;  %8902 = vmatprep.subr.bf16.mxu0 %v12785_v59  ;;  %v12841_v50 = vld [vmem:[%s16979_s7 + $0x68] sm:$0xff]  }
 0x634   : > { %8928 = vmatprep.mubr.bf16.mxu0 %v17042_v10  ;;  %v12797_v10 = vld [vmem:[%s16977_s5 + $0xa8c] ss:$16 sps:$4 sm:$0xff]   ;;  %v12831_v37 = vld [vmem:[%s16977_s5 + $0x968] ss:$16 sps:$4 sm:$0xff]  }
 0x635   : > { %v12842_v59 = vld [vmem:[%s16979_s7 + $0x28] sm:$0xff]  }
 0x636   : > { %8860 = vmatpush1.bf16.msra.mxu1 %v12780_v54  ;;  %8903 = vmatpush1.bf16.msra.mxu0 %v12783_v23  ;;  %v12836_v54 = vld [vmem:[%s16977_s5 + $0x94c] ss:$16 sps:$4 sm:$0xff]   ;;  %v12843_v23 = vld [vmem:[%s16979_s7 + $0x60] sm:$0xff]  }
 0x637   : > { %8861 = vmatprep.subr.bf16.mxu1 %v12788_v20  ;;  %8904 = vmatprep.subr.bf16.mxu0 %v12791_v56  ;;  %v12834_v20 = vld [vmem:[%s16977_s5 + $0x948] ss:$16 sps:$4 sm:$0xff]   ;;  %v12844_v56 = vld [vmem:[%s16979_s7 + $0x20] sm:$0xff]  }
 0x63a   : > { %8862 = vmatpush1.bf16.msra.mxu1 %v12786_v35  ;;  %8905 = vmatpush1.bf16.msra.mxu0 %v12789_v2  ;;  %v12845_v35 = vld [vmem:[%s16979_s7 + $0x58] sm:$0xff]  }
 0x63b   : > { %8863 = vmatprep.subr.bf16.mxu1 %v12794_v38  ;;  %8906 = vmatprep.subr.bf16.mxu0 %v12797_v10  ;;  %v12846_v2 = vld [vmem:[%s16979_s7 + $0x18] sm:$0xff]   ;;  %v12847_v38 = vld [vmem:[%s16979_s7 + $0x50] sm:$0xff]  }
 0x63c   : > { %v12848_v10 = vld [vmem:[%s16979_s7 + $0x10] sm:$0xff]  }
 0x63d   : > { %v7425_v28 = vpop.f32.mrf.mxu1 }
 0x63e   : > { %8864 = vmatpush1.bf16.msra.mxu1 %v12792_v1  ;;  %8907 = vmatpush1.bf16.msra.mxu0 %v12795_v26  ;;  %v12850_v1 = vld [vmem:[%s16979_s7 + $0x8] sm:$0xff]  }
 0x63f   : > { %v7427_v6 = vpop.f32.mrf.mxu1  ;;  %8865 = vmatprep.subr.bf16.mxu1 %v12800_v58  ;;  %8908 = vmatprep.subr.bf16.mxu0 %v12803_v19  ;;  %v12851_v58 = vld [vmem:[%s16979_s7 + $0x40] sm:$0xff]  }
 0x641   : > { %v7384_v8 = vpop.f32.mrf.mxu0  ;;  %v7429_v47 = vpop.f32.mrf.mxu1 }
 0x642   : > { %v7385_v3 = vadd.f32 %v7384_v8, %v16458_v5  ;;  %8866 = vmatpush1.bf16.msra.mxu1 %v12798_v32  ;;  %8909 = vmatpush1.bf16.msra.mxu0 %v12801_v57  ;;  %v12854_v8 = vld [vmem:[%s16979_s7 + $0xb8] sm:$0xff]   ;;  %v12856_v47 = vld [vmem:[%s16979_s7 + $0xb0] sm:$0xff]  }
 0x643   : > { %v7386_v39 = vpop.f32.mrf.mxu0  ;;  %v7430_v31 = vpop.f32.mrf.mxu1  ;;  %8867 = vmatprep.subr.bf16.mxu1 %v12806_v22  ;;  %8910 = vmatprep.subr.bf16.mxu0 %v12809_v60 }
 0x644   : > { %v16767_v13 = vadd.f32 %v7425_v28, %v7385_v3  ;;  %v7387_v5 = vadd.f32 %v7386_v39, %v16472_v30  ;;  %v12813_v30 = vld [vmem:[%s16977_s5 + $0xa28] ss:$16 sps:$4 sm:$0xff]   ;;  %v12859_v31 = vld [vmem:[%s16979_s7 + $0xe0] sm:$0xff]  }
 0x645   : > { %v7388_v34 = vpop.f32.mrf.mxu0  ;;  %v12857_v3 = vld [vmem:[%s16979_s7 + $0xe8] sm:$0xff]  }
 0x646   : > { %v16770_v42 = vadd.f32 %v7427_v6, %v7387_v5  ;;  %8868 = vmatpush1.bf16.msra.mxu1 %v12804_v17  ;;  %8911 = vmatpush1.bf16.msra.mxu0 %v12807_v27  ;;  %v12852_v6 = vld [vmem:[%s16979_s7] sm:$0xff]   ;;  %v12858_v27 = vld [vmem:[%s16979_s7 + $0xa8] sm:$0xff]  }
 0x647   : > { %v7389_v55 = vpop.f32.mrf.mxu0  ;;  %8869 = vmatprep.subr.bf16.mxu1 %v12812_v44  ;;  %11232 = vmatprep.subr.bf16.mxu0 %v12837_v7  ;;  %v12866_v7 = vld [vmem:[%s16979_s7 + $0x88] sm:$0xff]  }
 0x649   : > { %11196 = vmatmul.mubr.msk.bf16.vlgmr.msra.gmra.mxu0 %vm6719_vm9, %v8319_v14 }
 0x64a   : > { %8870 = vmatpush1.bf16.msra.mxu1 %v12810_v48  ;;  %11233 = vmatpush3.bf16.msra.mxu0 %v12838_v33  ;;  %v12860_v48 = vld [vmem:[%s16979_s7 + $0xa0] sm:$0xff]  }
 0x64b   : > { %8871 = vmatprep.subr.bf16.mxu1 %v12815_v53  ;;  %11234 = vmatprep.subr.bf16.mxu0 %v12839_v52  ;;  %v12867_v33 = vld [vmem:[%s16979_s7 + $0xc0] sm:$0xff]  }
 0x64c   : > { %v12868_v52 = vld [vmem:[%s16979_s7 + $0x80] sm:$0xff]  }
 0x64e   : > { %8872 = vmatpush2.bf16.msra.mxu1 %v12813_v30  ;;  %11235 = vmatpush3.bf16.msra.mxu0 %v12840_v29  ;;  %v12861_v30 = vld [vmem:[%s16979_s7 + $0xd8] sm:$0xff]  }
 0x64f   : > { %8873 = vmatprep.subr.bf16.mxu1 %v12818_v43  ;;  %11236 = vmatprep.subr.bf16.mxu0 %v12841_v50 }
 0x652   : > { %8874 = vmatpush2.bf16.msra.mxu1 %v12816_v11  ;;  %11237 = vmatpush3.bf16.msra.mxu0 %v12842_v59 }
 0x653   : > { %8875 = vmatprep.subr.bf16.mxu1 %v12821_v21  ;;  %11238 = vmatprep.subr.bf16.mxu0 %v12843_v23 }
 0x656   : > { %8876 = vmatpush2.bf16.msra.mxu1 %v12819_v0  ;;  %11239 = vmatpush3.bf16.msra.mxu0 %v12844_v56 }
 0x657   : > { %8877 = vmatprep.subr.bf16.mxu1 %v12824_v16  ;;  %11240 = vmatprep.subr.bf16.mxu0 %v12845_v35  ;;  %v12862_v16 = vld [vmem:[%s16979_s7 + $0x98] sm:$0xff]  }
 0x659   : > { %v7507_v4 = vpop.f32.mrf.mxu0 }
 0x65a   : > { %8878 = vmatpush2.bf16.msra.mxu1 %v12822_v36  ;;  %11241 = vmatpush3.bf16.msra.mxu0 %v12846_v2 }
 0x65b   : > { %v7509_v61 = vpop.f32.mrf.mxu0  ;;  %8879 = vmatprep.subr.bf16.mxu1 %v12827_v9  ;;  %11242 = vmatprep.subr.bf16.mxu0 %v12847_v38 }
 0x65d   : > { %v7511_v14 = vpop.f32.mrf.mxu0 }
 0x65e   : > { %8880 = vmatpush2.bf16.msra.mxu1 %v12825_v24  ;;  %11243 = vmatpush3.bf16.msra.mxu0 %v12848_v10 }
 0x65f   : > { %v7512_v41 = vpop.f32.mrf.mxu0  ;;  %8881 = vmatprep.subr.bf16.mxu1 %v12830_v51  ;;  %11244 = vmatprep.subr.bf16.mxu0 %v12849_v12  ;;  %v12863_v51 = vld [vmem:[%s16979_s7 + $0xd0] sm:$0xff]  }
 0x662   : > { %8882 = vmatpush2.bf16.msra.mxu1 %v12828_v40  ;;  %11245 = vmatpush3.bf16.msra.mxu0 %v12850_v1 }
 0x663   : > { %8883 = vmatprep.subr.bf16.mxu1 %v12833_v15  ;;  %11246 = vmatprep.subr.bf16.mxu0 %v12851_v58 }
 0x666   : > { %8884 = vmatpush2.bf16.msra.mxu1 %v12831_v37  ;;  %11247 = vmatpush3.bf16.msra.mxu0 %v12852_v6 }
 0x667   : > { %8885 = vmatprep.subr.bf16.mxu1 %v12836_v54 }
 0x66a   : > { %8886 = vmatpush2.bf16.msra.mxu1 %v12834_v20  ;;  %v8941_v20 = vld [vmem:[%s16978_s6] sm:$0xf] }
 0x66b   : > { %v8946_v38 = vrot.slane %v8941_v20, %v17041_v45 }
 0x66d   : > { %8888 = vmatmul.mubr.bf16.vlgmr.msra.gmra.mxu1 %v8317_v46 }
 0x67d   : > { %v7466_v46 = vpop.f32.mrf.mxu1 }
 0x67e   : > { %v7467_v26 = vadd.f32 %v7466_v46, %v16656_v25  ;;  %v12853_v25 = vld [vmem:[%s16979_s7 + $0xf8] sm:$0xff]  }
 0x67f   : > { %v7468_v19 = vpop.f32.mrf.mxu1  ;;  %11254 = vmatprep.subr.bf16.mxu1 %v12853_v25 }
 0x680   : > { %v7508_v28 = vadd.f32 %v7507_v4, %v7467_v26  ;;  %v7469_v32 = vadd.f32 %v7468_v19, %v16671_v49  ;;  %v12855_v49 = vld [vmem:[%s16979_s7 + $0xf0] sm:$0xff]   ;;  %11255 = vmatpush3.bf16.msra.mxu1 %v12854_v8  ;;  %v8950_v26 = vrot.slane %v8941_v20, %v17040_v62 }
 0x681   : > { %v7470_v57 = vpop.f32.mrf.mxu1  ;;  %11256 = vmatprep.subr.bf16.mxu1 %v12855_v49 }
 0x682   : > { %v7510_v22 = vadd.f32 %v7509_v61, %v7469_v32 }
 0x683   : > { %v7471_v60 = vpop.f32.mrf.mxu1 }
 0x684   : > { %11257 = vmatpush3.bf16.msra.mxu1 %v12856_v47 }
 0x685   : > { %11258 = vmatprep.subr.bf16.mxu1 %v12857_v3 }
 0x688   : > { %11259 = vmatpush3.bf16.msra.mxu1 %v12858_v27  ;;  %v8954_v27 = vrot.slane %v8941_v20, %v17035_v18 }
 0x689   : > { %11260 = vmatprep.subr.bf16.mxu1 %v12859_v31 }
 0x68c   : > { %11261 = vmatpush3.bf16.msra.mxu1 %v12860_v48 }
 0x68d   : > { %11262 = vmatprep.subr.bf16.mxu1 %v12861_v30 }
 0x690   : > { %11263 = vmatpush3.bf16.msra.mxu1 %v12862_v16 }
 0x691   : > { %11264 = vmatprep.subr.bf16.mxu1 %v12863_v51 }
 0x695   : > { %v8132_v17 = vpop.f32.mrf.mxu1 }
 0x697   : > { %v8134_v39 = vpop.f32.mrf.mxu1 }
 0x699   : > { %v8091_v44 = vpop.f32.mrf.mxu0  ;;  %v8136_v5 = vpop.f32.mrf.mxu1 }
 0x69a   : > { %v8133_v34 = vadd.f32 %v8132_v17, %v8091_v44  ;;  %v8958_v44 = vrot.slane %v8941_v20, %v17037_v63  ;;  %v9039_v63 = vld [vmem:[%s16980_s8] sm:$0x1] }
 0x69b   : > { %v8093_v55 = vpop.f32.mrf.mxu0  ;;  %v8137_v53 = vpop.f32.mrf.mxu1 }
 0x69c   : > { %v8221_v43 = vadd.f32 %v8133_v34, %v16767_v13  ;;  %v8135_v11 = vadd.f32 %v8134_v39, %v8093_v55  ;;  %v12864_v13 = vld [vmem:[%s16979_s7 + $0x90] sm:$0xff]  }
 0x69d   : > { %v8095_v21 = vpop.f32.mrf.mxu0  ;;  %11265 = vmatpush3.bf16.msra.mxu1 %v12864_v13 }
 0x69e   : > { %v8222_v0 = vadd.f32 %v8135_v11, %v16770_v42  ;;  %v12865_v42 = vld [vmem:[%s16979_s7 + $0xc8] sm:$0xff]  }
 0x69f   : > { %v8096_v36 = vpop.f32.mrf.mxu0  ;;  %11266 = vmatprep.subr.bf16.mxu1 %v12865_v42 }
 0x6a1   : > { %11267 = vmatpush3.bf16.msra.mxu1 %v12866_v7 }
 0x6a2   : > { %11268 = vmatprep.subr.bf16.mxu1 %v12867_v33 }
 0x6a5   : > { %11269 = vmatpush3.bf16.msra.mxu1 %v12868_v52 }
 0x6b1   : > { %v8214_v9 = vpop.f32.mrf.mxu0 }
 0x6b3   : > { %v8216_v4 = vpop.f32.mrf.mxu0 }
 0x6b5   : > { %v8218_v24 = vpop.f32.mrf.mxu0 }
 0x6b7   : > { %v8219_v61 = vpop.f32.mrf.mxu0 }
 0x6d5   : > { %v8173_v14 = vpop.f32.mrf.mxu1 }
 0x6d6   : > { %v8215_v40 = vadd.f32 %v8214_v9, %v8173_v14 }
 0x6d7   : > { %v8175_v29 = vpop.f32.mrf.mxu1 }
 0x6d8   : > { %v8223_v41 = vadd.f32 %v8215_v40, %v7508_v28  ;;  %v8217_v15 = vadd.f32 %v8216_v4, %v8175_v29 }
 0x6d9   : > { %v8177_v50 = vpop.f32.mrf.mxu1 }
 0x6da   : > { %v8224_v37 = vadd.f32 %v8217_v15, %v7510_v22 }
 0x6db   : > { %v8178_v59 = vpop.f32.mrf.mxu1 }
 0x6ed   : > { %v8848_v54 = vpop.f32.mrf.mxu1 }
 0x6ef   : > { %v8850_v23 = vpop.f32.mrf.mxu1 }
 0x6f1   : > { %v8807_v56 = vpop.f32.mrf.mxu0  ;;  %v8852_v35 = vpop.f32.mrf.mxu1 }
 0x6f2   : > { %v8849_v2 = vadd.f32 %v8848_v54, %v8807_v56 }
 0x6f3   : > { %v8809_v10 = vpop.f32.mrf.mxu0  ;;  %v8853_v12 = vpop.f32.mrf.mxu1 }
 0x6f4   : > { %v8937_v46 = vadd.f32 %v8849_v2, %v8221_v43  ;;  %v8851_v1 = vadd.f32 %v8850_v23, %v8809_v10 }
 0x6f5   : > { %v8811_v58 = vpop.f32.mrf.mxu0 }
 0x6f6   : > { %v8963_v19 = vadd.f32 %v8946_v38, %v8937_v46  ;;  %v8938_v28 = vadd.f32 %v8851_v1, %v8222_v0 }
 0x6f7   : > { %v8812_v32 = vpop.f32.mrf.mxu0 }
 0x6f8   : > { %v8964_v57 = vadd.f32 %v8950_v26, %v8938_v28  ;;  %v8967_v6 = vmax.f32 %v8963_v19, 0.0 }
 0x6fa   : > { %v8968_v22 = vmax.f32 %v8964_v57, 0.0  ;;  %v8971_v25 = vpack.c.bf16 %v8967_v6, %v8967_v6 }
 0x6fc   : > { %v8972_v60 = vpack.c.bf16 %v8968_v22, %v8968_v22 }
 0x6fe   : > { %9264 = vmatprep.mubr.bf16.mxu0 %v8972_v60 }
 0x6ff   : > { %9265 = vmatmul.mubr.bf16.vlgmr.msra.gmra.mxu0 %v8971_v25 }
 0x709   : > { %v8930_v8 = vpop.f32.mrf.mxu0 }
 0x70b   : > { %v8932_v49 = vpop.f32.mrf.mxu0 }
 0x70d   : > { %v8934_v45 = vpop.f32.mrf.mxu0 }
 0x70f   : > { %v8935_v47 = vpop.f32.mrf.mxu0 }
 0x72d   : > { %v8889_v3 = vpop.f32.mrf.mxu1 }
 0x72e   : > { %v8931_v17 = vadd.f32 %v8930_v8, %v8889_v3 }
 0x72f   : > { %v8891_v62 = vpop.f32.mrf.mxu1 }
 0x730   : > { %v8939_v39 = vadd.f32 %v8931_v17, %v8223_v41  ;;  %v8933_v31 = vadd.f32 %v8932_v49, %v8891_v62 }
 0x731   : > { %v8893_v5 = vpop.f32.mrf.mxu1 }
 0x732   : > { %v8965_v34 = vadd.f32 %v8954_v27, %v8939_v39  ;;  %v8940_v48 = vadd.f32 %v8933_v31, %v8224_v37 }
 0x733   : > { %v8894_v55 = vpop.f32.mrf.mxu1 }
 0x734   : > { %v8966_v53 = vadd.f32 %v8958_v44, %v8940_v48  ;;  %v8969_v30 = vmax.f32 %v8965_v34, 0.0 }
 0x736   : > { %v8970_v43 = vmax.f32 %v8966_v53, 0.0  ;;  %v8973_v21 = vpack.c.bf16 %v8969_v30, %v8969_v30 }
 0x738   : > { %v8974_v11 = vpack.c.bf16 %v8970_v43, %v8970_v43 }
 0x73a   : > { %9304 = vmatprep.mubr.bf16.mxu1 %v8974_v11 }
 0x73b   : > { %9305 = vmatmul.mubr.bf16.vlgmr.msra.gmra.mxu1 %v8973_v21 }
 0x7bf   : > { %v11248_v0 = vpop.f32.mrf.mxu0 }
 0x7c1   : > { %v11249_v16 = vpop.f32.mrf.mxu0 }
 0x7c2   : > { %v11250_v9 = vadd.f32 %v11249_v16, %v11248_v0 }
 0x7c3   : > { %v11251_v36 = vpop.f32.mrf.mxu0 }
 0x7c4   : > { %v9267_v51 = vadd.f32 %v11250_v9, %v9039_v63 }
 0x7c5   : > { %v11252_v18 = vpop.f32.mrf.mxu0 }
 0x7fb   : > { %v11270_v4 = vpop.f32.mrf.mxu1 }
 0x7fd   : > { %v11271_v24 = vpop.f32.mrf.mxu1 }
 0x7fe   : > { %v11272_v13 = vadd.f32 %v11271_v24, %v11270_v4 }
 0x7ff   : > { %v11273_v42 = vpop.f32.mrf.mxu1 }
 0x800   : > { %v9307_v61 = vadd.f32 %v11272_v13, %v9267_v51 }
 0x801   : > { %v11274_v7 = vpop.f32.mrf.mxu1 }
 0x802   : > { %v9313_v33 = vsel %vm9312_vm10, %v9307_v61, -inf }
 0x803   : > { %9314 = vmax.xlane.f32.xlu0 %v9313_v33 }
 0x88c   : > { %v9315_v52 = vpop.xlane.xlu0 %9314 }
 0x88d   : > { %v9316_v14 = vsub.f32 %v9307_v61, %v9315_v52 }
 0x88f   : > { %v9317_v40 = vmul.f32 1.442695, %v9316_v14 }
 0x891   : > { %12869 = vpow2.f32 %v9317_v40 }
 0x89e   : > { %v12870_v29 = vpop.eup %12869 }
 0x89f   : > { %v9319_v41 = vsel %vm9312_vm10, %v12870_v29, 0.0 }
 0x8a0   : > { %9320 = vadd.xlane.f32.xlu1 %v9319_v41 }
 0x929   : > { %v9321_v15 = vpop.xlane.xlu1 %9320 }
 0x92a   : > { %12871 = vlog2.f32 %v9321_v15 }
 0x937   : > { %v12872_v50 = vpop.eup %12871 }
 0x938   : > { %v9323_v37 = vmul.f32 0.6931472, %v12872_v50 }
 0x93a   : > { %v9324_v59 = vsub.f32 %v9316_v14, %v9323_v37 }
 0x93c   : > { %9325 = vst [vmem:[%s324_s22] sm:$0x1] %v9324_v59 }
 0x93d   : > { %12886 = shalt.err (!%p12883_p3)
}
 0x93e   : > { %s12887_s16 = scalar_lea.hbm %s9337_s27, 16  ;;  %s12891_s22 = scalar_lea.hbm %s16981_s9, 32 }
 0x93f   : > { %p12888_p4 = scmp.ne.s32.totalorder %s9337_s27, %s12887_s16  ;;  %p12892_p9 = scmp.lt.s32.totalorder %s9337_s27, %s16981_s9 }
 0x940   : > { %p12893_p10 = scmp.lt.s32.totalorder %s12891_s22, %s12887_s16 }
 0x941   : > { %p12889_p7 = pnand %p12888_p4, %p13027_p5 }
 0x942   : > { %p12894_p11 = por %p12893_p10, %p12892_p9 }
 0x943   : > { %p12890_p8 = pneg %p12889_p7 }
 0x945   : > { %p12895_p12 = pnand %p12894_p11, %p12890_p8 }
 0x947   : > { %12898 = shalt.err (!%p12895_p12)
}
 0x948   : > { %11277 = dma.vmem_to_hbm [thread:$0]  (%p13027_p5), %s9340_s26, 16, %s9337_s27, %s9327_s24  }
 0x949 PF: > { %p11283_p13 = scmp.ge.s32.totalorder %s12933_s12, 2  ;;  %s9351_s28 = sand.u32 1, %s12921_s30  }
 0x94a   : > { %s9352_s29 = scalar_lea.sflag [#allocation3], %s9351_s28 }
 0x94b   : > { %p11280_p0 = pnand %p11283_p13, %p13031_p6 }
 0x94d   : > { %p11281_p1 = pneg %p11280_p0 }
 0x94f   : > { %12916 = dma.done.wait (%p11281_p1), %s9352_s29, 16  }
 0x950   : > { %12918 = vsyncadd (%p11281_p1), %s9352_s29, 4294967280  ;;  %p19_p2 = scmp.ge.s32.totalorder %s13014_s15, 4   ;;  %s17043_s30 = smov %s12925_s10 }
 0x951   : > { %s17044_s10 = smov %s12929_s11  ;;  %s17045_s11 = smov %s13025_s18 }
 0x952   : > { %s17046_s12 = smov %s13014_s15  ;;  %21 = sbr.rel (!%p19_p2) target bundleno = 3 (0x3), region = 102 }
 0x957   :  { %9356 = vsyncpa [#allocation3], 1 }
 0x958   :  { %9358 = vsyncpa [#allocation3 + $0x1], 1 }

</bundles_post_ra>
